<compile_context>
chip_gen: v6e
topology: v6e:2x2x1
jax: 0.10.0
libtpu: 0.0.40
codegen_flags: <defaults>
</compile_context>

<pallas_src>
import jax
import jax.numpy as jnp
from jax import lax
from jax.experimental import pallas as pl
from jax.experimental.pallas import tpu as pltpu

K = 4                              # conv kernel size of both convs in the block
VMEM_LIMIT = 32 * 1024 * 1024      # scoped-VMEM limit (safe on v5e / v6e / v7x)
VMEM_BUDGET = 24 * 1024 * 1024     # what we let the per-kernel blocks actually use


def _round_up(a, b):
    return (a + b - 1) // b * b


def _pick_row_tile(m, streamed_row_bytes, resident_bytes):
    """Largest row tile (multiple of 16) whose double-buffered blocks fit the VMEM budget."""
    avail = VMEM_BUDGET - 2 * resident_bytes          # resident blocks also get 2 buffers
    tm = avail // max(1, 2 * streamed_row_bytes)
    tm = max(16, min(2048, tm))
    tm = min(tm, _round_up(m, 16))
    return max(16, (tm // 16) * 16)


# ---------------------------------------------------------------------------
# Pallas kernels (the compute hot path)
# ---------------------------------------------------------------------------
def _down_matmul_relu_kernel(p_ref, w_ref, h_ref):
    """(LeakyReLU'd, im2col'd) x tile @ w_down on the MXU, fused ReLU, bf16 store."""
    h = jnp.dot(p_ref[...], w_ref[...], preferred_element_type=jnp.float32)
    h_ref[...] = jnp.maximum(h, 0.0).astype(h_ref.dtype)


def _up_matmul_stats_kernel(s_ref, w_ref, y_ref, st_ref):
    """4-parity transposed-conv tile from 9 shifted slabs + BatchNorm partials.

    s_ref : (9, tm, inner)     bf16   slab (u, v): hpad[u + r, v + c]
    w_ref : (4, 4, inner, O)   bf16   [parity, tap] 2x2 sub-kernels of the convT weight
    y_ref : (4, tm, O)         f32    raw (pre-norm) transposed-conv output per parity
    st_ref: (1, 2, O)          f32    per-tile (sum, sum of squares) over all parities
    """
    f32 = jnp.float32
    out_c = y_ref.shape[-1]
    tot_sum = jnp.zeros((1, out_c), f32)
    tot_sq = jnp.zeros((1, out_c), f32)
    for p in range(4):                       # output-pixel parity (py, px)
        py, px = p // 2, p % 2
        acc = None
        for t in range(4):                   # 2x2 tap (dy, dx)
            dy, dx = t // 2, t % 2
            s = (py + dy) * 3 + (px + dx)    # which of the 9 shifted slabs feeds this tap
            d = jnp.dot(s_ref[s], w_ref[p, t], preferred_element_type=f32)
            acc = d if acc is None else acc + d
        y_ref[p] = acc
        tot_sum = tot_sum + jnp.sum(acc, axis=0, keepdims=True)
        tot_sq = tot_sq + jnp.sum(acc * acc, axis=0, keepdims=True)
    st_ref[0] = jnp.concatenate([tot_sum, tot_sq], axis=0)


def _scale_shift_kernel(y_ref, a_ref, b_ref, o_ref):
    """y * a + b  (BatchNorm affine with precomputed global batch stats; a/b resident)."""
    o_ref[...] = y_ref[...] * a_ref[...] + b_ref[...]


# ---------------------------------------------------------------------------
# Wrapper (layout plumbing only)
# ---------------------------------------------------------------------------
def unet_innermost_forward(x, w_down, w_up, gamma, beta):
    """x: [N, input_nc, H, W] NCHW; returns [N, input_nc + outer_nc, H, W] NCHW."""
    n, cin, hh, ww = x.shape
    inner_nc = w_down.shape[0]
    outer_nc = w_up.shape[1]
    ho, wo = hh // 2, ww // 2
    m1 = n * ho * wo                            # rows of the down output / each up parity
    f32, bf16 = jnp.float32, jnp.bfloat16

    # ---- down path: LeakyReLU -> Conv2d(k=4, s=2, p=1, bias=False) -> fused ReLU ----
    kfeat = K * K * cin
    xa = jnp.where(x >= 0, x, 0.2 * x).astype(bf16)          # pre-expansion activation
    xa = jnp.transpose(xa, (0, 2, 3, 1))                     # NHWC
    xp = jnp.pad(xa, ((0, 0), (1, 1), (1, 1), (0, 0)))
    views = []
    for a in range(K):
        for b in range(K):
            views.append(lax.slice(
                xp, (0, a, b, 0),
                (n, a + 2 * (ho - 1) + 1, b + 2 * (wo - 1) + 1, cin),
                (1, 2, 2, 1)))                               # [N, ho, wo, cin]
    p1 = jnp.stack(views, axis=3).reshape(m1, kfeat)         # feature = (a*4+b)*cin + ci
    w1 = jnp.transpose(w_down, (2, 3, 1, 0)).reshape(kfeat, inner_nc).astype(bf16)

    tm_d = _pick_row_tile(m1, streamed_row_bytes=2 * (kfeat + inner_nc),
                          resident_bytes=2 * kfeat * inner_nc)
    m1d = _round_up(m1, tm_d)
    if m1d > m1:
        p1 = jnp.pad(p1, ((0, m1d - m1), (0, 0)))

    h_flat = pl.pallas_call(
        _down_matmul_relu_kernel,
        out_shape=jax.ShapeDtypeStruct((m1d, inner_nc), bf16),
        grid=(m1d // tm_d,),
        in_specs=[pl.BlockSpec((tm_d, kfeat), lambda i: (i, 0)),
                  pl.BlockSpec((kfeat, inner_nc), lambda i: (0, 0))],    # resident weight
        out_specs=pl.BlockSpec((tm_d, inner_nc), lambda i: (i, 0)),
        compiler_params=pltpu.CompilerParams(
            dimension_semantics=("parallel",), vmem_limit_bytes=VMEM_LIMIT),
    )(p1, w1)

    # ---- up path: ConvTranspose2d(k=4, s=2, p=1) as 4 parities x 4 taps from 9 slabs ----
    # Output pixel (2r+py, 2c+px) = sum_{dy,dx in {0,1}} hpad[py+dy+r, px+dx+c] @ Wk[p, t],
    # with Wk[p, t] = w_up[:, :, 3-(2dy+py), 3-(2dx+px)].  The (py+dy, px+dx) shifts only span
    # a 3x3 neighbourhood, so 9 shifted slab views of hpad feed all 16 (parity, tap) matmuls.
    ha = h_flat[:m1].reshape(n, ho, wo, inner_nc)            # already ReLU'd, bf16
    hp = jnp.pad(ha, ((0, 0), (1, 1), (1, 1), (0, 0)))
    slabs = jnp.stack(
        [lax.slice(hp, (0, u, v, 0), (n, u + ho, v + wo, inner_nc))
         for u in range(3) for v in range(3)], axis=0).reshape(9, m1, inner_nc)
    w2 = jnp.stack(
        [jnp.stack([w_up[:, :, 3 - (2 * dy + py), 3 - (2 * dx + px)]
                    for dy in range(2) for dx in range(2)], axis=0)
         for py in range(2) for px in range(2)], axis=0).astype(bf16)    # (4,4,inner,outer)

    tm_u = _pick_row_tile(
        m1, streamed_row_bytes=2 * 9 * inner_nc + 4 * 4 * outer_nc,
        resident_bytes=2 * 16 * inner_nc * outer_nc)
    m1u = _round_up(m1, tm_u)
    nt_u = m1u // tm_u
    if m1u > m1:
        slabs = jnp.pad(slabs, ((0, 0), (0, m1u - m1), (0, 0)))

    y_raw, stats = pl.pallas_call(
        _up_matmul_stats_kernel,
        out_shape=(jax.ShapeDtypeStruct((4, m1u, outer_nc), f32),
                   jax.ShapeDtypeStruct((nt_u, 2, outer_nc), f32)),
        grid=(nt_u,),
        in_specs=[pl.BlockSpec((9, tm_u, inner_nc), lambda i: (0, i, 0)),
                  pl.BlockSpec((4, 4, inner_nc, outer_nc),
                               lambda i: (0, 0, 0, 0))],                 # resident weights
        out_specs=(pl.BlockSpec((4, tm_u, outer_nc), lambda i: (0, i, 0)),
                   pl.BlockSpec((1, 2, outer_nc), lambda i: (i, 0, 0))),
        compiler_params=pltpu.CompilerParams(
            dimension_semantics=("parallel",), vmem_limit_bytes=VMEM_LIMIT),
    )(slabs, w2)

    # ---- BatchNorm2d (training-mode batch stats); padded rows are exact zeros so the
    # ---- per-channel element count is simply N*H*W = 4*m1 and the partial sums are exact ----
    count = 4.0 * m1
    tot = jnp.sum(stats, axis=0)                             # [2, outer_nc]
    mean = tot[0] / count
    var = tot[1] / count - mean * mean
    inv_std = lax.rsqrt(var + 1e-5)
    a_vec = (gamma * inv_std).astype(f32).reshape(1, 1, outer_nc)
    b_vec = (beta - mean * gamma * inv_std).astype(f32).reshape(1, 1, outer_nc)

    y_norm = pl.pallas_call(
        _scale_shift_kernel,
        out_shape=jax.ShapeDtypeStruct((4, m1u, outer_nc), f32),
        grid=(nt_u,),
        in_specs=[pl.BlockSpec((4, tm_u, outer_nc), lambda i: (0, i, 0)),
                  pl.BlockSpec((1, 1, outer_nc), lambda i: (0, 0, 0)),   # resident
                  pl.BlockSpec((1, 1, outer_nc), lambda i: (0, 0, 0))],  # resident
        out_specs=pl.BlockSpec((4, tm_u, outer_nc), lambda i: (0, i, 0)),
        compiler_params=pltpu.CompilerParams(
            dimension_semantics=("parallel",), vmem_limit_bytes=VMEM_LIMIT),
    )(y_raw, a_vec, b_vec)

    # ---- de-interleave parities, back to NCHW, skip concat done once in the wrapper ----
    y4 = y_norm[:, :m1].reshape(2, 2, n, ho, wo, outer_nc)   # (py, px, N, ho, wo, O)
    y_nhwc = jnp.transpose(y4, (2, 3, 0, 4, 1, 5)).reshape(n, hh, ww, outer_nc)
    y_nchw = jnp.transpose(y_nhwc, (0, 3, 1, 2))
    return jnp.concatenate([x, y_nchw], axis=1)


# ---------------------------------------------------------------------------
# Pure-JAX reference (same bf16 operand rounding as the kernels)
# ---------------------------------------------------------------------------
def _ref_forward(x, w_down, w_up, gamma, beta):
    bf16 = jnp.bfloat16
    xa = jnp.where(x >= 0, x, 0.2 * x).astype(bf16)
    h = lax.conv_general_dilated(xa, w_down.astype(bf16), (2, 2), ((1, 1), (1, 1)),
                                 dimension_numbers=('NCHW', 'OIHW', 'NCHW'),
                                 preferred_element_type=jnp.float32)
    ha = jnp.maximum(h, 0.0).astype(bf16)
    w_eq = jnp.transpose(w_up, (1, 0, 2, 3))[:, :, ::-1, ::-1].astype(bf16)
    y = lax.conv_general_dilated(ha, w_eq, (1, 1), ((2, 2), (2, 2)), lhs_dilation=(2, 2),
                                 dimension_numbers=('NCHW', 'OIHW', 'NCHW'),
                                 preferred_element_type=jnp.float32)
    mean = jnp.mean(y, axis=(0, 2, 3), keepdims=True)
    var = jnp.mean(jnp.square(y - mean), axis=(0, 2, 3), keepdims=True)
    yn = (y - mean) * lax.rsqrt(var + 1e-5)
    yn = yn * gamma.reshape(1, -1, 1, 1) + beta.reshape(1, -1, 1, 1)
    return jnp.concatenate([x, yn], axis=1)


if __name__ == "__main__":
    key = jax.random.PRNGKey(0)
    k1, k2, k3, k4, k5 = jax.random.split(key, 5)

    n, outer_nc, inner_nc, hh, ww = 2, 4, 8, 16, 16
    input_nc = outer_nc            # module: input_nc=None -> input_nc = outer_nc

    x = jax.random.normal(k1, (n, input_nc, hh, ww), jnp.float32)
    # Conv2d weight: [inner_nc, input_nc, 4, 4]; ConvTranspose2d weight: [inner_nc, outer_nc, 4, 4]
    w_down = 0.1 * jax.random.normal(k2, (inner_nc, input_nc, K, K), jnp.float32)
    w_up = 0.1 * jax.random.normal(k3, (inner_nc, outer_nc, K, K), jnp.float32)
    gamma = 1.0 + 0.1 * jax.random.normal(k4, (outer_nc,), jnp.float32)
    beta = 0.1 * jax.random.normal(k5, (outer_nc,), jnp.float32)

    fwd = jax.jit(unet_innermost_forward)
    out = jax.block_until_ready(fwd(x, w_down, w_up, gamma, beta))
    ref = _ref_forward(x, w_down, w_up, gamma, beta)

    assert out.shape == (n, input_nc + outer_nc, hh, ww), out.shape
    err = float(jnp.max(jnp.abs(out - ref)))
    assert err < 1e-2, err
    print("KERNEL_OK")
</pallas_src>

<mosaic_0001>
module attributes {stable_mosaic.version = 11 : i64} {
  func.func @_down_matmul_relu_kernel(%arg0: i32, %arg1: memref<128x64xbf16, #tpu.memory_space<vmem>>, %arg2: memref<64x8xbf16, #tpu.memory_space<vmem>>, %arg3: memref<128x8xbf16, #tpu.memory_space<vmem>>) attributes {dimension_semantics = [#tpu.dimension_semantics<parallel>], iteration_bounds = array<i64: 1>, scalar_prefetch = 0 : i64, scratch_operands = 0 : i64, tpu.core_type = #tpu.core_type<tc>, window_params = [{transform_indices = @transform_0, window_bounds = array<i64: 128, 64>}, {pipeline_mode = #tpu.pipeline_mode<synchronous>, transform_indices = @transform_1, window_bounds = array<i64: 64, 8>}, {transform_indices = @transform_2, window_bounds = array<i64: 128, 8>}]} {
    %c0 = arith.constant 0 : index
    %c0_0 = arith.constant 0 : index
    %0 = vector.load %arg1[%c0, %c0_0] : memref<128x64xbf16, #tpu.memory_space<vmem>>, vector<128x64xbf16>
    %c0_1 = arith.constant 0 : index
    %c0_2 = arith.constant 0 : index
    %1 = vector.load %arg2[%c0_1, %c0_2] : memref<64x8xbf16, #tpu.memory_space<vmem>>, vector<64x8xbf16>
    %cst = arith.constant dense<0.000000e+00> : vector<128x8xf32>
    %2 = tpu.matmul %0, %1, %cst {dimension_numbers = #tpu.dot_dimension_numbers<[1], [0], [0], [1], [0, 0, 1, 1], [], []>} : vector<128x64xbf16>, vector<64x8xbf16>, vector<128x8xf32> -> vector<128x8xf32>
    %cst_3 = arith.constant 0.000000e+00 : f32
    %3 = vector.broadcast %cst_3 : f32 to vector<128x8xf32>
    %4 = arith.maximumf %2, %3 : vector<128x8xf32>
    %5 = arith.truncf %4 : vector<128x8xf32> to vector<128x8xbf16>
    %c0_4 = arith.constant 0 : index
    %c0_5 = arith.constant 0 : index
    %6 = vector.load %arg3[%c0_4, %c0_5] : memref<128x8xbf16, #tpu.memory_space<vmem>>, vector<128x8xbf16>
    tpu.vector_store %arg3[%c0_4, %c0_5], %5 {strides = array<i32>} : memref<128x8xbf16, #tpu.memory_space<vmem>>, vector<128x8xbf16>,
    return
  }
  func.func @transform_0(%arg0: i32) -> (i32, i32) {
    %c0_i32 = arith.constant 0 : i32
    %c0_i32_0 = arith.constant 0 : i32
    return %arg0, %c0_i32 : i32, i32
  }
  func.func @transform_1(%arg0: i32) -> (i32, i32) {
    %c0_i32 = arith.constant 0 : i32
    %c0_i32_0 = arith.constant 0 : i32
    %c0_i32_1 = arith.constant 0 : i32
    return %c0_i32, %c0_i32_0 : i32, i32
  }
  func.func @transform_2(%arg0: i32) -> (i32, i32) {
    %c0_i32 = arith.constant 0 : i32
    %c0_i32_0 = arith.constant 0 : i32
    return %arg0, %c0_i32 : i32, i32
  }
}

module attributes {stable_mosaic.version = 11 : i64} {
  func.func @_up_matmul_stats_kernel(%arg0: i32, %arg1: memref<9x128x8xbf16, #tpu.memory_space<vmem>>, %arg2: memref<4x4x8x4xbf16, #tpu.memory_space<vmem>>, %arg3: memref<4x128x4xf32, #tpu.memory_space<vmem>>, %arg4: memref<1x2x4xf32, #tpu.memory_space<vmem>>) attributes {dimension_semantics = [#tpu.dimension_semantics<parallel>], iteration_bounds = array<i64: 1>, scalar_prefetch = 0 : i64, scratch_operands = 0 : i64, tpu.core_type = #tpu.core_type<tc>, window_params = [{transform_indices = @transform_0, window_bounds = array<i64: 9, 128, 8>}, {pipeline_mode = #tpu.pipeline_mode<synchronous>, transform_indices = @transform_1, window_bounds = array<i64: 4, 4, 8, 4>}, {transform_indices = @transform_2, window_bounds = array<i64: 4, 128, 4>}, {transform_indices = @transform_3, window_bounds = array<i64: 1, 2, 4>}]} {
    %cst = arith.constant 0.000000e+00 : f32
    %0 = vector.broadcast %cst : f32 to vector<1x4xf32>
    %cst_0 = arith.constant 0.000000e+00 : f32
    %1 = vector.broadcast %cst_0 : f32 to vector<1x4xf32>
    %c0 = arith.constant 0 : index
    %c0_1 = arith.constant 0 : index
    %c0_2 = arith.constant 0 : index
    %2 = vector.load %arg1[%c0, %c0_1, %c0_2] : memref<9x128x8xbf16, #tpu.memory_space<vmem>>, vector<1x128x8xbf16>
    %3 = vector.shape_cast %2 : vector<1x128x8xbf16> to vector<128x8xbf16>
    %c0_3 = arith.constant 0 : index
    %c0_4 = arith.constant 0 : index
    %c0_5 = arith.constant 0 : index
    %c0_6 = arith.constant 0 : index
    %4 = vector.load %arg2[%c0_3, %c0_4, %c0_5, %c0_6] : memref<4x4x8x4xbf16, #tpu.memory_space<vmem>>, vector<1x1x8x4xbf16>
    %5 = vector.shape_cast %4 : vector<1x1x8x4xbf16> to vector<8x4xbf16>
    %cst_7 = arith.constant dense<0.000000e+00> : vector<128x4xf32>
    %6 = tpu.matmul %3, %5, %cst_7 {dimension_numbers = #tpu.dot_dimension_numbers<[1], [0], [0], [1], [0, 0, 1, 1], [], []>} : vector<128x8xbf16>, vector<8x4xbf16>, vector<128x4xf32> -> vector<128x4xf32>
    %c1 = arith.constant 1 : index
    %c0_8 = arith.constant 0 : index
    %c0_9 = arith.constant 0 : index
    %7 = vector.load %arg1[%c1, %c0_8, %c0_9] : memref<9x128x8xbf16, #tpu.memory_space<vmem>>, vector<1x128x8xbf16>
    %8 = vector.shape_cast %7 : vector<1x128x8xbf16> to vector<128x8xbf16>
    %c0_10 = arith.constant 0 : index
    %c1_11 = arith.constant 1 : index
    %c0_12 = arith.constant 0 : index
    %c0_13 = arith.constant 0 : index
    %9 = vector.load %arg2[%c0_10, %c1_11, %c0_12, %c0_13] : memref<4x4x8x4xbf16, #tpu.memory_space<vmem>>, vector<1x1x8x4xbf16>
    %10 = vector.shape_cast %9 : vector<1x1x8x4xbf16> to vector<8x4xbf16>
    %cst_14 = arith.constant dense<0.000000e+00> : vector<128x4xf32>
    %11 = tpu.matmul %8, %10, %cst_14 {dimension_numbers = #tpu.dot_dimension_numbers<[1], [0], [0], [1], [0, 0, 1, 1], [], []>} : vector<128x8xbf16>, vector<8x4xbf16>, vector<128x4xf32> -> vector<128x4xf32>
    %12 = arith.addf %6, %11 : vector<128x4xf32>
    %c3 = arith.constant 3 : index
    %c0_15 = arith.constant 0 : index
    %c0_16 = arith.constant 0 : index
    %13 = vector.load %arg1[%c3, %c0_15, %c0_16] : memref<9x128x8xbf16, #tpu.memory_space<vmem>>, vector<1x128x8xbf16>
    %14 = vector.shape_cast %13 : vector<1x128x8xbf16> to vector<128x8xbf16>
    %c0_17 = arith.constant 0 : index
    %c2 = arith.constant 2 : index
    %c0_18 = arith.constant 0 : index
    %c0_19 = arith.constant 0 : index
    %15 = vector.load %arg2[%c0_17, %c2, %c0_18, %c0_19] : memref<4x4x8x4xbf16, #tpu.memory_space<vmem>>, vector<1x1x8x4xbf16>
    %16 = vector.shape_cast %15 : vector<1x1x8x4xbf16> to vector<8x4xbf16>
    %cst_20 = arith.constant dense<0.000000e+00> : vector<128x4xf32>
    %17 = tpu.matmul %14, %16, %cst_20 {dimension_numbers = #tpu.dot_dimension_numbers<[1], [0], [0], [1], [0, 0, 1, 1], [], []>} : vector<128x8xbf16>, vector<8x4xbf16>, vector<128x4xf32> -> vector<128x4xf32>
    %18 = arith.addf %12, %17 : vector<128x4xf32>
    %c4 = arith.constant 4 : index
    %c0_21 = arith.constant 0 : index
    %c0_22 = arith.constant 0 : index
    %19 = vector.load %arg1[%c4, %c0_21, %c0_22] : memref<9x128x8xbf16, #tpu.memory_space<vmem>>, vector<1x128x8xbf16>
    %20 = vector.shape_cast %19 : vector<1x128x8xbf16> to vector<128x8xbf16>
    %c0_23 = arith.constant 0 : index
    %c3_24 = arith.constant 3 : index
    %c0_25 = arith.constant 0 : index
    %c0_26 = arith.constant 0 : index
    %21 = vector.load %arg2[%c0_23, %c3_24, %c0_25, %c0_26] : memref<4x4x8x4xbf16, #tpu.memory_space<vmem>>, vector<1x1x8x4xbf16>
    %22 = vector.shape_cast %21 : vector<1x1x8x4xbf16> to vector<8x4xbf16>
    %cst_27 = arith.constant dense<0.000000e+00> : vector<128x4xf32>
    %23 = tpu.matmul %20, %22, %cst_27 {dimension_numbers = #tpu.dot_dimension_numbers<[1], [0], [0], [1], [0, 0, 1, 1], [], []>} : vector<128x8xbf16>, vector<8x4xbf16>, vector<128x4xf32> -> vector<128x4xf32>
    %24 = arith.addf %18, %23 : vector<128x4xf32>
    %c0_28 = arith.constant 0 : index
    %c0_29 = arith.constant 0 : index
    %c0_30 = arith.constant 0 : index
    %25 = vector.load %arg3[%c0_28, %c0_29, %c0_30] : memref<4x128x4xf32, #tpu.memory_space<vmem>>, vector<1x128x4xf32>
    %26 = vector.shape_cast %25 : vector<1x128x4xf32> to vector<128x4xf32>
    %27 = vector.shape_cast %24 : vector<128x4xf32> to vector<1x128x4xf32>
    tpu.vector_store %arg3[%c0_28, %c0_29, %c0_30], %27 {strides = array<i32>} : memref<4x128x4xf32, #tpu.memory_space<vmem>>, vector<1x128x4xf32>,
    %cst_31 = arith.constant dense<0.000000e+00> : vector<4xf32>
    %28 = vector.multi_reduction <add>, %24, %cst_31 [0] : vector<128x4xf32> to vector<4xf32>
    %29 = vector.shape_cast %28 : vector<4xf32> to vector<1x4xf32>
    %30 = arith.addf %0, %29 : vector<1x4xf32>
    %31 = arith.mulf %24, %24 : vector<128x4xf32>
    %cst_32 = arith.constant dense<0.000000e+00> : vector<4xf32>
    %32 = vector.multi_reduction <add>, %31, %cst_32 [0] : vector<128x4xf32> to vector<4xf32>
    %33 = vector.shape_cast %32 : vector<4xf32> to vector<1x4xf32>
    %34 = arith.addf %1, %33 : vector<1x4xf32>
    %c1_33 = arith.constant 1 : index
    %c0_34 = arith.constant 0 : index
    %c0_35 = arith.constant 0 : index
    %35 = vector.load %arg1[%c1_33, %c0_34, %c0_35] : memref<9x128x8xbf16, #tpu.memory_space<vmem>>, vector<1x128x8xbf16>
    %36 = vector.shape_cast %35 : vector<1x128x8xbf16> to vector<128x8xbf16>
    %c1_36 = arith.constant 1 : index
    %c0_37 = arith.constant 0 : index
    %c0_38 = arith.constant 0 : index
    %c0_39 = arith.constant 0 : index
    %37 = vector.load %arg2[%c1_36, %c0_37, %c0_38, %c0_39] : memref<4x4x8x4xbf16, #tpu.memory_space<vmem>>, vector<1x1x8x4xbf16>
    %38 = vector.shape_cast %37 : vector<1x1x8x4xbf16> to vector<8x4xbf16>
    %cst_40 = arith.constant dense<0.000000e+00> : vector<128x4xf32>
    %39 = tpu.matmul %36, %38, %cst_40 {dimension_numbers = #tpu.dot_dimension_numbers<[1], [0], [0], [1], [0, 0, 1, 1], [], []>} : vector<128x8xbf16>, vector<8x4xbf16>, vector<128x4xf32> -> vector<128x4xf32>
    %c2_41 = arith.constant 2 : index
    %c0_42 = arith.constant 0 : index
    %c0_43 = arith.constant 0 : index
    %40 = vector.load %arg1[%c2_41, %c0_42, %c0_43] : memref<9x128x8xbf16, #tpu.memory_space<vmem>>, vector<1x128x8xbf16>
    %41 = vector.shape_cast %40 : vector<1x128x8xbf16> to vector<128x8xbf16>
    %c1_44 = arith.constant 1 : index
    %c1_45 = arith.constant 1 : index
    %c0_46 = arith.constant 0 : index
    %c0_47 = arith.constant 0 : index
    %42 = vector.load %arg2[%c1_44, %c1_45, %c0_46, %c0_47] : memref<4x4x8x4xbf16, #tpu.memory_space<vmem>>, vector<1x1x8x4xbf16>
    %43 = vector.shape_cast %42 : vector<1x1x8x4xbf16> to vector<8x4xbf16>
    %cst_48 = arith.constant dense<0.000000e+00> : vector<128x4xf32>
    %44 = tpu.matmul %41, %43, %cst_48 {dimension_numbers = #tpu.dot_dimension_numbers<[1], [0], [0], [1], [0, 0, 1, 1], [], []>} : vector<128x8xbf16>, vector<8x4xbf16>, vector<128x4xf32> -> vector<128x4xf32>
    %45 = arith.addf %39, %44 : vector<128x4xf32>
    %c4_49 = arith.constant 4 : index
    %c0_50 = arith.constant 0 : index
    %c0_51 = arith.constant 0 : index
    %46 = vector.load %arg1[%c4_49, %c0_50, %c0_51] : memref<9x128x8xbf16, #tpu.memory_space<vmem>>, vector<1x128x8xbf16>
    %47 = vector.shape_cast %46 : vector<1x128x8xbf16> to vector<128x8xbf16>
    %c1_52 = arith.constant 1 : index
    %c2_53 = arith.constant 2 : index
    %c0_54 = arith.constant 0 : index
    %c0_55 = arith.constant 0 : index
    %48 = vector.load %arg2[%c1_52, %c2_53, %c0_54, %c0_55] : memref<4x4x8x4xbf16, #tpu.memory_space<vmem>>, vector<1x1x8x4xbf16>
    %49 = vector.shape_cast %48 : vector<1x1x8x4xbf16> to vector<8x4xbf16>
    %cst_56 = arith.constant dense<0.000000e+00> : vector<128x4xf32>
    %50 = tpu.matmul %47, %49, %cst_56 {dimension_numbers = #tpu.dot_dimension_numbers<[1], [0], [0], [1], [0, 0, 1, 1], [], []>} : vector<128x8xbf16>, vector<8x4xbf16>, vector<128x4xf32> -> vector<128x4xf32>
    %51 = arith.addf %45, %50 : vector<128x4xf32>
    %c5 = arith.constant 5 : index
    %c0_57 = arith.constant 0 : index
    %c0_58 = arith.constant 0 : index
    %52 = vector.load %arg1[%c5, %c0_57, %c0_58] : memref<9x128x8xbf16, #tpu.memory_space<vmem>>, vector<1x128x8xbf16>
    %53 = vector.shape_cast %52 : vector<1x128x8xbf16> to vector<128x8xbf16>
    %c1_59 = arith.constant 1 : index
    %c3_60 = arith.constant 3 : index
    %c0_61 = arith.constant 0 : index
    %c0_62 = arith.constant 0 : index
    %54 = vector.load %arg2[%c1_59, %c3_60, %c0_61, %c0_62] : memref<4x4x8x4xbf16, #tpu.memory_space<vmem>>, vector<1x1x8x4xbf16>
    %55 = vector.shape_cast %54 : vector<1x1x8x4xbf16> to vector<8x4xbf16>
    %cst_63 = arith.constant dense<0.000000e+00> : vector<128x4xf32>
    %56 = tpu.matmul %53, %55, %cst_63 {dimension_numbers = #tpu.dot_dimension_numbers<[1], [0], [0], [1], [0, 0, 1, 1], [], []>} : vector<128x8xbf16>, vector<8x4xbf16>, vector<128x4xf32> -> vector<128x4xf32>
    %57 = arith.addf %51, %56 : vector<128x4xf32>
    %c1_64 = arith.constant 1 : index
    %c0_65 = arith.constant 0 : index
    %c0_66 = arith.constant 0 : index
    %58 = vector.load %arg3[%c1_64, %c0_65, %c0_66] : memref<4x128x4xf32, #tpu.memory_space<vmem>>, vector<1x128x4xf32>
    %59 = vector.shape_cast %58 : vector<1x128x4xf32> to vector<128x4xf32>
    %60 = vector.shape_cast %57 : vector<128x4xf32> to vector<1x128x4xf32>
    tpu.vector_store %arg3[%c1_64, %c0_65, %c0_66], %60 {strides = array<i32>} : memref<4x128x4xf32, #tpu.memory_space<vmem>>, vector<1x128x4xf32>,
    %cst_67 = arith.constant dense<0.000000e+00> : vector<4xf32>
    %61 = vector.multi_reduction <add>, %57, %cst_67 [0] : vector<128x4xf32> to vector<4xf32>
    %62 = vector.shape_cast %61 : vector<4xf32> to vector<1x4xf32>
    %63 = arith.addf %30, %62 : vector<1x4xf32>
    %64 = arith.mulf %57, %57 : vector<128x4xf32>
    %cst_68 = arith.constant dense<0.000000e+00> : vector<4xf32>
    %65 = vector.multi_reduction <add>, %64, %cst_68 [0] : vector<128x4xf32> to vector<4xf32>
    %66 = vector.shape_cast %65 : vector<4xf32> to vector<1x4xf32>
    %67 = arith.addf %34, %66 : vector<1x4xf32>
    %c3_69 = arith.constant 3 : index
    %c0_70 = arith.constant 0 : index
    %c0_71 = arith.constant 0 : index
    %68 = vector.load %arg1[%c3_69, %c0_70, %c0_71] : memref<9x128x8xbf16, #tpu.memory_space<vmem>>, vector<1x128x8xbf16>
    %69 = vector.shape_cast %68 : vector<1x128x8xbf16> to vector<128x8xbf16>
    %c2_72 = arith.constant 2 : index
    %c0_73 = arith.constant 0 : index
    %c0_74 = arith.constant 0 : index
    %c0_75 = arith.constant 0 : index
    %70 = vector.load %arg2[%c2_72, %c0_73, %c0_74, %c0_75] : memref<4x4x8x4xbf16, #tpu.memory_space<vmem>>, vector<1x1x8x4xbf16>
    %71 = vector.shape_cast %70 : vector<1x1x8x4xbf16> to vector<8x4xbf16>
    %cst_76 = arith.constant dense<0.000000e+00> : vector<128x4xf32>
    %72 = tpu.matmul %69, %71, %cst_76 {dimension_numbers = #tpu.dot_dimension_numbers<[1], [0], [0], [1], [0, 0, 1, 1], [], []>} : vector<128x8xbf16>, vector<8x4xbf16>, vector<128x4xf32> -> vector<128x4xf32>
    %c4_77 = arith.constant 4 : index
    %c0_78 = arith.constant 0 : index
    %c0_79 = arith.constant 0 : index
    %73 = vector.load %arg1[%c4_77, %c0_78, %c0_79] : memref<9x128x8xbf16, #tpu.memory_space<vmem>>, vector<1x128x8xbf16>
    %74 = vector.shape_cast %73 : vector<1x128x8xbf16> to vector<128x8xbf16>
    %c2_80 = arith.constant 2 : index
    %c1_81 = arith.constant 1 : index
    %c0_82 = arith.constant 0 : index
    %c0_83 = arith.constant 0 : index
    %75 = vector.load %arg2[%c2_80, %c1_81, %c0_82, %c0_83] : memref<4x4x8x4xbf16, #tpu.memory_space<vmem>>, vector<1x1x8x4xbf16>
    %76 = vector.shape_cast %75 : vector<1x1x8x4xbf16> to vector<8x4xbf16>
    %cst_84 = arith.constant dense<0.000000e+00> : vector<128x4xf32>
    %77 = tpu.matmul %74, %76, %cst_84 {dimension_numbers = #tpu.dot_dimension_numbers<[1], [0], [0], [1], [0, 0, 1, 1], [], []>} : vector<128x8xbf16>, vector<8x4xbf16>, vector<128x4xf32> -> vector<128x4xf32>
    %78 = arith.addf %72, %77 : vector<128x4xf32>
    %c6 = arith.constant 6 : index
    %c0_85 = arith.constant 0 : index
    %c0_86 = arith.constant 0 : index
    %79 = vector.load %arg1[%c6, %c0_85, %c0_86] : memref<9x128x8xbf16, #tpu.memory_space<vmem>>, vector<1x128x8xbf16>
    %80 = vector.shape_cast %79 : vector<1x128x8xbf16> to vector<128x8xbf16>
    %c2_87 = arith.constant 2 : index
    %c2_88 = arith.constant 2 : index
    %c0_89 = arith.constant 0 : index
    %c0_90 = arith.constant 0 : index
    %81 = vector.load %arg2[%c2_87, %c2_88, %c0_89, %c0_90] : memref<4x4x8x4xbf16, #tpu.memory_space<vmem>>, vector<1x1x8x4xbf16>
    %82 = vector.shape_cast %81 : vector<1x1x8x4xbf16> to vector<8x4xbf16>
    %cst_91 = arith.constant dense<0.000000e+00> : vector<128x4xf32>
    %83 = tpu.matmul %80, %82, %cst_91 {dimension_numbers = #tpu.dot_dimension_numbers<[1], [0], [0], [1], [0, 0, 1, 1], [], []>} : vector<128x8xbf16>, vector<8x4xbf16>, vector<128x4xf32> -> vector<128x4xf32>
    %84 = arith.addf %78, %83 : vector<128x4xf32>
    %c7 = arith.constant 7 : index
    %c0_92 = arith.constant 0 : index
    %c0_93 = arith.constant 0 : index
    %85 = vector.load %arg1[%c7, %c0_92, %c0_93] : memref<9x128x8xbf16, #tpu.memory_space<vmem>>, vector<1x128x8xbf16>
    %86 = vector.shape_cast %85 : vector<1x128x8xbf16> to vector<128x8xbf16>
    %c2_94 = arith.constant 2 : index
    %c3_95 = arith.constant 3 : index
    %c0_96 = arith.constant 0 : index
    %c0_97 = arith.constant 0 : index
    %87 = vector.load %arg2[%c2_94, %c3_95, %c0_96, %c0_97] : memref<4x4x8x4xbf16, #tpu.memory_space<vmem>>, vector<1x1x8x4xbf16>
    %88 = vector.shape_cast %87 : vector<1x1x8x4xbf16> to vector<8x4xbf16>
    %cst_98 = arith.constant dense<0.000000e+00> : vector<128x4xf32>
    %89 = tpu.matmul %86, %88, %cst_98 {dimension_numbers = #tpu.dot_dimension_numbers<[1], [0], [0], [1], [0, 0, 1, 1], [], []>} : vector<128x8xbf16>, vector<8x4xbf16>, vector<128x4xf32> -> vector<128x4xf32>
    %90 = arith.addf %84, %89 : vector<128x4xf32>
    %c2_99 = arith.constant 2 : index
    %c0_100 = arith.constant 0 : index
    %c0_101 = arith.constant 0 : index
    %91 = vector.load %arg3[%c2_99, %c0_100, %c0_101] : memref<4x128x4xf32, #tpu.memory_space<vmem>>, vector<1x128x4xf32>
    %92 = vector.shape_cast %91 : vector<1x128x4xf32> to vector<128x4xf32>
    %93 = vector.shape_cast %90 : vector<128x4xf32> to vector<1x128x4xf32>
    tpu.vector_store %arg3[%c2_99, %c0_100, %c0_101], %93 {strides = array<i32>} : memref<4x128x4xf32, #tpu.memory_space<vmem>>, vector<1x128x4xf32>,
    %cst_102 = arith.constant dense<0.000000e+00> : vector<4xf32>
    %94 = vector.multi_reduction <add>, %90, %cst_102 [0] : vector<128x4xf32> to vector<4xf32>
    %95 = vector.shape_cast %94 : vector<4xf32> to vector<1x4xf32>
    %96 = arith.addf %63, %95 : vector<1x4xf32>
    %97 = arith.mulf %90, %90 : vector<128x4xf32>
    %cst_103 = arith.constant dense<0.000000e+00> : vector<4xf32>
    %98 = vector.multi_reduction <add>, %97, %cst_103 [0] : vector<128x4xf32> to vector<4xf32>
    %99 = vector.shape_cast %98 : vector<4xf32> to vector<1x4xf32>
    %100 = arith.addf %67, %99 : vector<1x4xf32>
    %c4_104 = arith.constant 4 : index
    %c0_105 = arith.constant 0 : index
    %c0_106 = arith.constant 0 : index
    %101 = vector.load %arg1[%c4_104, %c0_105, %c0_106] : memref<9x128x8xbf16, #tpu.memory_space<vmem>>, vector<1x128x8xbf16>
    %102 = vector.shape_cast %101 : vector<1x128x8xbf16> to vector<128x8xbf16>
    %c3_107 = arith.constant 3 : index
    %c0_108 = arith.constant 0 : index
    %c0_109 = arith.constant 0 : index
    %c0_110 = arith.constant 0 : index
    %103 = vector.load %arg2[%c3_107, %c0_108, %c0_109, %c0_110] : memref<4x4x8x4xbf16, #tpu.memory_space<vmem>>, vector<1x1x8x4xbf16>
    %104 = vector.shape_cast %103 : vector<1x1x8x4xbf16> to vector<8x4xbf16>
    %cst_111 = arith.constant dense<0.000000e+00> : vector<128x4xf32>
    %105 = tpu.matmul %102, %104, %cst_111 {dimension_numbers = #tpu.dot_dimension_numbers<[1], [0], [0], [1], [0, 0, 1, 1], [], []>} : vector<128x8xbf16>, vector<8x4xbf16>, vector<128x4xf32> -> vector<128x4xf32>
    %c5_112 = arith.constant 5 : index
    %c0_113 = arith.constant 0 : index
    %c0_114 = arith.constant 0 : index
    %106 = vector.load %arg1[%c5_112, %c0_113, %c0_114] : memref<9x128x8xbf16, #tpu.memory_space<vmem>>, vector<1x128x8xbf16>
    %107 = vector.shape_cast %106 : vector<1x128x8xbf16> to vector<128x8xbf16>
    %c3_115 = arith.constant 3 : index
    %c1_116 = arith.constant 1 : index
    %c0_117 = arith.constant 0 : index
    %c0_118 = arith.constant 0 : index
    %108 = vector.load %arg2[%c3_115, %c1_116, %c0_117, %c0_118] : memref<4x4x8x4xbf16, #tpu.memory_space<vmem>>, vector<1x1x8x4xbf16>
    %109 = vector.shape_cast %108 : vector<1x1x8x4xbf16> to vector<8x4xbf16>
    %cst_119 = arith.constant dense<0.000000e+00> : vector<128x4xf32>
    %110 = tpu.matmul %107, %109, %cst_119 {dimension_numbers = #tpu.dot_dimension_numbers<[1], [0], [0], [1], [0, 0, 1, 1], [], []>} : vector<128x8xbf16>, vector<8x4xbf16>, vector<128x4xf32> -> vector<128x4xf32>
    %111 = arith.addf %105, %110 : vector<128x4xf32>
    %c7_120 = arith.constant 7 : index
    %c0_121 = arith.constant 0 : index
    %c0_122 = arith.constant 0 : index
    %112 = vector.load %arg1[%c7_120, %c0_121, %c0_122] : memref<9x128x8xbf16, #tpu.memory_space<vmem>>, vector<1x128x8xbf16>
    %113 = vector.shape_cast %112 : vector<1x128x8xbf16> to vector<128x8xbf16>
    %c3_123 = arith.constant 3 : index
    %c2_124 = arith.constant 2 : index
    %c0_125 = arith.constant 0 : index
    %c0_126 = arith.constant 0 : index
    %114 = vector.load %arg2[%c3_123, %c2_124, %c0_125, %c0_126] : memref<4x4x8x4xbf16, #tpu.memory_space<vmem>>, vector<1x1x8x4xbf16>
    %115 = vector.shape_cast %114 : vector<1x1x8x4xbf16> to vector<8x4xbf16>
    %cst_127 = arith.constant dense<0.000000e+00> : vector<128x4xf32>
    %116 = tpu.matmul %113, %115, %cst_127 {dimension_numbers = #tpu.dot_dimension_numbers<[1], [0], [0], [1], [0, 0, 1, 1], [], []>} : vector<128x8xbf16>, vector<8x4xbf16>, vector<128x4xf32> -> vector<128x4xf32>
    %117 = arith.addf %111, %116 : vector<128x4xf32>
    %c8 = arith.constant 8 : index
    %c0_128 = arith.constant 0 : index
    %c0_129 = arith.constant 0 : index
    %118 = vector.load %arg1[%c8, %c0_128, %c0_129] : memref<9x128x8xbf16, #tpu.memory_space<vmem>>, vector<1x128x8xbf16>
    %119 = vector.shape_cast %118 : vector<1x128x8xbf16> to vector<128x8xbf16>
    %c3_130 = arith.constant 3 : index
    %c3_131 = arith.constant 3 : index
    %c0_132 = arith.constant 0 : index
    %c0_133 = arith.constant 0 : index
    %120 = vector.load %arg2[%c3_130, %c3_131, %c0_132, %c0_133] : memref<4x4x8x4xbf16, #tpu.memory_space<vmem>>, vector<1x1x8x4xbf16>
    %121 = vector.shape_cast %120 : vector<1x1x8x4xbf16> to vector<8x4xbf16>
    %cst_134 = arith.constant dense<0.000000e+00> : vector<128x4xf32>
    %122 = tpu.matmul %119, %121, %cst_134 {dimension_numbers = #tpu.dot_dimension_numbers<[1], [0], [0], [1], [0, 0, 1, 1], [], []>} : vector<128x8xbf16>, vector<8x4xbf16>, vector<128x4xf32> -> vector<128x4xf32>
    %123 = arith.addf %117, %122 : vector<128x4xf32>
    %c3_135 = arith.constant 3 : index
    %c0_136 = arith.constant 0 : index
    %c0_137 = arith.constant 0 : index
    %124 = vector.load %arg3[%c3_135, %c0_136, %c0_137] : memref<4x128x4xf32, #tpu.memory_space<vmem>>, vector<1x128x4xf32>
    %125 = vector.shape_cast %124 : vector<1x128x4xf32> to vector<128x4xf32>
    %126 = vector.shape_cast %123 : vector<128x4xf32> to vector<1x128x4xf32>
    tpu.vector_store %arg3[%c3_135, %c0_136, %c0_137], %126 {strides = array<i32>} : memref<4x128x4xf32, #tpu.memory_space<vmem>>, vector<1x128x4xf32>,
    %cst_138 = arith.constant dense<0.000000e+00> : vector<4xf32>
    %127 = vector.multi_reduction <add>, %123, %cst_138 [0] : vector<128x4xf32> to vector<4xf32>
    %128 = vector.shape_cast %127 : vector<4xf32> to vector<1x4xf32>
    %129 = arith.addf %96, %128 : vector<1x4xf32>
    %130 = arith.mulf %123, %123 : vector<128x4xf32>
    %cst_139 = arith.constant dense<0.000000e+00> : vector<4xf32>
    %131 = vector.multi_reduction <add>, %130, %cst_139 [0] : vector<128x4xf32> to vector<4xf32>
    %132 = vector.shape_cast %131 : vector<4xf32> to vector<1x4xf32>
    %133 = arith.addf %100, %132 : vector<1x4xf32>
    %134 = tpu.concatenate %129, %133 in 0 : vector<1x4xf32>, vector<1x4xf32> -> vector<2x4xf32>
    %c0_140 = arith.constant 0 : index
    %c0_141 = arith.constant 0 : index
    %c0_142 = arith.constant 0 : index
    %135 = vector.load %arg4[%c0_140, %c0_141, %c0_142] : memref<1x2x4xf32, #tpu.memory_space<vmem>>, vector<1x2x4xf32>
    %136 = vector.shape_cast %135 : vector<1x2x4xf32> to vector<2x4xf32>
    %137 = vector.shape_cast %134 : vector<2x4xf32> to vector<1x2x4xf32>
    tpu.vector_store %arg4[%c0_140, %c0_141, %c0_142], %137 {strides = array<i32>} : memref<1x2x4xf32, #tpu.memory_space<vmem>>, vector<1x2x4xf32>,
    return
  }
  func.func @transform_0(%arg0: i32) -> (i32, i32, i32) {
    %c0_i32 = arith.constant 0 : i32
    %c0_i32_0 = arith.constant 0 : i32
    %c0_i32_1 = arith.constant 0 : i32
    return %c0_i32, %arg0, %c0_i32_0 : i32, i32, i32
  }
  func.func @transform_1(%arg0: i32) -> (i32, i32, i32, i32) {
    %c0_i32 = arith.constant 0 : i32
    %c0_i32_0 = arith.constant 0 : i32
    %c0_i32_1 = arith.constant 0 : i32
    %c0_i32_2 = arith.constant 0 : i32
    %c0_i32_3 = arith.constant 0 : i32
    return %c0_i32, %c0_i32_0, %c0_i32_1, %c0_i32_2 : i32, i32, i32, i32
  }
  func.func @transform_2(%arg0: i32) -> (i32, i32, i32) {
    %c0_i32 = arith.constant 0 : i32
    %c0_i32_0 = arith.constant 0 : i32
    %c0_i32_1 = arith.constant 0 : i32
    return %c0_i32, %arg0, %c0_i32_0 : i32, i32, i32
  }
  func.func @transform_3(%arg0: i32) -> (i32, i32, i32) {
    %c0_i32 = arith.constant 0 : i32
    %c0_i32_0 = arith.constant 0 : i32
    %c0_i32_1 = arith.constant 0 : i32
    return %arg0, %c0_i32, %c0_i32_0 : i32, i32, i32
  }
}

module attributes {stable_mosaic.version = 11 : i64} {
  func.func @_scale_shift_kernel(%arg0: i32, %arg1: memref<4x128x4xf32, #tpu.memory_space<vmem>>, %arg2: memref<1x1x4xf32, #tpu.memory_space<vmem>>, %arg3: memref<1x1x4xf32, #tpu.memory_space<vmem>>, %arg4: memref<4x128x4xf32, #tpu.memory_space<vmem>>) attributes {dimension_semantics = [#tpu.dimension_semantics<parallel>], iteration_bounds = array<i64: 1>, scalar_prefetch = 0 : i64, scratch_operands = 0 : i64, tpu.core_type = #tpu.core_type<tc>, window_params = [{transform_indices = @transform_0, window_bounds = array<i64: 4, 128, 4>}, {pipeline_mode = #tpu.pipeline_mode<synchronous>, transform_indices = @transform_1, window_bounds = array<i64: 1, 1, 4>}, {pipeline_mode = #tpu.pipeline_mode<synchronous>, transform_indices = @transform_2, window_bounds = array<i64: 1, 1, 4>}, {transform_indices = @transform_3, window_bounds = array<i64: 4, 128, 4>}]} {
    %c0 = arith.constant 0 : index
    %c0_0 = arith.constant 0 : index
    %c0_1 = arith.constant 0 : index
    %0 = vector.load %arg1[%c0, %c0_0, %c0_1] : memref<4x128x4xf32, #tpu.memory_space<vmem>>, vector<4x128x4xf32>
    %c0_2 = arith.constant 0 : index
    %c0_3 = arith.constant 0 : index
    %c0_4 = arith.constant 0 : index
    %1 = vector.load %arg2[%c0_2, %c0_3, %c0_4] : memref<1x1x4xf32, #tpu.memory_space<vmem>>, vector<1x1x4xf32>
    %2 = vector.broadcast %1 : vector<1x1x4xf32> to vector<4x128x4xf32>
    %3 = arith.mulf %0, %2 : vector<4x128x4xf32>
    %c0_5 = arith.constant 0 : index
    %c0_6 = arith.constant 0 : index
    %c0_7 = arith.constant 0 : index
    %4 = vector.load %arg3[%c0_5, %c0_6, %c0_7] : memref<1x1x4xf32, #tpu.memory_space<vmem>>, vector<1x1x4xf32>
    %5 = vector.broadcast %4 : vector<1x1x4xf32> to vector<4x128x4xf32>
    %6 = arith.addf %3, %5 : vector<4x128x4xf32>
    %c0_8 = arith.constant 0 : index
    %c0_9 = arith.constant 0 : index
    %c0_10 = arith.constant 0 : index
    %7 = vector.load %arg4[%c0_8, %c0_9, %c0_10] : memref<4x128x4xf32, #tpu.memory_space<vmem>>, vector<4x128x4xf32>
    tpu.vector_store %arg4[%c0_8, %c0_9, %c0_10], %6 {strides = array<i32>} : memref<4x128x4xf32, #tpu.memory_space<vmem>>, vector<4x128x4xf32>,
    return
  }
  func.func @transform_0(%arg0: i32) -> (i32, i32, i32) {
    %c0_i32 = arith.constant 0 : i32
    %c0_i32_0 = arith.constant 0 : i32
    %c0_i32_1 = arith.constant 0 : i32
    return %c0_i32, %arg0, %c0_i32_0 : i32, i32, i32
  }
  func.func @transform_1(%arg0: i32) -> (i32, i32, i32) {
    %c0_i32 = arith.constant 0 : i32
    %c0_i32_0 = arith.constant 0 : i32
    %c0_i32_1 = arith.constant 0 : i32
    %c0_i32_2 = arith.constant 0 : i32
    return %c0_i32, %c0_i32_0, %c0_i32_1 : i32, i32, i32
  }
  func.func @transform_2(%arg0: i32) -> (i32, i32, i32) {
    %c0_i32 = arith.constant 0 : i32
    %c0_i32_0 = arith.constant 0 : i32
    %c0_i32_1 = arith.constant 0 : i32
    %c0_i32_2 = arith.constant 0 : i32
    return %c0_i32, %c0_i32_0, %c0_i32_1 : i32, i32, i32
  }
  func.func @transform_3(%arg0: i32) -> (i32, i32, i32) {
    %c0_i32 = arith.constant 0 : i32
    %c0_i32_0 = arith.constant 0 : i32
    %c0_i32_1 = arith.constant 0 : i32
    return %c0_i32, %arg0, %c0_i32_0 : i32, i32, i32
  }
}

</mosaic_0001>

<bundles_post_ra>
// kernel: unet_innermost_forward.3
= control target key start
LH: loop header
LB: loop body
LE: loop exit
PB: predicated region body
PF: predicated region fallthrough
CT: control target
= control target key end

     0   :  { %vm100_vm0 = vcmask 523264   ;;  %vm302_vm1 = vcmask 60416   ;;  %s554_s1 = inlined_call_operand.vmem [shape: bf16[64,8], index: 1, kind: input, shape index: {}]   ;;  %s555_s0 = inlined_call_operand.vmem [shape: bf16[128,64], index: 0, kind: input, shape index: {}]   ;;  %s556_s2 = inlined_call_operand.vmem [shape: bf16[128,8], index: 2, kind: output, shape index: {}]  }
   0x1   :  { %v419_v0 = vld [vmem:[%s554_s1 + $0x18] sm:$0xff]   ;;  %v420_v1 = vld [vmem:[%s554_s1 + $0x10] sm:$0xff]   ;;  %v421_v2 = vld [vmem:[%s554_s1 + $0x8] sm:$0xff]  }
   0x2   :  { %387 = vmatprep.subr.bf16.mxu0 %v419_v0  ;;  %411 = vmatprep.subr.bf16.mxu1 %v419_v0  ;;  %v423_v3 = vld [vmem:[%s555_s0] sm:$0xff]   ;;  %v425_v6 = vld [vmem:[%s555_s0 + $0x8] sm:$0xff]   ;;  %v427_v8 = vld [vmem:[%s555_s0 + $0x10] sm:$0xff]  }
   0x3   :  { %388 = vmatpush3.bf16.msra.mxu0 %v419_v0  ;;  %415 = vmatpush3.bf16.msra.mxu1 %v419_v0  ;;  %v424_v4 = vld [vmem:[%s555_s0 + $0x20] sm:$0xff]   ;;  %v426_v7 = vld [vmem:[%s555_s0 + $0x28] sm:$0xff]   ;;  %v428_v9 = vld [vmem:[%s555_s0 + $0x30] sm:$0xff]  }
   0x4   :  { %389 = vmatprep.subr.bf16.mxu0 %v420_v1  ;;  %412 = vmatprep.subr.bf16.mxu1 %v420_v1  ;;  %v422_v5 = vld [vmem:[%s554_s1] sm:$0xff]   ;;  %v429_v10 = vld [vmem:[%s555_s0 + $0x18] sm:$0xff]  }
   0x5   :  { %395 = vmatprep.mubr.msk.bf16.mxu0 %vm100_vm0, %v423_v3  ;;  %403 = vmatprep.mubr.msk.bf16.mxu1 %vm100_vm0, %v424_v4  ;;  %v430_v11 = vld [vmem:[%s555_s0 + $0x38] sm:$0xff]  }
   0x7   :  { %390 = vmatpush3.bf16.msra.mxu0 %v420_v1  ;;  %416 = vmatpush3.bf16.msra.mxu1 %v420_v1 }
   0x8   :  { %391 = vmatprep.subr.bf16.mxu0 %v421_v2  ;;  %413 = vmatprep.subr.bf16.mxu1 %v421_v2 }
   0xb   :  { %392 = vmatpush3.bf16.msra.mxu0 %v421_v2  ;;  %417 = vmatpush3.bf16.msra.mxu1 %v421_v2 }
   0xc   :  { %393 = vmatprep.subr.bf16.mxu0 %v422_v5  ;;  %414 = vmatprep.subr.bf16.mxu1 %v422_v5 }
   0xf   :  { %394 = vmatpush3.bf16.msra.mxu0 %v422_v5  ;;  %418 = vmatpush3.bf16.msra.mxu1 %v422_v5 }
  0x12   :  { %396 = vmatmul.mubr.msk.bf16.vlgmr.msra.gmra.mxu0 %vm100_vm0, %v425_v6  ;;  %404 = vmatmul.mubr.msk.bf16.vlgmr.msra.gmra.mxu1 %vm100_vm0, %v426_v7 }
  0x13   :  { %399 = vmatprep.mubr.msk.bf16.mxu0 %vm100_vm0, %v427_v8  ;;  %407 = vmatprep.mubr.msk.bf16.mxu1 %vm100_vm0, %v428_v9 }
  0x1a   :  { %400 = vmatmul.mubr.msk.bf16.gmra.mxu0 %vm100_vm0, %v429_v10  ;;  %408 = vmatmul.mubr.msk.bf16.gmra.mxu1 %vm100_vm0, %v430_v11 }
  0xd2   :  { %v397_v12 = vpop.f32.mrf.mxu0  ;;  %v405_v13 = vpop.f32.mrf.mxu1 }
  0xd3   :  { %v224_v14 = vmax.f32 %v397_v12, 0.0  ;;  %v232_v15 = vmax.f32 %v405_v13, 0.0 }
  0xd4   :  { %v159_v16 = vpop.f32.mrf.mxu0  ;;  %v191_v17 = vpop.f32.mrf.mxu1 }
  0xd5   :  { %v361_v18 = vpack.c.bf16 %v224_v14, %v224_v14  ;;  %v369_v19 = vpack.c.bf16 %v232_v15, %v232_v15  ;;  %v222_v20 = vmax.f32 %v159_v16, 0.0  ;;  %v230_v21 = vmax.f32 %v191_v17, 0.0 }
  0xd6   :  { %v398_v22 = vpop.f32.mrf.mxu0  ;;  %v406_v23 = vpop.f32.mrf.mxu1 }
  0xd7   :  { %305 = vst.msk [vmem:[%s556_s2 + $0x8] sm:$0xf] %vm302_vm1, %v361_v18  ;;  %313 = vst.msk [vmem:[%s556_s2 + $0x28] sm:$0xf] %vm302_vm1, %v369_v19  ;;  %v359_v24 = vpack.c.bf16 %v222_v20, %v222_v20  ;;  %v367_v25 = vpack.c.bf16 %v230_v21, %v230_v21  ;;  %v225_v26 = vmax.f32 %v398_v22, 0.0  ;;  %v233_v27 = vmax.f32 %v406_v23, 0.0 }
  0xd8   :  { %v162_v28 = vpop.f32.mrf.mxu0  ;;  %v194_v29 = vpop.f32.mrf.mxu1 }
  0xd9   :  { %303 = vst.msk [vmem:[%s556_s2] sm:$0xf] %vm302_vm1, %v359_v24  ;;  %311 = vst.msk [vmem:[%s556_s2 + $0x20] sm:$0xf] %vm302_vm1, %v367_v25  ;;  %v362_v30 = vpack.c.bf16 %v225_v26, %v225_v26  ;;  %v370_v31 = vpack.c.bf16 %v233_v27, %v233_v27  ;;  %v223_v32 = vmax.f32 %v162_v28, 0.0  ;;  %v231_v33 = vmax.f32 %v194_v29, 0.0 }
  0xda   :  { %v401_v34 = vpop.f32.mrf.mxu0  ;;  %v409_v35 = vpop.f32.mrf.mxu1 }
  0xdb   :  { %306 = vst.msk [vmem:[%s556_s2 + $0xc] sm:$0xf] %vm302_vm1, %v362_v30  ;;  %314 = vst.msk [vmem:[%s556_s2 + $0x2c] sm:$0xf] %vm302_vm1, %v370_v31  ;;  %v360_v36 = vpack.c.bf16 %v223_v32, %v223_v32  ;;  %v368_v37 = vpack.c.bf16 %v231_v33, %v231_v33  ;;  %v228_v38 = vmax.f32 %v401_v34, 0.0  ;;  %v236_v39 = vmax.f32 %v409_v35, 0.0 }
  0xdc   :  { %v175_v40 = vpop.f32.mrf.mxu0  ;;  %v207_v41 = vpop.f32.mrf.mxu1 }
  0xdd   :  { %304 = vst.msk [vmem:[%s556_s2 + $0x4] sm:$0xf] %vm302_vm1, %v360_v36  ;;  %312 = vst.msk [vmem:[%s556_s2 + $0x24] sm:$0xf] %vm302_vm1, %v368_v37  ;;  %v365_v42 = vpack.c.bf16 %v228_v38, %v228_v38  ;;  %v373_v43 = vpack.c.bf16 %v236_v39, %v236_v39  ;;  %v226_v44 = vmax.f32 %v175_v40, 0.0  ;;  %v234_v45 = vmax.f32 %v207_v41, 0.0 }
  0xde   :  { %v402_v46 = vpop.f32.mrf.mxu0  ;;  %v410_v47 = vpop.f32.mrf.mxu1 }
  0xdf   :  { %309 = vst.msk [vmem:[%s556_s2 + $0x18] sm:$0xf] %vm302_vm1, %v365_v42  ;;  %317 = vst.msk [vmem:[%s556_s2 + $0x38] sm:$0xf] %vm302_vm1, %v373_v43  ;;  %v363_v48 = vpack.c.bf16 %v226_v44, %v226_v44  ;;  %v371_v49 = vpack.c.bf16 %v234_v45, %v234_v45  ;;  %v229_v50 = vmax.f32 %v402_v46, 0.0  ;;  %v237_v51 = vmax.f32 %v410_v47, 0.0 }
  0xe0   :  { %v178_v52 = vpop.f32.mrf.mxu0  ;;  %v210_v53 = vpop.f32.mrf.mxu1 }
  0xe1   :  { %307 = vst.msk [vmem:[%s556_s2 + $0x10] sm:$0xf] %vm302_vm1, %v363_v48  ;;  %315 = vst.msk [vmem:[%s556_s2 + $0x30] sm:$0xf] %vm302_vm1, %v371_v49  ;;  %v366_v54 = vpack.c.bf16 %v229_v50, %v229_v50  ;;  %v374_v55 = vpack.c.bf16 %v237_v51, %v237_v51  ;;  %v227_v56 = vmax.f32 %v178_v52, 0.0  ;;  %v235_v57 = vmax.f32 %v210_v53, 0.0 }
  0xe3   :  { %310 = vst.msk [vmem:[%s556_s2 + $0x1c] sm:$0xf] %vm302_vm1, %v366_v54  ;;  %318 = vst.msk [vmem:[%s556_s2 + $0x3c] sm:$0xf] %vm302_vm1, %v374_v55  ;;  %v364_v58 = vpack.c.bf16 %v227_v56, %v227_v56  ;;  %v372_v59 = vpack.c.bf16 %v235_v57, %v235_v57 }
  0xe5   :  { %308 = vst.msk [vmem:[%s556_s2 + $0x14] sm:$0xf] %vm302_vm1, %v364_v58  ;;  %316 = vst.msk [vmem:[%s556_s2 + $0x34] sm:$0xf] %vm302_vm1, %v372_v59 }

// kernel: unet_innermost_forward.5
= control target key start
LH: loop header
LB: loop body
LE: loop exit
PB: predicated region body
PF: predicated region fallthrough
CT: control target
= control target key end

     0   :  { %vm220_vm0 = vcmask 31744   ;;  %s897_s0 = inlined_call_operand.vmem [shape: f32[4,128,4], index: 0, kind: input, shape index: {}]   ;;  %s898_s1 = inlined_call_operand.vmem [shape: f32[1,1,4], index: 1, kind: input, shape index: {}]   ;;  %s899_s2 = inlined_call_operand.vmem [shape: f32[1,1,4], index: 2, kind: input, shape index: {}]   ;;  %s900_s3 = inlined_call_operand.vmem [shape: f32[4,128,4], index: 3, kind: output, shape index: {}]  }
   0x1   :  { %v14_v0 = vld [vmem:[%s897_s0] sm:$0xff]  ;;  %v15_v4 = vld [vmem:[%s897_s0 + $0x8] sm:$0xff]  ;;  %v16_v5 = vld [vmem:[%s897_s0 + $0x10] sm:$0xff] }
   0x2   :  { %v317_v1 = vld [vmem:[%s898_s1] ss:$0 sm:$0xff]  ;;  %v17_v6 = vld [vmem:[%s897_s0 + $0x18] sm:$0xff]  ;;  %v19_v11 = vld [vmem:[%s897_s0 + $0x28] sm:$0xff] }
   0x3   :  { %v322_v2 = vld [vmem:[%s899_s2] ss:$0 sm:$0xff]  ;;  %v85_v3 = vmul.f32 %v317_v1, %v14_v0  ;;  %v86_v7 = vmul.f32 %v317_v1, %v15_v4  ;;  %v87_v8 = vmul.f32 %v317_v1, %v16_v5  ;;  %v88_v9 = vmul.f32 %v317_v1, %v17_v6  ;;  %v20_v12 = vld [vmem:[%s897_s0 + $0x30] sm:$0xff]  ;;  %v21_v17 = vld [vmem:[%s897_s0 + $0x38] sm:$0xff] }
   0x4   :  { %v18_v10 = vld [vmem:[%s897_s0 + $0x20] sm:$0xff]  ;;  %v90_v15 = vmul.f32 %v317_v1, %v19_v11  ;;  %v91_v16 = vmul.f32 %v317_v1, %v20_v12  ;;  %v23_v19 = vld [vmem:[%s897_s0 + $0x48] sm:$0xff]  ;;  %v92_v23 = vmul.f32 %v317_v1, %v21_v17  ;;  %v24_v24 = vld [vmem:[%s897_s0 + $0x50] sm:$0xff] }
   0x5   :  { %v156_v13 = vadd.f32 %v322_v2, %v85_v3  ;;  %v89_v14 = vmul.f32 %v317_v1, %v18_v10  ;;  %v22_v18 = vld [vmem:[%s897_s0 + $0x40] sm:$0xff]  ;;  %v157_v20 = vadd.f32 %v322_v2, %v86_v7  ;;  %v158_v21 = vadd.f32 %v322_v2, %v87_v8  ;;  %v25_v25 = vld [vmem:[%s897_s0 + $0x58] sm:$0xff]  ;;  %v27_v31 = vld [vmem:[%s897_s0 + $0x68] sm:$0xff] }
   0x6   :  { %v159_v22 = vadd.f32 %v322_v2, %v88_v9  ;;  %v26_v26 = vld [vmem:[%s897_s0 + $0x60] sm:$0xff]  ;;  %v161_v28 = vadd.f32 %v322_v2, %v90_v15  ;;  %v162_v29 = vadd.f32 %v322_v2, %v91_v16  ;;  %v93_v30 = vmul.f32 %v317_v1, %v22_v18  ;;  %v28_v32 = vld [vmem:[%s897_s0 + $0x70] sm:$0xff]  ;;  %v29_v33 = vld [vmem:[%s897_s0 + $0x78] sm:$0xff] }
   0x7   :  { %221 = vst.msk [vmem:[%s900_s3] sm:$0xff] %vm220_vm0, %v156_v13  ;;  %v160_v27 = vadd.f32 %v322_v2, %v89_v14  ;;  %222 = vst.msk [vmem:[%s900_s3 + $0x8] sm:$0xff] %vm220_vm0, %v157_v20  ;;  %v163_v34 = vadd.f32 %v322_v2, %v92_v23  ;;  %v94_v35 = vmul.f32 %v317_v1, %v23_v19  ;;  %v30_v38 = vld [vmem:[%s897_s0 + $0x80] sm:$0xff]  ;;  %v31_v43 = vld [vmem:[%s897_s0 + $0x88] sm:$0xff] }
   0x8   :  { %223 = vst.msk [vmem:[%s900_s3 + $0x10] sm:$0xff] %vm220_vm0, %v158_v21  ;;  %224 = vst.msk [vmem:[%s900_s3 + $0x18] sm:$0xff] %vm220_vm0, %v159_v22  ;;  %v95_v36 = vmul.f32 %v317_v1, %v24_v24  ;;  %v96_v37 = vmul.f32 %v317_v1, %v25_v25  ;;  %v164_v39 = vadd.f32 %v322_v2, %v93_v30  ;;  %v32_v44 = vld [vmem:[%s897_s0 + $0x90] sm:$0xff]  ;;  %v33_v45 = vld [vmem:[%s897_s0 + $0x98] sm:$0xff] }
   0x9   :  { %225 = vst.msk [vmem:[%s900_s3 + $0x20] sm:$0xff] %vm220_vm0, %v160_v27  ;;  %226 = vst.msk [vmem:[%s900_s3 + $0x28] sm:$0xff] %vm220_vm0, %v161_v28  ;;  %v97_v40 = vmul.f32 %v317_v1, %v26_v26  ;;  %v98_v41 = vmul.f32 %v317_v1, %v27_v31  ;;  %v99_v42 = vmul.f32 %v317_v1, %v28_v32  ;;  %v34_v50 = vld [vmem:[%s897_s0 + $0xa0] sm:$0xff]  ;;  %v35_v51 = vld [vmem:[%s897_s0 + $0xa8] sm:$0xff] }
   0xa   :  { %227 = vst.msk [vmem:[%s900_s3 + $0x30] sm:$0xff] %vm220_vm0, %v162_v29  ;;  %228 = vst.msk [vmem:[%s900_s3 + $0x38] sm:$0xff] %vm220_vm0, %v163_v34  ;;  %v165_v46 = vadd.f32 %v322_v2, %v94_v35  ;;  %v166_v47 = vadd.f32 %v322_v2, %v95_v36  ;;  %v167_v48 = vadd.f32 %v322_v2, %v96_v37  ;;  %v36_v52 = vld [vmem:[%s897_s0 + $0xb0] sm:$0xff]  ;;  %v37_v57 = vld [vmem:[%s897_s0 + $0xb8] sm:$0xff] }
   0xb   :  { %v100_v49 = vmul.f32 %v317_v1, %v29_v33  ;;  %229 = vst.msk [vmem:[%s900_s3 + $0x40] sm:$0xff] %vm220_vm0, %v164_v39  ;;  %v168_v53 = vadd.f32 %v322_v2, %v97_v40  ;;  %v169_v54 = vadd.f32 %v322_v2, %v98_v41  ;;  %v170_v55 = vadd.f32 %v322_v2, %v99_v42  ;;  %v38_v62 = vld [vmem:[%s897_s0 + $0xc0] sm:$0xff]  ;;  %v39_v5 = vld [vmem:[%s897_s0 + $0xc8] sm:$0xff]  ;;  %v40_v6 = vld [vmem:[%s897_s0 + $0xd0] sm:$0xff] }
   0xc   :  { %v101_v56 = vmul.f32 %v317_v1, %v30_v38  ;;  %230 = vst.msk [vmem:[%s900_s3 + $0x48] sm:$0xff] %vm220_vm0, %v165_v46  ;;  %231 = vst.msk [vmem:[%s900_s3 + $0x50] sm:$0xff] %vm220_vm0, %v166_v47  ;;  %v102_v59 = vmul.f32 %v317_v1, %v31_v43  ;;  %v103_v60 = vmul.f32 %v317_v1, %v32_v44  ;;  %v41_v7 = vld [vmem:[%s897_s0 + $0xd8] sm:$0xff]  ;;  %v42_v12 = vld [vmem:[%s897_s0 + $0xe0] sm:$0xff] }
   0xd   :  { %232 = vst.msk [vmem:[%s900_s3 + $0x58] sm:$0xff] %vm220_vm0, %v167_v48  ;;  %v171_v58 = vadd.f32 %v322_v2, %v100_v49  ;;  %v104_v61 = vmul.f32 %v317_v1, %v33_v45  ;;  %233 = vst.msk [vmem:[%s900_s3 + $0x60] sm:$0xff] %vm220_vm0, %v168_v53  ;;  %v105_v0 = vmul.f32 %v317_v1, %v34_v50  ;;  %v43_v13 = vld [vmem:[%s897_s0 + $0xe8] sm:$0xff]  ;;  %v44_v14 = vld [vmem:[%s897_s0 + $0xf0] sm:$0xff] }
   0xe   :  { %234 = vst.msk [vmem:[%s900_s3 + $0x68] sm:$0xff] %vm220_vm0, %v169_v54  ;;  %235 = vst.msk [vmem:[%s900_s3 + $0x70] sm:$0xff] %vm220_vm0, %v170_v55  ;;  %v172_v63 = vadd.f32 %v322_v2, %v101_v56  ;;  %v106_v3 = vmul.f32 %v317_v1, %v35_v51  ;;  %v107_v4 = vmul.f32 %v317_v1, %v36_v52  ;;  %v45_v19 = vld [vmem:[%s897_s0 + $0xf8] sm:$0xff]  ;;  %v46_v24 = vld [vmem:[%s897_s0 + $0x100] sm:$0xff] }
   0xf   :  { %236 = vst.msk [vmem:[%s900_s3 + $0x78] sm:$0xff] %vm220_vm0, %v171_v58  ;;  %v173_v8 = vadd.f32 %v322_v2, %v102_v59  ;;  %v174_v9 = vadd.f32 %v322_v2, %v103_v60  ;;  %v175_v10 = vadd.f32 %v322_v2, %v104_v61  ;;  %v108_v11 = vmul.f32 %v317_v1, %v37_v57  ;;  %v47_v29 = vld [vmem:[%s897_s0 + $0x108] sm:$0xff]  ;;  %v48_v30 = vld [vmem:[%s897_s0 + $0x110] sm:$0xff]  ;;  %v49_v31 = vld [vmem:[%s897_s0 + $0x118] sm:$0xff] }
  0x10   :  { %237 = vst.msk [vmem:[%s900_s3 + $0x80] sm:$0xff] %vm220_vm0, %v172_v63  ;;  %v176_v15 = vadd.f32 %v322_v2, %v105_v0  ;;  %v177_v16 = vadd.f32 %v322_v2, %v106_v3  ;;  %v178_v17 = vadd.f32 %v322_v2, %v107_v4  ;;  %v109_v18 = vmul.f32 %v317_v1, %v38_v62  ;;  %v50_v36 = vld [vmem:[%s897_s0 + $0x120] sm:$0xff]  ;;  %v51_v37 = vld [vmem:[%s897_s0 + $0x128] sm:$0xff]  ;;  %v52_v38 = vld [vmem:[%s897_s0 + $0x130] sm:$0xff] }
  0x11   :  { %238 = vst.msk [vmem:[%s900_s3 + $0x88] sm:$0xff] %vm220_vm0, %v173_v8  ;;  %239 = vst.msk [vmem:[%s900_s3 + $0x90] sm:$0xff] %vm220_vm0, %v174_v9  ;;  %v179_v20 = vadd.f32 %v322_v2, %v108_v11  ;;  %v110_v21 = vmul.f32 %v317_v1, %v39_v5  ;;  %v111_v22 = vmul.f32 %v317_v1, %v40_v6  ;;  %v53_v43 = vld [vmem:[%s897_s0 + $0x138] sm:$0xff]  ;;  %v54_v48 = vld [vmem:[%s897_s0 + $0x140] sm:$0xff] }
  0x12   :  { %240 = vst.msk [vmem:[%s900_s3 + $0x98] sm:$0xff] %vm220_vm0, %v175_v10  ;;  %v112_v23 = vmul.f32 %v317_v1, %v41_v7  ;;  %241 = vst.msk [vmem:[%s900_s3 + $0xa0] sm:$0xff] %vm220_vm0, %v176_v15  ;;  %v180_v25 = vadd.f32 %v322_v2, %v109_v18  ;;  %v113_v26 = vmul.f32 %v317_v1, %v42_v12  ;;  %v55_v53 = vld [vmem:[%s897_s0 + $0x148] sm:$0xff]  ;;  %v56_v54 = vld [vmem:[%s897_s0 + $0x150] sm:$0xff] }
  0x13   :  { %242 = vst.msk [vmem:[%s900_s3 + $0xa8] sm:$0xff] %vm220_vm0, %v177_v16  ;;  %243 = vst.msk [vmem:[%s900_s3 + $0xb0] sm:$0xff] %vm220_vm0, %v178_v17  ;;  %v114_v27 = vmul.f32 %v317_v1, %v43_v13  ;;  %v115_v28 = vmul.f32 %v317_v1, %v44_v14  ;;  %v181_v32 = vadd.f32 %v322_v2, %v110_v21  ;;  %v57_v55 = vld [vmem:[%s897_s0 + $0x158] sm:$0xff]  ;;  %v58_v60 = vld [vmem:[%s897_s0 + $0x160] sm:$0xff] }
  0x14   :  { %244 = vst.msk [vmem:[%s900_s3 + $0xb8] sm:$0xff] %vm220_vm0, %v179_v20  ;;  %v182_v33 = vadd.f32 %v322_v2, %v111_v22  ;;  %v183_v34 = vadd.f32 %v322_v2, %v112_v23  ;;  %v116_v35 = vmul.f32 %v317_v1, %v45_v19  ;;  %245 = vst.msk [vmem:[%s900_s3 + $0xc0] sm:$0xff] %vm220_vm0, %v180_v25  ;;  %v59_v61 = vld [vmem:[%s897_s0 + $0x168] sm:$0xff]  ;;  %v60_v62 = vld [vmem:[%s897_s0 + $0x170] sm:$0xff] }
  0x15   :  { %v184_v39 = vadd.f32 %v322_v2, %v113_v26  ;;  %v185_v40 = vadd.f32 %v322_v2, %v114_v27  ;;  %v186_v41 = vadd.f32 %v322_v2, %v115_v28  ;;  %v117_v42 = vmul.f32 %v317_v1, %v46_v24  ;;  %246 = vst.msk [vmem:[%s900_s3 + $0xc8] sm:$0xff] %vm220_vm0, %v181_v32  ;;  %v61_v5 = vld [vmem:[%s897_s0 + $0x178] sm:$0xff]  ;;  %v62_v10 = vld [vmem:[%s897_s0 + $0x180] sm:$0xff]  ;;  %v63_v15 = vld [vmem:[%s897_s0 + $0x188] sm:$0xff] }
  0x16   :  { %247 = vst.msk [vmem:[%s900_s3 + $0xd0] sm:$0xff] %vm220_vm0, %v182_v33  ;;  %248 = vst.msk [vmem:[%s900_s3 + $0xd8] sm:$0xff] %vm220_vm0, %v183_v34  ;;  %v187_v44 = vadd.f32 %v322_v2, %v116_v35  ;;  %v118_v45 = vmul.f32 %v317_v1, %v47_v29  ;;  %v119_v46 = vmul.f32 %v317_v1, %v48_v30  ;;  %v64_v16 = vld [vmem:[%s897_s0 + $0x190] sm:$0xff]  ;;  %v65_v17 = vld [vmem:[%s897_s0 + $0x198] sm:$0xff] }
  0x17   :  { %v120_v47 = vmul.f32 %v317_v1, %v49_v31  ;;  %249 = vst.msk [vmem:[%s900_s3 + $0xe0] sm:$0xff] %vm220_vm0, %v184_v39  ;;  %250 = vst.msk [vmem:[%s900_s3 + $0xe8] sm:$0xff] %vm220_vm0, %v185_v40  ;;  %v188_v49 = vadd.f32 %v322_v2, %v117_v42  ;;  %v121_v50 = vmul.f32 %v317_v1, %v50_v36  ;;  %v66_v22 = vld [vmem:[%s897_s0 + $0x1a0] sm:$0xff]  ;;  %v67_v23 = vld [vmem:[%s897_s0 + $0x1a8] sm:$0xff] }
  0x18   :  { %251 = vst.msk [vmem:[%s900_s3 + $0xf0] sm:$0xff] %vm220_vm0, %v186_v41  ;;  %v122_v51 = vmul.f32 %v317_v1, %v51_v37  ;;  %v123_v52 = vmul.f32 %v317_v1, %v52_v38  ;;  %252 = vst.msk [vmem:[%s900_s3 + $0xf8] sm:$0xff] %vm220_vm0, %v187_v44  ;;  %v189_v56 = vadd.f32 %v322_v2, %v118_v45  ;;  %v68_v24 = vld [vmem:[%s897_s0 + $0x1b0] sm:$0xff]  ;;  %v69_v29 = vld [vmem:[%s897_s0 + $0x1b8] sm:$0xff] }
  0x19   :  { %v190_v57 = vadd.f32 %v322_v2, %v119_v46  ;;  %v191_v58 = vadd.f32 %v322_v2, %v120_v47  ;;  %v124_v59 = vmul.f32 %v317_v1, %v53_v43  ;;  %253 = vst.msk [vmem:[%s900_s3 + $0x100] sm:$0xff] %vm220_vm0, %v188_v49  ;;  %v192_v63 = vadd.f32 %v322_v2, %v121_v50  ;;  %v70_v34 = vld [vmem:[%s897_s0 + $0x1c0] sm:$0xff]  ;;  %v71_v39 = vld [vmem:[%s897_s0 + $0x1c8] sm:$0xff]  ;;  %v72_v40 = vld [vmem:[%s897_s0 + $0x1d0] sm:$0xff] }
  0x1a   :  { %v193_v0 = vadd.f32 %v322_v2, %v122_v51  ;;  %v194_v3 = vadd.f32 %v322_v2, %v123_v52  ;;  %v125_v4 = vmul.f32 %v317_v1, %v54_v48  ;;  %254 = vst.msk [vmem:[%s900_s3 + $0x108] sm:$0xff] %vm220_vm0, %v189_v56  ;;  %v126_v7 = vmul.f32 %v317_v1, %v55_v53  ;;  %v73_v41 = vld [vmem:[%s897_s0 + $0x1d8] sm:$0xff]  ;;  %v74_v46 = vld [vmem:[%s897_s0 + $0x1e0] sm:$0xff]  ;;  %v75_v47 = vld [vmem:[%s897_s0 + $0x1e8] sm:$0xff] }
  0x1b   :  { %255 = vst.msk [vmem:[%s900_s3 + $0x110] sm:$0xff] %vm220_vm0, %v190_v57  ;;  %256 = vst.msk [vmem:[%s900_s3 + $0x118] sm:$0xff] %vm220_vm0, %v191_v58  ;;  %v195_v6 = vadd.f32 %v322_v2, %v124_v59  ;;  %v127_v8 = vmul.f32 %v317_v1, %v56_v54  ;;  %v128_v9 = vmul.f32 %v317_v1, %v57_v55  ;;  %v76_v48 = vld [vmem:[%s897_s0 + $0x1f0] sm:$0xff]  ;;  %v77_v53 = vld [vmem:[%s897_s0 + $0x1f8] sm:$0xff] }
  0x1c   :  { %257 = vst.msk [vmem:[%s900_s3 + $0x120] sm:$0xff] %vm220_vm0, %v192_v63  ;;  %258 = vst.msk [vmem:[%s900_s3 + $0x128] sm:$0xff] %vm220_vm0, %v193_v0  ;;  %v196_v11 = vadd.f32 %v322_v2, %v125_v4  ;;  %v129_v12 = vmul.f32 %v317_v1, %v58_v60  ;;  %v130_v13 = vmul.f32 %v317_v1, %v59_v61 }
  0x1d   :  { %259 = vst.msk [vmem:[%s900_s3 + $0x130] sm:$0xff] %vm220_vm0, %v194_v3  ;;  %v131_v14 = vmul.f32 %v317_v1, %v60_v62  ;;  %260 = vst.msk [vmem:[%s900_s3 + $0x138] sm:$0xff] %vm220_vm0, %v195_v6  ;;  %v197_v18 = vadd.f32 %v322_v2, %v126_v7  ;;  %v198_v19 = vadd.f32 %v322_v2, %v127_v8 }
  0x1e   :  { %v199_v20 = vadd.f32 %v322_v2, %v128_v9  ;;  %v132_v21 = vmul.f32 %v317_v1, %v61_v5  ;;  %261 = vst.msk [vmem:[%s900_s3 + $0x140] sm:$0xff] %vm220_vm0, %v196_v11  ;;  %v200_v25 = vadd.f32 %v322_v2, %v129_v12  ;;  %v201_v26 = vadd.f32 %v322_v2, %v130_v13 }
  0x1f   :  { %v202_v27 = vadd.f32 %v322_v2, %v131_v14  ;;  %v133_v28 = vmul.f32 %v317_v1, %v62_v10  ;;  %262 = vst.msk [vmem:[%s900_s3 + $0x148] sm:$0xff] %vm220_vm0, %v197_v18  ;;  %263 = vst.msk [vmem:[%s900_s3 + $0x150] sm:$0xff] %vm220_vm0, %v198_v19  ;;  %v134_v31 = vmul.f32 %v317_v1, %v63_v15 }
  0x20   :  { %264 = vst.msk [vmem:[%s900_s3 + $0x158] sm:$0xff] %vm220_vm0, %v199_v20  ;;  %v203_v30 = vadd.f32 %v322_v2, %v132_v21  ;;  %v135_v32 = vmul.f32 %v317_v1, %v64_v16  ;;  %v136_v33 = vmul.f32 %v317_v1, %v65_v17  ;;  %265 = vst.msk [vmem:[%s900_s3 + $0x160] sm:$0xff] %vm220_vm0, %v200_v25 }
  0x21   :  { %266 = vst.msk [vmem:[%s900_s3 + $0x168] sm:$0xff] %vm220_vm0, %v201_v26  ;;  %267 = vst.msk [vmem:[%s900_s3 + $0x170] sm:$0xff] %vm220_vm0, %v202_v27  ;;  %v204_v35 = vadd.f32 %v322_v2, %v133_v28  ;;  %v137_v36 = vmul.f32 %v317_v1, %v66_v22  ;;  %v138_v37 = vmul.f32 %v317_v1, %v67_v23 }
  0x22   :  { %v139_v38 = vmul.f32 %v317_v1, %v68_v24  ;;  %268 = vst.msk [vmem:[%s900_s3 + $0x178] sm:$0xff] %vm220_vm0, %v203_v30  ;;  %v205_v42 = vadd.f32 %v322_v2, %v134_v31  ;;  %v206_v43 = vadd.f32 %v322_v2, %v135_v32  ;;  %v207_v44 = vadd.f32 %v322_v2, %v136_v33 }
  0x23   :  { %v140_v45 = vmul.f32 %v317_v1, %v69_v29  ;;  %269 = vst.msk [vmem:[%s900_s3 + $0x180] sm:$0xff] %vm220_vm0, %v204_v35  ;;  %v208_v49 = vadd.f32 %v322_v2, %v137_v36  ;;  %v209_v50 = vadd.f32 %v322_v2, %v138_v37  ;;  %v141_v52 = vmul.f32 %v317_v1, %v70_v34 }
  0x24   :  { %v210_v51 = vadd.f32 %v322_v2, %v139_v38  ;;  %270 = vst.msk [vmem:[%s900_s3 + $0x188] sm:$0xff] %vm220_vm0, %v205_v42  ;;  %271 = vst.msk [vmem:[%s900_s3 + $0x190] sm:$0xff] %vm220_vm0, %v206_v43  ;;  %v142_v55 = vmul.f32 %v317_v1, %v71_v39  ;;  %v143_v56 = vmul.f32 %v317_v1, %v72_v40 }
  0x25   :  { %272 = vst.msk [vmem:[%s900_s3 + $0x198] sm:$0xff] %vm220_vm0, %v207_v44  ;;  %v211_v54 = vadd.f32 %v322_v2, %v140_v45  ;;  %v144_v57 = vmul.f32 %v317_v1, %v73_v41  ;;  %273 = vst.msk [vmem:[%s900_s3 + $0x1a0] sm:$0xff] %vm220_vm0, %v208_v49  ;;  %v212_v58 = vadd.f32 %v322_v2, %v141_v52 }
  0x26   :  { %274 = vst.msk [vmem:[%s900_s3 + $0x1a8] sm:$0xff] %vm220_vm0, %v209_v50  ;;  %275 = vst.msk [vmem:[%s900_s3 + $0x1b0] sm:$0xff] %vm220_vm0, %v210_v51  ;;  %v145_v59 = vmul.f32 %v317_v1, %v74_v46  ;;  %v146_v60 = vmul.f32 %v317_v1, %v75_v47  ;;  %v147_v61 = vmul.f32 %v317_v1, %v76_v48 }
  0x27   :  { %276 = vst.msk [vmem:[%s900_s3 + $0x1b8] sm:$0xff] %vm220_vm0, %v211_v54  ;;  %v213_v62 = vadd.f32 %v322_v2, %v142_v55  ;;  %v214_v63 = vadd.f32 %v322_v2, %v143_v56  ;;  %v215_v0 = vadd.f32 %v322_v2, %v144_v57  ;;  %v148_v3 = vmul.f32 %v317_v1, %v77_v53 }
  0x28   :  { %277 = vst.msk [vmem:[%s900_s3 + $0x1c0] sm:$0xff] %vm220_vm0, %v212_v58  ;;  %v216_v4 = vadd.f32 %v322_v2, %v145_v59  ;;  %v217_v5 = vadd.f32 %v322_v2, %v146_v60  ;;  %v218_v6 = vadd.f32 %v322_v2, %v147_v61 }
  0x29   :  { %278 = vst.msk [vmem:[%s900_s3 + $0x1c8] sm:$0xff] %vm220_vm0, %v213_v62  ;;  %279 = vst.msk [vmem:[%s900_s3 + $0x1d0] sm:$0xff] %vm220_vm0, %v214_v63  ;;  %v219_v1 = vadd.f32 %v322_v2, %v148_v3 }
  0x2a   :  { %280 = vst.msk [vmem:[%s900_s3 + $0x1d8] sm:$0xff] %vm220_vm0, %v215_v0  ;;  %281 = vst.msk [vmem:[%s900_s3 + $0x1e0] sm:$0xff] %vm220_vm0, %v216_v4 }
  0x2b   :  { %282 = vst.msk [vmem:[%s900_s3 + $0x1e8] sm:$0xff] %vm220_vm0, %v217_v5  ;;  %283 = vst.msk [vmem:[%s900_s3 + $0x1f0] sm:$0xff] %vm220_vm0, %v218_v6 }
  0x2c   :  { %284 = vst.msk [vmem:[%s900_s3 + $0x1f8] sm:$0xff] %vm220_vm0, %v219_v1 }

// kernel: unet_innermost_forward.4
= control target key start
LH: loop header
LB: loop body
LE: loop exit
PB: predicated region body
PF: predicated region fallthrough
CT: control target
= control target key end

     0   :  { %vm115_vm0 = vcmask 1043456   ;;  %vm90_vm1 = vcmask 64512   ;;  %vm778_vm2 = vcmask 31744   ;;  %vm3499_vm3 = vcmask 1040384   ;;  %s5965_s1 = inlined_call_operand.vmem [shape: bf16[4,4,8,4], index: 1, kind: input, shape index: {}]   ;;  %s5966_s0 = inlined_call_operand.vmem [shape: bf16[9,128,8], index: 0, kind: input, shape index: {}]   ;;  %s5967_s2 = inlined_call_operand.vmem [shape: f32[4,128,4], index: 2, kind: output, shape index: {0}]   ;;  %s5968_s3 = inlined_call_operand.vmem [shape: f32[1,2,4], index: 3, kind: output, shape index: {1}]  }
   0x1   :  { %v3527_v0 = vld [vmem:[%s5965_s1 + $0x4] sm:$0xf]  ;;  %v30_v1 = vld [vmem:[%s5965_s1] sm:$0xf]  ;;  %v4520_v6 = vld [vmem:[%s5966_s0 + $0x48] sm:$0xff]   ;;  %vm3501_vm4 = vcmask 25600  }
   0x2   :  { %4502 = vmatprep.subr.msk.bf16.mxu0 %vm115_vm0, %v3527_v0  ;;  %4503 = vmatprep.subr.msk.bf16.mxu1 %vm115_vm0, %v30_v1  ;;  %v117_v2 = vsel %vm115_vm0, %v3527_v0, 0  ;;  %v281_v3 = vsel %vm115_vm0, %v30_v1, 0  ;;  %v4518_v4 = vld [vmem:[%s5966_s0 + $0x40] sm:$0xff]   ;;  %v4521_v7 = vld [vmem:[%s5966_s0 + $0x8] sm:$0xff]   ;;  %v4522_v11 = vld [vmem:[%s5966_s0 + $0x50] sm:$0xff]  }
   0x3   :  { %v4519_v5 = vld [vmem:[%s5966_s0] sm:$0xff]   ;;  %4215 = vmatpush3.bf16.msra.mxu0 %v117_v2  ;;  %4233 = vmatpush3.bf16.msra.mxu1 %v281_v3  ;;  %v3576_v8 = vld [vmem:[%s5965_s1 + $0x8] sm:$0xf]  ;;  %v3609_v10 = vld [vmem:[%s5965_s1 + $0xc] sm:$0xf] }
   0x4   :  { %4216 = vmatprep.mubr.msk.bf16.mxu0 %vm90_vm1, %v4518_v4  ;;  %4234 = vmatprep.mubr.msk.bf16.mxu1 %vm90_vm1, %v4519_v5  ;;  %v464_v9 = vsel %vm115_vm0, %v3576_v8, 0  ;;  %v663_v12 = vsel %vm115_vm0, %v3609_v10, 0  ;;  %v4523_v13 = vld [vmem:[%s5966_s0 + $0x10] sm:$0xff]   ;;  %v4524_v14 = vld [vmem:[%s5966_s0 + $0x58] sm:$0xff]   ;;  %v4526_v16 = vld [vmem:[%s5966_s0 + $0x60] sm:$0xff]  }
   0x5   :  { %4504 = vmatprep.subr.msk.bf16.mxu0 %vm115_vm0, %v3576_v8  ;;  %4505 = vmatprep.subr.msk.bf16.mxu1 %vm115_vm0, %v3609_v10  ;;  %v4525_v15 = vld [vmem:[%s5966_s0 + $0x18] sm:$0xff]   ;;  %v4527_v17 = vld [vmem:[%s5966_s0 + $0x20] sm:$0xff]   ;;  %v4528_v18 = vld [vmem:[%s5966_s0 + $0x68] sm:$0xff]  }
   0x6   :  { %4217 = vmatmul.mubr.msk.bf16.vlgmr.msra.gmra.mxu0 %vm90_vm1, %v4520_v6  ;;  %4235 = vmatmul.mubr.msk.bf16.vlgmr.msra.gmra.mxu1 %vm90_vm1, %v4521_v7  ;;  %v4529_v19 = vld [vmem:[%s5966_s0 + $0x28] sm:$0xff]   ;;  %v4530_v20 = vld [vmem:[%s5966_s0 + $0x70] sm:$0xff]   ;;  %v4532_v24 = vld [vmem:[%s5966_s0 + $0x78] sm:$0xff]  }
   0x7   :  { %4251 = vmatpush3.bf16.msra.mxu0 %v464_v9  ;;  %4220 = vmatprep.mubr.msk.bf16.mxu0 %vm90_vm1, %v4522_v11  ;;  %v4531_v21 = vld [vmem:[%s5966_s0 + $0x30] sm:$0xff]   ;;  %v4533_v25 = vld [vmem:[%s5966_s0 + $0x38] sm:$0xff]   ;;  %v4534_v26 = vld [vmem:[%s5966_s0 + $0xc0] sm:$0xff]  }
   0x8   :  { %4269 = vmatpush3.bf16.msra.mxu1 %v663_v12  ;;  %4238 = vmatprep.mubr.msk.bf16.mxu1 %vm90_vm1, %v4523_v13  ;;  %v3659_v22 = vld [vmem:[%s5965_s1 + $0x14] sm:$0xf]  ;;  %v3642_v23 = vld [vmem:[%s5965_s1 + $0x10] sm:$0xf]  ;;  %v4535_v27 = vld [vmem:[%s5966_s0 + $0x100] sm:$0xff]  }
   0x9   :  { %4506 = vmatprep.subr.msk.bf16.mxu0 %vm115_vm0, %v3659_v22  ;;  %4507 = vmatprep.subr.msk.bf16.mxu1 %vm115_vm0, %v3642_v23  ;;  %v4536_v28 = vld [vmem:[%s5966_s0 + $0xc8] sm:$0xff]   ;;  %v989_v30 = vsel %vm115_vm0, %v3659_v22, 0  ;;  %v4538_v31 = vld [vmem:[%s5966_s0 + $0xd0] sm:$0xff]   ;;  %v1153_v32 = vsel %vm115_vm0, %v3642_v23, 0  ;;  %v3708_v34 = vld [vmem:[%s5965_s1 + $0x18] sm:$0xf] }
   0xa   :  { %v4537_v29 = vld [vmem:[%s5966_s0 + $0x108] sm:$0xff]   ;;  %v4539_v33 = vld [vmem:[%s5966_s0 + $0x110] sm:$0xff]   ;;  %v3741_v35 = vld [vmem:[%s5965_s1 + $0x1c] sm:$0xf]  ;;  %v1335_v50 = vsel %vm115_vm0, %v3708_v34, 0 }
   0xb   :  { %v4540_v36 = vld [vmem:[%s5966_s0 + $0xd8] sm:$0xff]   ;;  %v4542_v38 = vld [vmem:[%s5966_s0 + $0xe0] sm:$0xff]   ;;  %v4544_v40 = vld [vmem:[%s5966_s0 + $0xe8] sm:$0xff]   ;;  %v1534_v52 = vsel %vm115_vm0, %v3741_v35, 0 }
   0xc   :  { %v4541_v37 = vld [vmem:[%s5966_s0 + $0x118] sm:$0xff]   ;;  %v4543_v39 = vld [vmem:[%s5966_s0 + $0x120] sm:$0xff]   ;;  %v4545_v41 = vld [vmem:[%s5966_s0 + $0x128] sm:$0xff]  }
   0xd   :  { %v4546_v42 = vld [vmem:[%s5966_s0 + $0xf0] sm:$0xff]   ;;  %v4548_v44 = vld [vmem:[%s5966_s0 + $0xf8] sm:$0xff]   ;;  %v4550_v46 = vld [vmem:[%s5966_s0 + $0x80] sm:$0xff]  }
   0xe   :  { %4221 = vmatmul.mubr.msk.bf16.gmra.mxu0 %vm90_vm1, %v4524_v14  ;;  %4239 = vmatmul.mubr.msk.bf16.gmra.mxu1 %vm90_vm1, %v4525_v15  ;;  %v4547_v43 = vld [vmem:[%s5966_s0 + $0x130] sm:$0xff]   ;;  %v4549_v45 = vld [vmem:[%s5966_s0 + $0x138] sm:$0xff]   ;;  %v4551_v47 = vld [vmem:[%s5966_s0 + $0x40] sm:$0xff]  }
   0xf   :  { %4224 = vmatprep.mubr.msk.bf16.mxu0 %vm90_vm1, %v4526_v16  ;;  %4242 = vmatprep.mubr.msk.bf16.mxu1 %vm90_vm1, %v4527_v17  ;;  %v4552_v48 = vld [vmem:[%s5966_s0 + $0x88] sm:$0xff]   ;;  %v4554_v51 = vld [vmem:[%s5966_s0 + $0x90] sm:$0xff]   ;;  %v3807_v54 = vld [vmem:[%s5965_s1 + $0x24] sm:$0xf] }
  0x10   :  { %v4553_v49 = vld [vmem:[%s5966_s0 + $0x48] sm:$0xff]   ;;  %v4555_v53 = vld [vmem:[%s5966_s0 + $0x50] sm:$0xff]   ;;  %v3790_v55 = vld [vmem:[%s5965_s1 + $0x20] sm:$0xf]  ;;  %v1859_v6 = vsel %vm115_vm0, %v3807_v54, 0 }
  0x11   :  { %v4556_v56 = vld [vmem:[%s5966_s0 + $0x98] sm:$0xff]   ;;  %v4558_v58 = vld [vmem:[%s5966_s0 + $0xa0] sm:$0xff]   ;;  %v4560_v60 = vld [vmem:[%s5966_s0 + $0xa8] sm:$0xff]   ;;  %v2023_v8 = vsel %vm115_vm0, %v3790_v55, 0 }
  0x12   :  { %v4557_v57 = vld [vmem:[%s5966_s0 + $0x58] sm:$0xff]   ;;  %v4559_v59 = vld [vmem:[%s5966_s0 + $0x60] sm:$0xff]   ;;  %v4561_v61 = vld [vmem:[%s5966_s0 + $0x68] sm:$0xff]  }
  0x13   :  { %v4562_v62 = vld [vmem:[%s5966_s0 + $0xb0] sm:$0xff]   ;;  %v4564_v0 = vld [vmem:[%s5966_s0 + $0xb8] sm:$0xff]   ;;  %v4566_v2 = vld [vmem:[%s5966_s0 + $0x100] sm:$0xff]  }
  0x14   :  { %v4563_v63 = vld [vmem:[%s5966_s0 + $0x70] sm:$0xff]   ;;  %v4565_v1 = vld [vmem:[%s5966_s0 + $0x78] sm:$0xff]   ;;  %v4567_v3 = vld [vmem:[%s5966_s0 + $0x140] sm:$0xff]  }
  0x15   :  { %v4568_v4 = vld [vmem:[%s5966_s0 + $0x108] sm:$0xff]   ;;  %v4570_v7 = vld [vmem:[%s5966_s0 + $0x110] sm:$0xff]   ;;  %v4572_v12 = vld [vmem:[%s5966_s0 + $0x118] sm:$0xff]  }
  0x16   :  { %4225 = vmatmul.mubr.msk.bf16.gmra.mxu0 %vm90_vm1, %v4528_v18  ;;  %4243 = vmatmul.mubr.msk.bf16.gmra.mxu1 %vm90_vm1, %v4529_v19  ;;  %v4569_v5 = vld [vmem:[%s5966_s0 + $0x148] sm:$0xff]   ;;  %v4571_v9 = vld [vmem:[%s5966_s0 + $0x150] sm:$0xff]   ;;  %v4573_v13 = vld [vmem:[%s5966_s0 + $0x158] sm:$0xff]  }
  0x17   :  { %4228 = vmatprep.mubr.msk.bf16.mxu0 %vm90_vm1, %v4530_v20  ;;  %4246 = vmatprep.mubr.msk.bf16.mxu1 %vm90_vm1, %v4531_v21  ;;  %v3856_v10 = vld [vmem:[%s5965_s1 + $0x28] sm:$0xf]  ;;  %v3889_v11 = vld [vmem:[%s5965_s1 + $0x2c] sm:$0xf]  ;;  %v4574_v14 = vld [vmem:[%s5966_s0 + $0x120] sm:$0xff]  }
  0x18   :  { %v4575_v15 = vld [vmem:[%s5966_s0 + $0x160] sm:$0xff]   ;;  %v4576_v16 = vld [vmem:[%s5966_s0 + $0x128] sm:$0xff]   ;;  %v4578_v18 = vld [vmem:[%s5966_s0 + $0x130] sm:$0xff]  }
  0x19   :  { %v4577_v17 = vld [vmem:[%s5966_s0 + $0x168] sm:$0xff]   ;;  %v4579_v19 = vld [vmem:[%s5966_s0 + $0x170] sm:$0xff]   ;;  %v4580_v20 = vld [vmem:[%s5966_s0 + $0x138] sm:$0xff]  }
  0x1a   :  { %v4581_v21 = vld [vmem:[%s5966_s0 + $0x178] sm:$0xff]   ;;  %v4582_v22 = vld [vmem:[%s5966_s0 + $0x100] sm:$0xff]  }
  0x1b   :  { %v4583_v23 = vld [vmem:[%s5966_s0 + $0xc0] sm:$0xff]  }
  0x1e   :  { %4229 = vmatmul.mubr.msk.bf16.gmra.mxu0 %vm90_vm1, %v4532_v24  ;;  %4247 = vmatmul.mubr.msk.bf16.gmra.mxu1 %vm90_vm1, %v4533_v25  ;;  %v4584_v24 = vld [vmem:[%s5966_s0 + $0x108] sm:$0xff]  }
  0x1f   :  { %4252 = vmatprep.mubr.msk.bf16.mxu0 %vm90_vm1, %v4534_v26  ;;  %4270 = vmatprep.mubr.msk.bf16.mxu1 %vm90_vm1, %v4535_v27  ;;  %v4585_v25 = vld [vmem:[%s5966_s0 + $0xc8] sm:$0xff]   ;;  %v2206_v26 = vsel %vm115_vm0, %v3856_v10, 0  ;;  %v4586_v27 = vld [vmem:[%s5966_s0 + $0x110] sm:$0xff]  }
  0x26   :  { %4253 = vmatmul.mubr.msk.bf16.vlgmr.msra.gmra.mxu0 %vm90_vm1, %v4536_v28  ;;  %4271 = vmatmul.mubr.msk.bf16.vlgmr.msra.gmra.mxu1 %vm90_vm1, %v4537_v29  ;;  %v2405_v28 = vsel %vm115_vm0, %v3889_v11, 0  ;;  %v4587_v29 = vld [vmem:[%s5966_s0 + $0xd0] sm:$0xff]  }
  0x27   :  { %4287 = vmatpush3.bf16.msra.mxu0 %v989_v30  ;;  %4305 = vmatpush3.bf16.msra.mxu1 %v1153_v32  ;;  %v3955_v30 = vld [vmem:[%s5965_s1 + $0x34] sm:$0xf]  ;;  %v4588_v32 = vld [vmem:[%s5966_s0 + $0x118] sm:$0xff]  }
  0x28   :  { %4256 = vmatprep.mubr.msk.bf16.mxu0 %vm90_vm1, %v4538_v31  ;;  %4274 = vmatprep.mubr.msk.bf16.mxu1 %vm90_vm1, %v4539_v33  ;;  %v3938_v31 = vld [vmem:[%s5965_s1 + $0x30] sm:$0xf]  ;;  %v4589_v33 = vld [vmem:[%s5966_s0 + $0xd8] sm:$0xff]  }
  0x29   :  { %4508 = vmatprep.subr.msk.bf16.mxu0 %vm115_vm0, %v3708_v34  ;;  %4509 = vmatprep.subr.msk.bf16.mxu1 %vm115_vm0, %v3741_v35  ;;  %v4590_v34 = vld [vmem:[%s5966_s0 + $0x120] sm:$0xff]  }
  0x2a   :  { %v4591_v35 = vld [vmem:[%s5966_s0 + $0xe0] sm:$0xff]  }
  0x2e   :  { %4257 = vmatmul.mubr.msk.bf16.gmra.mxu0 %vm90_vm1, %v4540_v36  ;;  %4275 = vmatmul.mubr.msk.bf16.gmra.mxu1 %vm90_vm1, %v4541_v37  ;;  %v4592_v36 = vld [vmem:[%s5966_s0 + $0x128] sm:$0xff]  }
  0x2f   :  { %4260 = vmatprep.mubr.msk.bf16.mxu0 %vm90_vm1, %v4542_v38  ;;  %4278 = vmatprep.mubr.msk.bf16.mxu1 %vm90_vm1, %v4543_v39  ;;  %v4593_v37 = vld [vmem:[%s5966_s0 + $0xe8] sm:$0xff]   ;;  %v4594_v38 = vld [vmem:[%s5966_s0 + $0x130] sm:$0xff]  }
  0x30   :  { %v4595_v39 = vld [vmem:[%s5966_s0 + $0xf0] sm:$0xff]  }
  0x36   :  { %4261 = vmatmul.mubr.msk.bf16.gmra.mxu0 %vm90_vm1, %v4544_v40  ;;  %4279 = vmatmul.mubr.msk.bf16.gmra.mxu1 %vm90_vm1, %v4545_v41  ;;  %v4596_v40 = vld [vmem:[%s5966_s0 + $0x138] sm:$0xff]  }
  0x37   :  { %4264 = vmatprep.mubr.msk.bf16.mxu0 %vm90_vm1, %v4546_v42  ;;  %4282 = vmatprep.mubr.msk.bf16.mxu1 %vm90_vm1, %v4547_v43  ;;  %v4597_v41 = vld [vmem:[%s5966_s0 + $0xf8] sm:$0xff]   ;;  %v4598_v42 = vld [vmem:[%s5966_s0 + $0x180] sm:$0xff]  }
  0x38   :  { %v4599_v43 = vld [vmem:[%s5966_s0 + $0x1c0] sm:$0xff]  }
  0x3e   :  { %4265 = vmatmul.mubr.msk.bf16.gmra.mxu0 %vm90_vm1, %v4548_v44  ;;  %4283 = vmatmul.mubr.msk.bf16.gmra.mxu1 %vm90_vm1, %v4549_v45  ;;  %v4600_v44 = vld [vmem:[%s5966_s0 + $0x188] sm:$0xff]  }
  0x3f   :  { %4288 = vmatprep.mubr.msk.bf16.mxu0 %vm90_vm1, %v4550_v46  ;;  %4306 = vmatprep.mubr.msk.bf16.mxu1 %vm90_vm1, %v4551_v47  ;;  %v4601_v45 = vld [vmem:[%s5966_s0 + $0x1c8] sm:$0xff]   ;;  %v2730_v46 = vsel %vm115_vm0, %v3955_v30, 0  ;;  %v4602_v47 = vld [vmem:[%s5966_s0 + $0x190] sm:$0xff]  }
  0x46   :  { %4289 = vmatmul.mubr.msk.bf16.vlgmr.msra.gmra.mxu0 %vm90_vm1, %v4552_v48  ;;  %4307 = vmatmul.mubr.msk.bf16.vlgmr.msra.gmra.mxu1 %vm90_vm1, %v4553_v49  ;;  %v2894_v48 = vsel %vm115_vm0, %v3938_v31, 0  ;;  %v4603_v49 = vld [vmem:[%s5966_s0 + $0x1d0] sm:$0xff]  }
  0x47   :  { %4323 = vmatpush3.bf16.msra.mxu0 %v1335_v50  ;;  %4341 = vmatpush3.bf16.msra.mxu1 %v1534_v52  ;;  %v4004_v50 = vld [vmem:[%s5965_s1 + $0x38] sm:$0xf] }
  0x48   :  { %4292 = vmatprep.mubr.msk.bf16.mxu0 %vm90_vm1, %v4554_v51  ;;  %4310 = vmatprep.mubr.msk.bf16.mxu1 %vm90_vm1, %v4555_v53  ;;  %v4037_v51 = vld [vmem:[%s5965_s1 + $0x3c] sm:$0xf] }
  0x49   :  { %4510 = vmatprep.subr.msk.bf16.mxu0 %vm115_vm0, %v3807_v54  ;;  %4511 = vmatprep.subr.msk.bf16.mxu1 %vm115_vm0, %v3790_v55  ;;  %v4604_v52 = vld [vmem:[%s5966_s0 + $0x198] sm:$0xff]   ;;  %v4606_v54 = vld [vmem:[%s5966_s0 + $0x1a0] sm:$0xff]  }
  0x4a   :  { %v4605_v53 = vld [vmem:[%s5966_s0 + $0x1d8] sm:$0xff]   ;;  %v4607_v55 = vld [vmem:[%s5966_s0 + $0x1e0] sm:$0xff]  }
  0x4e   :  { %4293 = vmatmul.mubr.msk.bf16.gmra.mxu0 %vm90_vm1, %v4556_v56  ;;  %4311 = vmatmul.mubr.msk.bf16.gmra.mxu1 %vm90_vm1, %v4557_v57  ;;  %v4608_v56 = vld [vmem:[%s5966_s0 + $0x1a8] sm:$0xff]  }
  0x4f   :  { %4296 = vmatprep.mubr.msk.bf16.mxu0 %vm90_vm1, %v4558_v58  ;;  %4314 = vmatprep.mubr.msk.bf16.mxu1 %vm90_vm1, %v4559_v59  ;;  %v4609_v57 = vld [vmem:[%s5966_s0 + $0x1e8] sm:$0xff]   ;;  %v4610_v58 = vld [vmem:[%s5966_s0 + $0x1b0] sm:$0xff]  }
  0x50   :  { %v4611_v59 = vld [vmem:[%s5966_s0 + $0x1f0] sm:$0xff]  }
  0x56   :  { %4297 = vmatmul.mubr.msk.bf16.gmra.mxu0 %vm90_vm1, %v4560_v60  ;;  %4315 = vmatmul.mubr.msk.bf16.gmra.mxu1 %vm90_vm1, %v4561_v61  ;;  %v4612_v60 = vld [vmem:[%s5966_s0 + $0x1b8] sm:$0xff]  }
  0x57   :  { %4300 = vmatprep.mubr.msk.bf16.mxu0 %vm90_vm1, %v4562_v62  ;;  %4318 = vmatprep.mubr.msk.bf16.mxu1 %vm90_vm1, %v4563_v63  ;;  %v4613_v61 = vld [vmem:[%s5966_s0 + $0x1f8] sm:$0xff]   ;;  %v4614_v62 = vld [vmem:[%s5966_s0 + $0x140] sm:$0xff]  }
  0x58   :  { %v4615_v63 = vld [vmem:[%s5966_s0 + $0x100] sm:$0xff]  }
  0x5e   :  { %4301 = vmatmul.mubr.msk.bf16.gmra.mxu0 %vm90_vm1, %v4564_v0  ;;  %4319 = vmatmul.mubr.msk.bf16.gmra.mxu1 %vm90_vm1, %v4565_v1  ;;  %v4616_v0 = vld [vmem:[%s5966_s0 + $0x148] sm:$0xff]  }
  0x5f   :  { %4324 = vmatprep.mubr.msk.bf16.mxu0 %vm90_vm1, %v4566_v2  ;;  %4342 = vmatprep.mubr.msk.bf16.mxu1 %vm90_vm1, %v4567_v3  ;;  %v4617_v1 = vld [vmem:[%s5966_s0 + $0x108] sm:$0xff]   ;;  %v3076_v2 = vsel %vm115_vm0, %v4004_v50, 0  ;;  %v4618_v3 = vld [vmem:[%s5966_s0 + $0x150] sm:$0xff]  }
  0x66   :  { %4325 = vmatmul.mubr.msk.bf16.vlgmr.msra.gmra.mxu0 %vm90_vm1, %v4568_v4  ;;  %4343 = vmatmul.mubr.msk.bf16.vlgmr.msra.gmra.mxu1 %vm90_vm1, %v4569_v5  ;;  %v3275_v4 = vsel %vm115_vm0, %v4037_v51, 0  ;;  %v4619_v5 = vld [vmem:[%s5966_s0 + $0x110] sm:$0xff]  }
  0x67   :  { %4359 = vmatpush3.bf16.msra.mxu0 %v1859_v6  ;;  %4377 = vmatpush3.bf16.msra.mxu1 %v2023_v8 }
  0x68   :  { %4328 = vmatprep.mubr.msk.bf16.mxu0 %vm90_vm1, %v4570_v7  ;;  %4346 = vmatprep.mubr.msk.bf16.mxu1 %vm90_vm1, %v4571_v9 }
  0x69   :  { %4512 = vmatprep.subr.msk.bf16.mxu0 %vm115_vm0, %v3856_v10  ;;  %4513 = vmatprep.subr.msk.bf16.mxu1 %vm115_vm0, %v3889_v11  ;;  %v4620_v11 = vld [vmem:[%s5966_s0 + $0x158] sm:$0xff]  }
  0x6e   :  { %4329 = vmatmul.mubr.msk.bf16.gmra.mxu0 %vm90_vm1, %v4572_v12  ;;  %4347 = vmatmul.mubr.msk.bf16.gmra.mxu1 %vm90_vm1, %v4573_v13  ;;  %v4621_v13 = vld [vmem:[%s5966_s0 + $0x118] sm:$0xff]  }
  0x6f   :  { %4332 = vmatprep.mubr.msk.bf16.mxu0 %vm90_vm1, %v4574_v14  ;;  %4350 = vmatprep.mubr.msk.bf16.mxu1 %vm90_vm1, %v4575_v15  ;;  %v4622_v14 = vld [vmem:[%s5966_s0 + $0x160] sm:$0xff]  }
  0x76   :  { %4333 = vmatmul.mubr.msk.bf16.gmra.mxu0 %vm90_vm1, %v4576_v16  ;;  %4351 = vmatmul.mubr.msk.bf16.gmra.mxu1 %vm90_vm1, %v4577_v17  ;;  %v4623_v16 = vld [vmem:[%s5966_s0 + $0x120] sm:$0xff]  }
  0x77   :  { %4336 = vmatprep.mubr.msk.bf16.mxu0 %vm90_vm1, %v4578_v18  ;;  %4354 = vmatprep.mubr.msk.bf16.mxu1 %vm90_vm1, %v4579_v19 }
  0x7e   :  { %4337 = vmatmul.mubr.msk.bf16.gmra.mxu0 %vm90_vm1, %v4580_v20  ;;  %4355 = vmatmul.mubr.msk.bf16.gmra.mxu1 %vm90_vm1, %v4581_v21 }
  0x7f   :  { %4360 = vmatprep.mubr.msk.bf16.mxu0 %vm90_vm1, %v4582_v22  ;;  %4378 = vmatprep.mubr.msk.bf16.mxu1 %vm90_vm1, %v4583_v23  ;;  %v4624_v23 = vld [vmem:[%s5966_s0 + $0x168] sm:$0xff]  }
  0x86   :  { %4361 = vmatmul.mubr.msk.bf16.vlgmr.msra.gmra.mxu0 %vm90_vm1, %v4584_v24  ;;  %4379 = vmatmul.mubr.msk.bf16.vlgmr.msra.gmra.mxu1 %vm90_vm1, %v4585_v25  ;;  %v4625_v25 = vld [vmem:[%s5966_s0 + $0x128] sm:$0xff]  }
  0x87   :  { %4395 = vmatpush3.bf16.msra.mxu0 %v2206_v26  ;;  %4413 = vmatpush3.bf16.msra.mxu1 %v2405_v28  ;;  %v4626_v26 = vld [vmem:[%s5966_s0 + $0x170] sm:$0xff]  }
  0x88   :  { %4364 = vmatprep.mubr.msk.bf16.mxu0 %vm90_vm1, %v4586_v27  ;;  %4382 = vmatprep.mubr.msk.bf16.mxu1 %vm90_vm1, %v4587_v29  ;;  %v4627_v28 = vld [vmem:[%s5966_s0 + $0x130] sm:$0xff]  }
  0x89   :  { %4514 = vmatprep.subr.msk.bf16.mxu0 %vm115_vm0, %v3955_v30  ;;  %4515 = vmatprep.subr.msk.bf16.mxu1 %vm115_vm0, %v3938_v31 }
  0x8e   :  { %4365 = vmatmul.mubr.msk.bf16.gmra.mxu0 %vm90_vm1, %v4588_v32  ;;  %4383 = vmatmul.mubr.msk.bf16.gmra.mxu1 %vm90_vm1, %v4589_v33 }
  0x8f   :  { %4368 = vmatprep.mubr.msk.bf16.mxu0 %vm90_vm1, %v4590_v34  ;;  %4386 = vmatprep.mubr.msk.bf16.mxu1 %vm90_vm1, %v4591_v35  ;;  %v4628_v35 = vld [vmem:[%s5966_s0 + $0x178] sm:$0xff]  }
  0x96   :  { %4369 = vmatmul.mubr.msk.bf16.gmra.mxu0 %vm90_vm1, %v4592_v36  ;;  %4387 = vmatmul.mubr.msk.bf16.gmra.mxu1 %vm90_vm1, %v4593_v37  ;;  %v4629_v37 = vld [vmem:[%s5966_s0 + $0x138] sm:$0xff]  }
  0x97   :  { %4372 = vmatprep.mubr.msk.bf16.mxu0 %vm90_vm1, %v4594_v38  ;;  %4390 = vmatprep.mubr.msk.bf16.mxu1 %vm90_vm1, %v4595_v39  ;;  %v4630_v38 = vld [vmem:[%s5966_s0 + $0x1c0] sm:$0xff]  }
  0x9e   :  { %4373 = vmatmul.mubr.msk.bf16.gmra.mxu0 %vm90_vm1, %v4596_v40  ;;  %4391 = vmatmul.mubr.msk.bf16.gmra.mxu1 %vm90_vm1, %v4597_v41  ;;  %v4631_v40 = vld [vmem:[%s5966_s0 + $0x200] sm:$0xff]  }
  0x9f   :  { %4396 = vmatprep.mubr.msk.bf16.mxu0 %vm90_vm1, %v4598_v42  ;;  %4414 = vmatprep.mubr.msk.bf16.mxu1 %vm90_vm1, %v4599_v43 }
  0xa6   :  { %4397 = vmatmul.mubr.msk.bf16.vlgmr.msra.gmra.mxu0 %vm90_vm1, %v4600_v44  ;;  %4415 = vmatmul.mubr.msk.bf16.vlgmr.msra.gmra.mxu1 %vm90_vm1, %v4601_v45 }
  0xa7   :  { %4431 = vmatpush3.bf16.msra.mxu0 %v2730_v46  ;;  %4449 = vmatpush3.bf16.msra.mxu1 %v2894_v48 }
  0xa8   :  { %4400 = vmatprep.mubr.msk.bf16.mxu0 %vm90_vm1, %v4602_v47  ;;  %4418 = vmatprep.mubr.msk.bf16.mxu1 %vm90_vm1, %v4603_v49  ;;  %v4632_v47 = vld [vmem:[%s5966_s0 + $0x1c8] sm:$0xff]  }
  0xa9   :  { %4516 = vmatprep.subr.msk.bf16.mxu0 %vm115_vm0, %v4004_v50  ;;  %4517 = vmatprep.subr.msk.bf16.mxu1 %vm115_vm0, %v4037_v51  ;;  %v4633_v49 = vld [vmem:[%s5966_s0 + $0x208] sm:$0xff]   ;;  %v4634_v50 = vld [vmem:[%s5966_s0 + $0x1d0] sm:$0xff]  }
  0xae   :  { %4401 = vmatmul.mubr.msk.bf16.gmra.mxu0 %vm90_vm1, %v4604_v52  ;;  %4419 = vmatmul.mubr.msk.bf16.gmra.mxu1 %vm90_vm1, %v4605_v53  ;;  %v4635_v52 = vld [vmem:[%s5966_s0 + $0x210] sm:$0xff]  }
  0xaf   :  { %4404 = vmatprep.mubr.msk.bf16.mxu0 %vm90_vm1, %v4606_v54  ;;  %4422 = vmatprep.mubr.msk.bf16.mxu1 %vm90_vm1, %v4607_v55 }
  0xb6   :  { %4405 = vmatmul.mubr.msk.bf16.gmra.mxu0 %vm90_vm1, %v4608_v56  ;;  %4423 = vmatmul.mubr.msk.bf16.gmra.mxu1 %vm90_vm1, %v4609_v57 }
  0xb7   :  { %4408 = vmatprep.mubr.msk.bf16.mxu0 %vm90_vm1, %v4610_v58  ;;  %4426 = vmatprep.mubr.msk.bf16.mxu1 %vm90_vm1, %v4611_v59 }
  0xbe   :  { %4409 = vmatmul.mubr.msk.bf16.gmra.mxu0 %vm90_vm1, %v4612_v60  ;;  %4427 = vmatmul.mubr.msk.bf16.gmra.mxu1 %vm90_vm1, %v4613_v61 }
  0xbf   :  { %4432 = vmatprep.mubr.msk.bf16.mxu0 %vm90_vm1, %v4614_v62  ;;  %4450 = vmatprep.mubr.msk.bf16.mxu1 %vm90_vm1, %v4615_v63 }
  0xc6   :  { %v5150_v6 = vpop.f32.mrf.mxu0  ;;  %4433 = vmatmul.mubr.msk.bf16.vlgmr.msra.gmra.mxu0 %vm90_vm1, %v4616_v0  ;;  %v5153_v7 = vpop.f32.mrf.mxu1  ;;  %4451 = vmatmul.mubr.msk.bf16.vlgmr.msra.gmra.mxu1 %vm90_vm1, %v4617_v1  ;;  %v4636_v1 = vld [vmem:[%s5966_s0 + $0x1d8] sm:$0xff]  }
  0xc7   :  { %4467 = vmatpush3.bf16.msra.mxu0 %v3076_v2  ;;  %4485 = vmatpush3.bf16.msra.mxu1 %v3275_v4  ;;  %v326_v53 = vadd.f32 %v5153_v7, %v5150_v6  ;;  %v4638_v6 = vld [vmem:[%s5966_s0 + $0x1e0] sm:$0xff]  }
  0xc8   :  { %v5156_v8 = vpop.f32.mrf.mxu0  ;;  %4436 = vmatprep.mubr.msk.bf16.mxu0 %vm90_vm1, %v4618_v3  ;;  %v317_v9 = vpop.f32.mrf.mxu1  ;;  %4454 = vmatprep.mubr.msk.bf16.mxu1 %vm90_vm1, %v4619_v5  ;;  %v4637_v5 = vld [vmem:[%s5966_s0 + $0x218] sm:$0xff]  }
  0xc9   :  { %v318_v56 = vadd.f32 %v317_v9, %v5156_v8  ;;  %v4639_v9 = vld [vmem:[%s5966_s0 + $0x220] sm:$0xff]  }
  0xca   :  { %v5160_v10 = vpop.f32.mrf.mxu0  ;;  %v5165_v12 = vpop.f32.mrf.mxu1 }
  0xcb   :  { %v329_v60 = vadd.f32 %v5165_v12, %v5160_v10 }
  0xcc   :  { %v5173_v15 = vpop.f32.mrf.mxu0  ;;  %v5178_v17 = vpop.f32.mrf.mxu1 }
  0xcd   :  { %v321_v7 = vadd.f32 %v5178_v17, %v5173_v15 }
  0xce   :  { %v5180_v18 = vpop.f32.mrf.mxu0  ;;  %4437 = vmatmul.mubr.msk.bf16.gmra.mxu0 %vm90_vm1, %v4620_v11  ;;  %v5183_v19 = vpop.f32.mrf.mxu1  ;;  %4455 = vmatmul.mubr.msk.bf16.gmra.mxu1 %vm90_vm1, %v4621_v13 }
  0xcf   :  { %4440 = vmatprep.mubr.msk.bf16.mxu0 %vm90_vm1, %v4622_v14  ;;  %4458 = vmatprep.mubr.msk.bf16.mxu1 %vm90_vm1, %v4623_v16  ;;  %v342_v10 = vadd.f32 %v5183_v19, %v5180_v18 }
  0xd0   :  { %v5187_v20 = vpop.f32.mrf.mxu0  ;;  %v5190_v21 = vpop.f32.mrf.mxu1 }
  0xd1   :  { %v334_v15 = vadd.f32 %v5190_v21, %v5187_v20 }
  0xd2   :  { %v5192_v22 = vpop.f32.mrf.mxu0  ;;  %v5197_v24 = vpop.f32.mrf.mxu1 }
  0xd3   :  { %v345_v18 = vadd.f32 %v5197_v24, %v5192_v22 }
  0xd4   :  { %v5205_v27 = vpop.f32.mrf.mxu0  ;;  %v5210_v29 = vpop.f32.mrf.mxu1 }
  0xd5   :  { %v337_v20 = vadd.f32 %v5210_v29, %v5205_v27  ;;  %v4640_v27 = vld [vmem:[%s5966_s0 + $0x1e8] sm:$0xff]  }
  0xd6   :  { %v5212_v30 = vpop.f32.mrf.mxu0  ;;  %4441 = vmatmul.mubr.msk.bf16.gmra.mxu0 %vm90_vm1, %v4624_v23  ;;  %v5215_v31 = vpop.f32.mrf.mxu1  ;;  %4459 = vmatmul.mubr.msk.bf16.gmra.mxu1 %vm90_vm1, %v4625_v25 }
  0xd7   :  { %4444 = vmatprep.mubr.msk.bf16.mxu0 %vm90_vm1, %v4626_v26  ;;  %4462 = vmatprep.mubr.msk.bf16.mxu1 %vm90_vm1, %v4627_v28 }
  0xd8   :  { %v5219_v32 = vpop.f32.mrf.mxu0  ;;  %v5222_v33 = vpop.f32.mrf.mxu1 }
  0xd9   :  { %v350_v29 = vadd.f32 %v5222_v33, %v5219_v32 }
  0xda   :  { %v5224_v34 = vpop.f32.mrf.mxu0  ;;  %v5229_v36 = vpop.f32.mrf.mxu1 }
  0xdc   :  { %v5237_v39 = vpop.f32.mrf.mxu0  ;;  %v5242_v41 = vpop.f32.mrf.mxu1 }
  0xde   :  { %v5244_v42 = vpop.f32.mrf.mxu0  ;;  %4445 = vmatmul.mubr.msk.bf16.gmra.mxu0 %vm90_vm1, %v4628_v35  ;;  %v5247_v43 = vpop.f32.mrf.mxu1  ;;  %4463 = vmatmul.mubr.msk.bf16.gmra.mxu1 %vm90_vm1, %v4629_v37  ;;  %v358_v37 = vadd.f32 %v5215_v31, %v5212_v30 }
  0xdf   :  { %4468 = vmatprep.mubr.msk.bf16.mxu0 %vm90_vm1, %v4630_v38  ;;  %4486 = vmatprep.mubr.msk.bf16.mxu1 %vm90_vm1, %v4631_v40 }
  0xe0   :  { %v5251_v44 = vpop.f32.mrf.mxu0  ;;  %v5254_v45 = vpop.f32.mrf.mxu1 }
  0xe2   :  { %v5256_v46 = vpop.f32.mrf.mxu0  ;;  %v5261_v48 = vpop.f32.mrf.mxu1 }
  0xe4   :  { %v5269_v51 = vpop.f32.mrf.mxu0  ;;  %v5276_v54 = vpop.f32.mrf.mxu1 }
  0xe6   :  { %v4254_v55 = vpop.f32.mrf.mxu0  ;;  %4469 = vmatmul.mubr.msk.bf16.vlgmr.msra.gmra.mxu0 %vm90_vm1, %v4632_v47  ;;  %v4272_v58 = vpop.f32.mrf.mxu1  ;;  %4487 = vmatmul.mubr.msk.bf16.vlgmr.msra.gmra.mxu1 %vm90_vm1, %v4633_v49 }
  0xe7   :  { %v565_v57 = vadd.f32 %v4254_v55, %v326_v53  ;;  %4472 = vmatprep.mubr.msk.bf16.mxu0 %vm90_vm1, %v4634_v50  ;;  %4490 = vmatprep.mubr.msk.bf16.mxu1 %vm90_vm1, %v4635_v52  ;;  %v4641_v50 = vld [vmem:[%s5966_s0 + $0x228] sm:$0xff]   ;;  %v4642_v52 = vld [vmem:[%s5966_s0 + $0x1f0] sm:$0xff]  }
  0xe8   :  { %v500_v59 = vpop.f32.mrf.mxu0  ;;  %v699_v63 = vpop.f32.mrf.mxu1 }
  0xe9   :  { %v764_v61 = vadd.f32 %v4272_v58, %v565_v57  ;;  %v563_v62 = vadd.f32 %v500_v59, %v318_v56  ;;  %v4643_v57 = vld [vmem:[%s5966_s0 + $0x230] sm:$0xff]   ;;  %v361_v58 = vadd.f32 %v5229_v36, %v5224_v34 }
  0xea   :  { %v4255_v0 = vpop.f32.mrf.mxu0  ;;  %v4273_v4 = vpop.f32.mrf.mxu1 }
  0xeb   :  { %781 = vst.msk [vmem:[%s5967_s2 + $0x10] sm:$0xff] %vm778_vm2, %v764_v61  ;;  %v762_v2 = vadd.f32 %v699_v63, %v563_v62  ;;  %v566_v3 = vadd.f32 %v4255_v0, %v329_v60  ;;  %v835_v21 = vmul.f32 %v764_v61, %v764_v61  ;;  %v798_v30 = vsel %vm778_vm2, %v764_v61, 0.0 }
  0xec   :  { %v503_v8 = vpop.f32.mrf.mxu0  ;;  %v702_v12 = vpop.f32.mrf.mxu1 }
  0xed   :  { %779 = vst.msk [vmem:[%s5967_s2] sm:$0xff] %vm778_vm2, %v762_v2  ;;  %v765_v11 = vadd.f32 %v4273_v4, %v566_v3  ;;  %v564_v13 = vadd.f32 %v503_v8, %v321_v7  ;;  %v833_v19 = vmul.f32 %v762_v2, %v762_v2  ;;  %v795_v38 = vsel %vm778_vm2, %v762_v2, 0.0 }
  0xee   :  { %v4258_v14 = vpop.f32.mrf.mxu0  ;;  %4473 = vmatmul.mubr.msk.bf16.gmra.mxu0 %vm90_vm1, %v4636_v1  ;;  %v4276_v17 = vpop.f32.mrf.mxu1  ;;  %4491 = vmatmul.mubr.msk.bf16.gmra.mxu1 %vm90_vm1, %v4637_v5  ;;  %v852_v59 = vsel %vm778_vm2, %v835_v21, 0.0 }
  0xef   :  { %782 = vst.msk [vmem:[%s5967_s2 + $0x18] sm:$0xff] %vm778_vm2, %v765_v11  ;;  %v569_v16 = vadd.f32 %v4258_v14, %v342_v10  ;;  %4476 = vmatprep.mubr.msk.bf16.mxu0 %vm90_vm1, %v4638_v6  ;;  %v763_v23 = vadd.f32 %v702_v12, %v564_v13  ;;  %4494 = vmatprep.mubr.msk.bf16.mxu1 %vm90_vm1, %v4639_v9  ;;  %v849_v32 = vsel %vm778_vm2, %v833_v19, 0.0  ;;  %v800_v63 = vsel %vm778_vm2, %v765_v11, 0.0  ;;  %v4644_v19 = vld [vmem:[%s5966_s0 + $0x1f8] sm:$0xff]  }
  0xf0   :  { %v516_v25 = vpop.f32.mrf.mxu0  ;;  %v715_v35 = vpop.f32.mrf.mxu1  ;;  %v836_v33 = vmul.f32 %v765_v11, %v765_v11  ;;  %v353_v6 = vadd.f32 %v5242_v41, %v5237_v39 }
  0xf1   :  { %v768_v26 = vadd.f32 %v4276_v17, %v569_v16  ;;  %v567_v28 = vadd.f32 %v516_v25, %v334_v15  ;;  %780 = vst.msk [vmem:[%s5967_s2 + $0x8] sm:$0xff] %vm778_vm2, %v763_v23  ;;  %v796_v22 = vsel %vm778_vm2, %v763_v23, 0.0  ;;  %v834_v24 = vmul.f32 %v763_v23, %v763_v23 }
  0xf2   :  { %v4259_v40 = vpop.f32.mrf.mxu0  ;;  %v797_v31 = vadd.f32 %v796_v22, %v795_v38  ;;  %v4277_v49 = vpop.f32.mrf.mxu1  ;;  %v854_v7 = vsel %vm778_vm2, %v836_v33, 0.0  ;;  %v374_v23 = vadd.f32 %v5247_v43, %v5244_v42  ;;  %v366_v43 = vadd.f32 %v5254_v45, %v5251_v44 }
  0xf3   :  { %785 = vst.msk [vmem:[%s5967_s2 + $0x30] sm:$0xff] %vm778_vm2, %v768_v26  ;;  %v766_v47 = vadd.f32 %v715_v35, %v567_v28  ;;  %v850_v53 = vsel %vm778_vm2, %v834_v24, 0.0  ;;  %v570_v55 = vadd.f32 %v4259_v40, %v345_v18  ;;  %v839_v16 = vmul.f32 %v768_v26, %v768_v26  ;;  %v4645_v35 = vld [vmem:[%s5966_s0 + $0x238] sm:$0xff]  }
  0xf4   :  { %v519_v56 = vpop.f32.mrf.mxu0  ;;  %v799_v60 = vadd.f32 %v798_v30, %v797_v31  ;;  %v851_v61 = vadd.f32 %v850_v53, %v849_v32  ;;  %v718_v62 = vpop.f32.mrf.mxu1  ;;  %v806_v25 = vsel %vm778_vm2, %v768_v26, 0.0  ;;  %v377_v53 = vadd.f32 %v5261_v48, %v5256_v46 }
  0xf5   :  { %783 = vst.msk [vmem:[%s5967_s2 + $0x20] sm:$0xff] %vm778_vm2, %v766_v47  ;;  %v837_v0 = vmul.f32 %v766_v47, %v766_v47  ;;  %v769_v1 = vadd.f32 %v4277_v49, %v570_v55  ;;  %v568_v2 = vadd.f32 %v519_v56, %v337_v20  ;;  %v802_v8 = vsel %vm778_vm2, %v766_v47, 0.0 }
  0xf6   :  { %v4262_v3 = vpop.f32.mrf.mxu0  ;;  %4477 = vmatmul.mubr.msk.bf16.gmra.mxu0 %vm90_vm1, %v4640_v27  ;;  %v853_v4 = vadd.f32 %v852_v59, %v851_v61  ;;  %v801_v34 = vadd.f32 %v800_v63, %v799_v60  ;;  %v4280_v5 = vpop.f32.mrf.mxu1  ;;  %4495 = vmatmul.mubr.msk.bf16.gmra.mxu1 %vm90_vm1, %v4641_v50  ;;  %v860_v30 = vsel %vm778_vm2, %v839_v16, 0.0  ;;  %v369_v55 = vadd.f32 %v5276_v54, %v5269_v51 }
  0xf7   :  { %v573_v36 = vadd.f32 %v4262_v3, %v358_v37  ;;  %4480 = vmatprep.mubr.msk.bf16.mxu0 %vm90_vm1, %v4642_v52  ;;  %786 = vst.msk [vmem:[%s5967_s2 + $0x38] sm:$0xff] %vm778_vm2, %v769_v1  ;;  %v767_v9 = vadd.f32 %v718_v62, %v568_v2  ;;  %4498 = vmatprep.mubr.msk.bf16.mxu1 %vm90_vm1, %v4643_v57  ;;  %v856_v39 = vsel %vm778_vm2, %v837_v0, 0.0  ;;  %v808_v31 = vsel %vm778_vm2, %v769_v1, 0.0 }
  0xf8   :  { %v532_v10 = vpop.f32.mrf.mxu0  ;;  %v803_v11 = vadd.f32 %v802_v8, %v801_v34  ;;  %v855_v12 = vadd.f32 %v854_v7, %v853_v4  ;;  %v731_v15 = vpop.f32.mrf.mxu1  ;;  %v840_v37 = vmul.f32 %v769_v1, %v769_v1 }
  0xf9   :  { %v772_v13 = vadd.f32 %v4280_v5, %v573_v36  ;;  %v571_v14 = vadd.f32 %v532_v10, %v350_v29  ;;  %784 = vst.msk [vmem:[%s5967_s2 + $0x28] sm:$0xff] %vm778_vm2, %v767_v9  ;;  %v804_v41 = vsel %vm778_vm2, %v767_v9, 0.0  ;;  %v838_v17 = vmul.f32 %v767_v9, %v767_v9 }
  0xfa   :  { %v4263_v18 = vpop.f32.mrf.mxu0  ;;  %v857_v20 = vadd.f32 %v856_v39, %v855_v12  ;;  %v805_v21 = vadd.f32 %v804_v41, %v803_v11  ;;  %v4281_v28 = vpop.f32.mrf.mxu1  ;;  %v862_v56 = vsel %vm778_vm2, %v840_v37, 0.0 }
  0xfb   :  { %789 = vst.msk [vmem:[%s5967_s2 + $0x50] sm:$0xff] %vm778_vm2, %v772_v13  ;;  %v858_v38 = vsel %vm778_vm2, %v838_v17, 0.0  ;;  %v770_v22 = vadd.f32 %v731_v15, %v571_v14  ;;  %v574_v24 = vadd.f32 %v4263_v18, %v361_v58  ;;  %v843_v54 = vmul.f32 %v772_v13, %v772_v13 }
  0xfc   :  { %v535_v42 = vpop.f32.mrf.mxu0  ;;  %v807_v26 = vadd.f32 %v806_v25, %v805_v21  ;;  %v859_v40 = vadd.f32 %v858_v38, %v857_v20  ;;  %v734_v29 = vpop.f32.mrf.mxu1  ;;  %v814_v36 = vsel %vm778_vm2, %v772_v13, 0.0 }
  0xfd   :  { %v572_v27 = vadd.f32 %v535_v42, %v353_v6  ;;  %787 = vst.msk [vmem:[%s5967_s2 + $0x40] sm:$0xff] %vm778_vm2, %v770_v22  ;;  %v841_v47 = vmul.f32 %v770_v22, %v770_v22  ;;  %v773_v49 = vadd.f32 %v4281_v28, %v574_v24  ;;  %v810_v57 = vsel %vm778_vm2, %v770_v22, 0.0 }
  0xfe   :  { %v4266_v50 = vpop.f32.mrf.mxu0  ;;  %4481 = vmatmul.mubr.msk.bf16.gmra.mxu0 %vm90_vm1, %v4644_v19  ;;  %v861_v52 = vadd.f32 %v860_v30, %v859_v40  ;;  %v809_v44 = vadd.f32 %v808_v31, %v807_v26  ;;  %v4284_v33 = vpop.f32.mrf.mxu1  ;;  %4499 = vmatmul.mubr.msk.bf16.gmra.mxu1 %vm90_vm1, %v4645_v35  ;;  %v868_v14 = vsel %vm778_vm2, %v843_v54, 0.0 }
  0xff   :  { %v771_v45 = vadd.f32 %v734_v29, %v572_v27  ;;  %v577_v32 = vadd.f32 %v4266_v50, %v374_v23  ;;  %790 = vst.msk [vmem:[%s5967_s2 + $0x58] sm:$0xff] %vm778_vm2, %v773_v49  ;;  %v864_v61 = vsel %vm778_vm2, %v841_v47, 0.0  ;;  %v844_v5 = vmul.f32 %v773_v49, %v773_v49 }
 0x100   :  { %v548_v58 = vpop.f32.mrf.mxu0  ;;  %v811_v59 = vadd.f32 %v810_v57, %v809_v44  ;;  %v863_v60 = vadd.f32 %v862_v56, %v861_v52  ;;  %v747_v51 = vpop.f32.mrf.mxu1  ;;  %v816_v15 = vsel %vm778_vm2, %v773_v49, 0.0 }
 0x101   :  { %788 = vst.msk [vmem:[%s5967_s2 + $0x48] sm:$0xff] %vm778_vm2, %v771_v45  ;;  %v812_v46 = vsel %vm778_vm2, %v771_v45, 0.0  ;;  %v842_v48 = vmul.f32 %v771_v45, %v771_v45  ;;  %v776_v62 = vadd.f32 %v4284_v33, %v577_v32  ;;  %v575_v63 = vadd.f32 %v548_v58, %v366_v43 }
 0x102   :  { %v4267_v0 = vpop.f32.mrf.mxu0  ;;  %v865_v1 = vadd.f32 %v864_v61, %v863_v60  ;;  %v813_v2 = vadd.f32 %v812_v46, %v811_v59  ;;  %v4285_v34 = vpop.f32.mrf.mxu1  ;;  %v870_v18 = vsel %vm778_vm2, %v844_v5, 0.0 }
 0x103   :  { %v866_v3 = vsel %vm778_vm2, %v842_v48, 0.0  ;;  %v578_v4 = vadd.f32 %v4267_v0, %v377_v53  ;;  %793 = vst.msk [vmem:[%s5967_s2 + $0x70] sm:$0xff] %vm778_vm2, %v776_v62  ;;  %v774_v6 = vadd.f32 %v747_v51, %v575_v63  ;;  %v847_v35 = vmul.f32 %v776_v62, %v776_v62 }
 0x104   :  { %v551_v7 = vpop.f32.mrf.mxu0  ;;  %v815_v8 = vadd.f32 %v814_v36, %v813_v2  ;;  %v867_v9 = vadd.f32 %v866_v3, %v865_v1  ;;  %v750_v12 = vpop.f32.mrf.mxu1  ;;  %v822_v40 = vsel %vm778_vm2, %v776_v62, 0.0 }
 0x105   :  { %v777_v10 = vadd.f32 %v4285_v34, %v578_v4  ;;  %v576_v11 = vadd.f32 %v551_v7, %v369_v55  ;;  %791 = vst.msk [vmem:[%s5967_s2 + $0x60] sm:$0xff] %vm778_vm2, %v774_v6  ;;  %v845_v13 = vmul.f32 %v774_v6, %v774_v6  ;;  %v818_v19 = vsel %vm778_vm2, %v774_v6, 0.0 }
 0x106   :  { %v4290_v16 = vpop.f32.mrf.mxu0  ;;  %v869_v39 = vadd.f32 %v868_v14, %v867_v9  ;;  %v817_v41 = vadd.f32 %v816_v15, %v815_v8  ;;  %v4308_v17 = vpop.f32.mrf.mxu1  ;;  %v876_v50 = vsel %vm778_vm2, %v847_v35, 0.0 }
 0x107   :  { %794 = vst.msk [vmem:[%s5967_s2 + $0x78] sm:$0xff] %vm778_vm2, %v777_v10  ;;  %v775_v23 = vadd.f32 %v750_v12, %v576_v11  ;;  %v872_v37 = vsel %vm778_vm2, %v845_v13, 0.0  ;;  %v848_v27 = vmul.f32 %v777_v10, %v777_v10  ;;  %v824_v52 = vsel %vm778_vm2, %v777_v10, 0.0 }
 0x108   :  { %v1025_v25 = vpop.f32.mrf.mxu0  ;;  %v819_v20 = vadd.f32 %v818_v19, %v817_v41  ;;  %v871_v21 = vadd.f32 %v870_v18, %v869_v39  ;;  %v1189_v28 = vpop.f32.mrf.mxu1  ;;  %v1198_v7 = vadd.f32 %v4308_v17, %v4290_v16 }
 0x109   :  { %792 = vst.msk [vmem:[%s5967_s2 + $0x68] sm:$0xff] %vm778_vm2, %v775_v23  ;;  %v820_v38 = vsel %vm778_vm2, %v775_v23, 0.0  ;;  %v846_v22 = vmul.f32 %v775_v23, %v775_v23  ;;  %v878_v53 = vsel %vm778_vm2, %v848_v27, 0.0  ;;  %v1190_v10 = vadd.f32 %v1189_v28, %v1025_v25 }
 0x10a   :  { %v4291_v24 = vpop.f32.mrf.mxu0  ;;  %v873_v42 = vadd.f32 %v872_v37, %v871_v21  ;;  %v821_v43 = vadd.f32 %v820_v38, %v819_v20  ;;  %v4309_v26 = vpop.f32.mrf.mxu1 }
 0x10b   :  { %v874_v29 = vsel %vm778_vm2, %v846_v22, 0.0  ;;  %v1201_v15 = vadd.f32 %v4309_v26, %v4291_v24 }
 0x10c   :  { %v1028_v30 = vpop.f32.mrf.mxu0  ;;  %v823_v31 = vadd.f32 %v822_v40, %v821_v43  ;;  %v875_v47 = vadd.f32 %v874_v29, %v873_v42  ;;  %v1192_v49 = vpop.f32.mrf.mxu1 }
 0x10d   :  { %v1193_v17 = vadd.f32 %v1192_v49, %v1028_v30 }
 0x10e   :  { %v4294_v44 = vpop.f32.mrf.mxu0  ;;  %v5446_v45 = vadd.f32 %v824_v52, %v823_v31  ;;  %v877_v32 = vadd.f32 %v876_v50, %v875_v47  ;;  %v4312_v33 = vpop.f32.mrf.mxu1 }
 0x10f   :  { %v1214_v21 = vadd.f32 %v4312_v33, %v4294_v44 }
 0x110   :  { %v1041_v55 = vpop.f32.mrf.mxu0  ;;  %v5449_v56 = vadd.f32 %v878_v53, %v877_v32  ;;  %v1205_v57 = vpop.f32.mrf.mxu1 }
 0x111   :  { %v1206_v38 = vadd.f32 %v1205_v57, %v1041_v55 }
 0x112   :  { %v4295_v58 = vpop.f32.mrf.mxu0  ;;  %v4313_v59 = vpop.f32.mrf.mxu1 }
 0x113   :  { %v1217_v40 = vadd.f32 %v4313_v59, %v4295_v58 }
 0x114   :  { %v1044_v60 = vpop.f32.mrf.mxu0  ;;  %v1208_v46 = vpop.f32.mrf.mxu1 }
 0x115   :  { %v1209_v47 = vadd.f32 %v1208_v46, %v1044_v60 }
 0x116   :  { %v4298_v48 = vpop.f32.mrf.mxu0  ;;  %v4316_v51 = vpop.f32.mrf.mxu1 }
 0x117   :  { %v1230_v32 = vadd.f32 %v4316_v51, %v4298_v48 }
 0x118   :  { %v5451_v54 = vpop.f32.mrf.mxu0  ;;  %v5453_v61 = vpop.f32.mrf.mxu1 }
 0x119   :  { %v1222_v48 = vadd.f32 %v5453_v61, %v5451_v54 }
 0x11a   :  { %v5455_v62 = vpop.f32.mrf.mxu0  ;;  %v5457_v63 = vpop.f32.mrf.mxu1 }
 0x11c   :  { %v5459_v0 = vpop.f32.mrf.mxu0  ;;  %v5461_v1 = vpop.f32.mrf.mxu1 }
 0x11e   :  { %v5463_v2 = vpop.f32.mrf.mxu0  ;;  %v5465_v3 = vpop.f32.mrf.mxu1 }
 0x120   :  { %v5467_v4 = vpop.f32.mrf.mxu0  ;;  %v5469_v34 = vpop.f32.mrf.mxu1 }
 0x122   :  { %v5471_v36 = vpop.f32.mrf.mxu0  ;;  %v5473_v5 = vpop.f32.mrf.mxu1 }
 0x124   :  { %v5475_v6 = vpop.f32.mrf.mxu0  ;;  %v5477_v8 = vpop.f32.mrf.mxu1 }
 0x126   :  { %v4326_v9 = vpop.f32.mrf.mxu0  ;;  %v4344_v12 = vpop.f32.mrf.mxu1 }
 0x127   :  { %v1436_v11 = vadd.f32 %v4326_v9, %v1198_v7 }
 0x128   :  { %v1371_v14 = vpop.f32.mrf.mxu0  ;;  %v1570_v41 = vpop.f32.mrf.mxu1 }
 0x129   :  { %v1635_v13 = vadd.f32 %v4344_v12, %v1436_v11  ;;  %v1434_v39 = vadd.f32 %v1371_v14, %v1190_v10 }
 0x12a   :  { %v4327_v18 = vpop.f32.mrf.mxu0  ;;  %v4345_v16 = vpop.f32.mrf.mxu1 }
 0x12b   :  { %3760 = vst.msk [vmem:[%s5967_s2 + $0x90] sm:$0xff] %vm778_vm2, %v1635_v13  ;;  %v1633_v19 = vadd.f32 %v1570_v41, %v1434_v39  ;;  %v1437_v23 = vadd.f32 %v4327_v18, %v1201_v15  ;;  %v1706_v27 = vmul.f32 %v1635_v13, %v1635_v13  ;;  %v1669_v33 = vsel %vm778_vm2, %v1635_v13, 0.0 }
 0x12c   :  { %v1374_v20 = vpop.f32.mrf.mxu0  ;;  %v1573_v28 = vpop.f32.mrf.mxu1  ;;  %v1233_v41 = vadd.f32 %v5457_v63, %v5455_v62 }
 0x12d   :  { %3758 = vst.msk [vmem:[%s5967_s2 + $0x80] sm:$0xff] %vm778_vm2, %v1633_v19  ;;  %v1636_v25 = vadd.f32 %v4345_v16, %v1437_v23  ;;  %v1435_v35 = vadd.f32 %v1374_v20, %v1193_v17  ;;  %v1704_v42 = vmul.f32 %v1633_v19, %v1633_v19  ;;  %v1666_v49 = vsel %vm778_vm2, %v1633_v19, 0.0 }
 0x12e   :  { %v4330_v37 = vpop.f32.mrf.mxu0  ;;  %v4348_v24 = vpop.f32.mrf.mxu1  ;;  %v1723_v51 = vsel %vm778_vm2, %v1706_v27, 0.0  ;;  %v1225_v23 = vadd.f32 %v5461_v1, %v5459_v0 }
 0x12f   :  { %3761 = vst.msk [vmem:[%s5967_s2 + $0x98] sm:$0xff] %vm778_vm2, %v1636_v25  ;;  %v1440_v22 = vadd.f32 %v4330_v37, %v1214_v21  ;;  %v1634_v43 = vadd.f32 %v1573_v28, %v1435_v35  ;;  %v1720_v58 = vsel %vm778_vm2, %v1704_v42, 0.0  ;;  %v1707_v59 = vmul.f32 %v1636_v25, %v1636_v25 }
 0x130   :  { %v1387_v26 = vpop.f32.mrf.mxu0  ;;  %v1586_v31 = vpop.f32.mrf.mxu1  ;;  %v1671_v12 = vsel %vm778_vm2, %v1636_v25, 0.0 }
 0x131   :  { %v1639_v29 = vadd.f32 %v4348_v24, %v1440_v22  ;;  %v1438_v30 = vadd.f32 %v1387_v26, %v1206_v38  ;;  %3759 = vst.msk [vmem:[%s5967_s2 + $0x88] sm:$0xff] %vm778_vm2, %v1634_v43  ;;  %v1667_v50 = vsel %vm778_vm2, %v1634_v43, 0.0  ;;  %v1705_v52 = vmul.f32 %v1634_v43, %v1634_v43 }
 0x132   :  { %v4331_v44 = vpop.f32.mrf.mxu0  ;;  %v1668_v53 = vadd.f32 %v1667_v50, %v1666_v49  ;;  %v4349_v57 = vpop.f32.mrf.mxu1  ;;  %v1725_v16 = vsel %vm778_vm2, %v1707_v59, 0.0  ;;  %v1246_v24 = vadd.f32 %v5465_v3, %v5463_v2  ;;  %v1238_v50 = vadd.f32 %v5469_v34, %v5467_v4 }
 0x133   :  { %3764 = vst.msk [vmem:[%s5967_s2 + $0xb0] sm:$0xff] %vm778_vm2, %v1639_v29  ;;  %v1637_v55 = vadd.f32 %v1586_v31, %v1438_v30  ;;  %v1721_v60 = vsel %vm778_vm2, %v1705_v52, 0.0  ;;  %v1441_v46 = vadd.f32 %v4331_v44, %v1217_v40  ;;  %v1710_v37 = vmul.f32 %v1639_v29, %v1639_v29 }
 0x134   :  { %v1390_v7 = vpop.f32.mrf.mxu0  ;;  %v1670_v9 = vadd.f32 %v1669_v33, %v1668_v53  ;;  %v1722_v10 = vadd.f32 %v1721_v60, %v1720_v58  ;;  %v1589_v11 = vpop.f32.mrf.mxu1  ;;  %v1677_v42 = vsel %vm778_vm2, %v1639_v29, 0.0  ;;  %v1249_v60 = vadd.f32 %v5473_v5, %v5471_v36 }
 0x135   :  { %3762 = vst.msk [vmem:[%s5967_s2 + $0xa0] sm:$0xff] %vm778_vm2, %v1637_v55  ;;  %v1708_v14 = vmul.f32 %v1637_v55, %v1637_v55  ;;  %v1640_v15 = vadd.f32 %v4349_v57, %v1441_v46  ;;  %v1439_v13 = vadd.f32 %v1390_v7, %v1209_v47  ;;  %v1673_v17 = vsel %vm778_vm2, %v1637_v55, 0.0 }
 0x136   :  { %v4334_v39 = vpop.f32.mrf.mxu0  ;;  %v1724_v54 = vadd.f32 %v1723_v51, %v1722_v10  ;;  %v1672_v61 = vadd.f32 %v1671_v12, %v1670_v9  ;;  %v4352_v19 = vpop.f32.mrf.mxu1  ;;  %v1731_v44 = vsel %vm778_vm2, %v1710_v37, 0.0  ;;  %v1241_v46 = vadd.f32 %v5477_v8, %v5475_v6 }
 0x137   :  { %v1444_v18 = vadd.f32 %v4334_v39, %v1230_v32  ;;  %3765 = vst.msk [vmem:[%s5967_s2 + $0xb8] sm:$0xff] %vm778_vm2, %v1640_v15  ;;  %v1638_v20 = vadd.f32 %v1589_v11, %v1439_v13  ;;  %v1727_v38 = vsel %vm778_vm2, %v1708_v14, 0.0  ;;  %v1711_v27 = vmul.f32 %v1640_v15, %v1640_v15 }
 0x138   :  { %v1403_v21 = vpop.f32.mrf.mxu0  ;;  %v1674_v25 = vadd.f32 %v1673_v17, %v1672_v61  ;;  %v1726_v62 = vadd.f32 %v1725_v16, %v1724_v54  ;;  %v1602_v35 = vpop.f32.mrf.mxu1  ;;  %v1679_v32 = vsel %vm778_vm2, %v1640_v15, 0.0 }
 0x139   :  { %v1643_v63 = vadd.f32 %v4352_v19, %v1444_v18  ;;  %v1442_v28 = vadd.f32 %v1403_v21, %v1222_v48  ;;  %3763 = vst.msk [vmem:[%s5967_s2 + $0xa8] sm:$0xff] %vm778_vm2, %v1638_v20  ;;  %v1675_v0 = vsel %vm778_vm2, %v1638_v20, 0.0  ;;  %v1709_v1 = vmul.f32 %v1638_v20, %v1638_v20 }
 0x13a   :  { %v4335_v22 = vpop.f32.mrf.mxu0  ;;  %v1728_v43 = vadd.f32 %v1727_v38, %v1726_v62  ;;  %v1676_v26 = vadd.f32 %v1675_v0, %v1674_v25  ;;  %v4353_v40 = vpop.f32.mrf.mxu1  ;;  %v1733_v7 = vsel %vm778_vm2, %v1711_v27, 0.0  ;;  %v826_v38 = vrot.slane %v5446_v45, 4 }
 0x13b   :  { %3768 = vst.msk [vmem:[%s5967_s2 + $0xd0] sm:$0xff] %vm778_vm2, %v1643_v63  ;;  %v1729_v30 = vsel %vm778_vm2, %v1709_v1, 0.0  ;;  %v1641_v31 = vadd.f32 %v1602_v35, %v1442_v28  ;;  %v1445_v47 = vadd.f32 %v4335_v22, %v1233_v41  ;;  %v1714_v8 = vmul.f32 %v1643_v63, %v1643_v63 }
 0x13c   :  { %v1406_v49 = vpop.f32.mrf.mxu0  ;;  %v1678_v2 = vadd.f32 %v1677_v42, %v1676_v26  ;;  %v1730_v3 = vadd.f32 %v1729_v30, %v1728_v43  ;;  %v1605_v52 = vpop.f32.mrf.mxu1  ;;  %v1685_v18 = vsel %vm778_vm2, %v1643_v63, 0.0 }
 0x13d   :  { %v1443_v29 = vadd.f32 %v1406_v49, %v1225_v23  ;;  %3766 = vst.msk [vmem:[%s5967_s2 + $0xc0] sm:$0xff] %vm778_vm2, %v1641_v31  ;;  %v1712_v33 = vmul.f32 %v1641_v31, %v1641_v31  ;;  %v1644_v53 = vadd.f32 %v4353_v40, %v1445_v47  ;;  %v1681_v48 = vsel %vm778_vm2, %v1641_v31, 0.0 }
 0x13e   :  { %v4338_v55 = vpop.f32.mrf.mxu0  ;;  %v1732_v57 = vadd.f32 %v1731_v44, %v1730_v3  ;;  %v1680_v58 = vadd.f32 %v1679_v32, %v1678_v2  ;;  %v4356_v34 = vpop.f32.mrf.mxu1  ;;  %v1739_v28 = vsel %vm778_vm2, %v1714_v8, 0.0  ;;  %v880_v40 = vrot.slane %v5449_v56, 4 }
 0x13f   :  { %v1642_v59 = vadd.f32 %v1605_v52, %v1443_v29  ;;  %v1448_v4 = vadd.f32 %v4338_v55, %v1246_v24  ;;  %3769 = vst.msk [vmem:[%s5967_s2 + $0xd8] sm:$0xff] %vm778_vm2, %v1644_v53  ;;  %v1735_v11 = vsel %vm778_vm2, %v1712_v33, 0.0  ;;  %v1715_v19 = vmul.f32 %v1644_v53, %v1644_v53 }
 0x140   :  { %v1419_v51 = vpop.f32.mrf.mxu0  ;;  %v1682_v9 = vadd.f32 %v1681_v48, %v1680_v58  ;;  %v1734_v10 = vadd.f32 %v1733_v7, %v1732_v57  ;;  %v1618_v6 = vpop.f32.mrf.mxu1  ;;  %v1687_v35 = vsel %vm778_vm2, %v1644_v53, 0.0  ;;  %v827_v29 = vadd.f32 %v826_v38, %v5446_v45 }
 0x141   :  { %3767 = vst.msk [vmem:[%s5967_s2 + $0xc8] sm:$0xff] %vm778_vm2, %v1642_v59  ;;  %v1683_v36 = vsel %vm778_vm2, %v1642_v59, 0.0  ;;  %v1713_v5 = vmul.f32 %v1642_v59, %v1642_v59  ;;  %v1647_v12 = vadd.f32 %v4356_v34, %v1448_v4  ;;  %v1446_v14 = vadd.f32 %v1419_v51, %v1238_v50 }
 0x142   :  { %v4339_v15 = vpop.f32.mrf.mxu0  ;;  %v1736_v13 = vadd.f32 %v1735_v11, %v1734_v10  ;;  %v1684_v39 = vadd.f32 %v1683_v36, %v1682_v9  ;;  %v4357_v61 = vpop.f32.mrf.mxu1  ;;  %v1741_v24 = vsel %vm778_vm2, %v1715_v19, 0.0  ;;  %v881_v58 = vadd.f32 %v880_v40, %v5449_v56 }
 0x143   :  { %v1737_v41 = vsel %vm778_vm2, %v1713_v5, 0.0  ;;  %v1449_v54 = vadd.f32 %v4339_v15, %v1249_v60  ;;  %3772 = vst.msk [vmem:[%s5967_s2 + $0xf0] sm:$0xff] %vm778_vm2, %v1647_v12  ;;  %v1645_v23 = vadd.f32 %v1618_v6, %v1446_v14  ;;  %v1718_v47 = vmul.f32 %v1647_v12, %v1647_v12 }
 0x144   :  { %v1422_v16 = vpop.f32.mrf.mxu0  ;;  %v1686_v17 = vadd.f32 %v1685_v18, %v1684_v39  ;;  %v1738_v20 = vadd.f32 %v1737_v41, %v1736_v13  ;;  %v1621_v62 = vpop.f32.mrf.mxu1  ;;  %v1693_v33 = vsel %vm778_vm2, %v1647_v12, 0.0  ;;  %v828_v7 = vrot.slane %v827_v29, 2 }
 0x145   :  { %v1648_v21 = vadd.f32 %v4357_v61, %v1449_v54  ;;  %v1447_v25 = vadd.f32 %v1422_v16, %v1241_v46  ;;  %3770 = vst.msk [vmem:[%s5967_s2 + $0xe0] sm:$0xff] %vm778_vm2, %v1645_v23  ;;  %v1716_v63 = vmul.f32 %v1645_v23, %v1645_v23  ;;  %v1689_v42 = vsel %vm778_vm2, %v1645_v23, 0.0 }
 0x146   :  { %v5572_v37 = vpop.f32.mrf.mxu0  ;;  %v1740_v0 = vadd.f32 %v1739_v28, %v1738_v20  ;;  %v1688_v1 = vadd.f32 %v1687_v35, %v1686_v17  ;;  %v5579_v22 = vpop.f32.mrf.mxu1  ;;  %v1747_v60 = vsel %vm778_vm2, %v1718_v47, 0.0  ;;  %v882_v56 = vrot.slane %v881_v58, 2 }
 0x147   :  { %3773 = vst.msk [vmem:[%s5967_s2 + $0xf8] sm:$0xff] %vm778_vm2, %v1648_v21  ;;  %v1646_v43 = vadd.f32 %v1621_v62, %v1447_v25  ;;  %v1743_v49 = vsel %vm778_vm2, %v1716_v63, 0.0  ;;  %v1719_v53 = vmul.f32 %v1648_v21, %v1648_v21  ;;  %v1695_v45 = vsel %vm778_vm2, %v1648_v21, 0.0 }
 0x148   :  { %v5583_v26 = vpop.f32.mrf.mxu0  ;;  %v1690_v27 = vadd.f32 %v1689_v42, %v1688_v1  ;;  %v1742_v30 = vadd.f32 %v1741_v24, %v1740_v0  ;;  %v5586_v31 = vpop.f32.mrf.mxu1  ;;  %v829_v12 = vadd.f32 %v828_v7, %v827_v29  ;;  %v883_v41 = vadd.f32 %v882_v56, %v881_v58 }
 0x149   :  { %3771 = vst.msk [vmem:[%s5967_s2 + $0xe8] sm:$0xff] %vm778_vm2, %v1646_v43  ;;  %v1691_v50 = vsel %vm778_vm2, %v1646_v43, 0.0  ;;  %v1717_v2 = vmul.f32 %v1646_v43, %v1646_v43  ;;  %v1749_v10 = vsel %vm778_vm2, %v1719_v53, 0.0  ;;  %v2068_v53 = vadd.f32 %v5579_v22, %v5572_v37 }
 0x14a   :  { %v5594_v3 = vpop.f32.mrf.mxu0  ;;  %v1744_v52 = vadd.f32 %v1743_v49, %v1742_v30  ;;  %v1692_v44 = vadd.f32 %v1691_v50, %v1690_v27  ;;  %v5597_v32 = vpop.f32.mrf.mxu1  ;;  %v830_v23 = vrot.slane %v829_v12, 1  ;;  %v884_v25 = vrot.slane %v883_v41, 1 }
 0x14b   :  { %v1745_v55 = vsel %vm778_vm2, %v1717_v2, 0.0  ;;  %v2071_v7 = vadd.f32 %v5597_v32, %v5594_v3 }
 0x14c   :  { %v5601_v57 = vpop.f32.mrf.mxu0  ;;  %v1694_v59 = vadd.f32 %v1693_v33, %v1692_v44  ;;  %v1746_v4 = vadd.f32 %v1745_v55, %v1744_v52  ;;  %v5604_v34 = vpop.f32.mrf.mxu1  ;;  %v831_v38 = vadd.f32 %v830_v23, %v829_v12  ;;  %v885_v43 = vadd.f32 %v884_v25, %v883_v41 }
 0x14e   :  { %v5608_v46 = vpop.f32.mrf.mxu0  ;;  %v1696_v48 = vadd.f32 %v1695_v45, %v1694_v59  ;;  %v1748_v51 = vadd.f32 %v1747_v60, %v1746_v4  ;;  %v5610_v9 = vpop.f32.mrf.mxu1  ;;  %v2060_v59 = vadd.f32 %v5586_v31, %v5583_v26  ;;  %v2063_v26 = vadd.f32 %v5604_v34, %v5601_v57 }
 0x150   :  { %v5613_v36 = vpop.f32.mrf.mxu0  ;;  %v1697_v5 = vrot.slane %v1696_v48, 4  ;;  %v1750_v6 = vadd.f32 %v1749_v10, %v1748_v51  ;;  %v5615_v8 = vpop.f32.mrf.mxu1 }
 0x152   :  { %v5617_v11 = vpop.f32.mrf.mxu0  ;;  %v1698_v14 = vadd.f32 %v1697_v5, %v1696_v48  ;;  %v1751_v15 = vrot.slane %v1750_v6, 4  ;;  %v5619_v13 = vpop.f32.mrf.mxu1 }
 0x154   :  { %v5621_v39 = vpop.f32.mrf.mxu0  ;;  %v1699_v54 = vrot.slane %v1698_v14, 2  ;;  %v1752_v61 = vadd.f32 %v1751_v15, %v1750_v6  ;;  %v5623_v18 = vpop.f32.mrf.mxu1  ;;  %v2084_v6 = vadd.f32 %v5610_v9, %v5608_v46  ;;  %v2076_v15 = vadd.f32 %v5615_v8, %v5613_v36 }
 0x155   :  { %v2079_v36 = vadd.f32 %v5623_v18, %v5621_v39 }
 0x156   :  { %v5625_v19 = vpop.f32.mrf.mxu0  ;;  %v1700_v16 = vadd.f32 %v1699_v54, %v1698_v14  ;;  %v1753_v17 = vrot.slane %v1752_v61, 2  ;;  %v5627_v20 = vpop.f32.mrf.mxu1  ;;  %v2087_v54 = vadd.f32 %v5619_v13, %v5617_v11 }
 0x157   :  { %v2100_v11 = vadd.f32 %v5627_v20, %v5625_v19 }
 0x158   :  { %v5629_v21 = vpop.f32.mrf.mxu0  ;;  %v1701_v62 = vrot.slane %v1700_v16, 1  ;;  %v1754_v28 = vadd.f32 %v1753_v17, %v1752_v61  ;;  %v5631_v35 = vpop.f32.mrf.mxu1 }
 0x159   :  { %v2092_v19 = vadd.f32 %v5631_v35, %v5629_v21 }
 0x15a   :  { %v5633_v63 = vpop.f32.mrf.mxu0  ;;  %v1702_v0 = vadd.f32 %v1701_v62, %v1700_v16  ;;  %v1755_v1 = vrot.slane %v1754_v28, 1  ;;  %v5635_v24 = vpop.f32.mrf.mxu1 }
 0x15c   :  { %v5637_v42 = vpop.f32.mrf.mxu0  ;;  %v5639_v40 = vadd.f32 %v1702_v0, %v831_v38  ;;  %v1756_v27 = vadd.f32 %v1755_v1, %v1754_v28  ;;  %v5641_v30 = vpop.f32.mrf.mxu1 }
 0x15e   :  { %v5643_v47 = vpop.f32.mrf.mxu0  ;;  %v5645_v49 = vadd.f32 %v1756_v27, %v885_v43  ;;  %v5647_v50 = vpop.f32.mrf.mxu1 }
 0x160   :  { %v5649_v2 = vpop.f32.mrf.mxu0  ;;  %v5651_v29 = vpop.f32.mrf.mxu1 }
 0x162   :  { %v5653_v52 = vpop.f32.mrf.mxu0  ;;  %v5655_v44 = vpop.f32.mrf.mxu1 }
 0x164   :  { %v5657_v33 = vpop.f32.mrf.mxu0  ;;  %v5661_v55 = vpop.f32.mrf.mxu1 }
 0x166   :  { %v4398_v58 = vpop.f32.mrf.mxu0  ;;  %v4416_v60 = vpop.f32.mrf.mxu1 }
 0x167   :  { %v2307_v4 = vadd.f32 %v4398_v58, %v2068_v53 }
 0x168   :  { %v2242_v45 = vpop.f32.mrf.mxu0  ;;  %v2441_v10 = vpop.f32.mrf.mxu1 }
 0x169   :  { %v2506_v48 = vadd.f32 %v4416_v60, %v2307_v4  ;;  %v2305_v51 = vadd.f32 %v2242_v45, %v2060_v59 }
 0x16a   :  { %v4399_v56 = vpop.f32.mrf.mxu0  ;;  %v4417_v5 = vpop.f32.mrf.mxu1 }
 0x16b   :  { %3908 = vst.msk [vmem:[%s5967_s2 + $0x110] sm:$0xff] %vm778_vm2, %v2506_v48  ;;  %v2504_v37 = vadd.f32 %v2441_v10, %v2305_v51  ;;  %v2308_v22 = vadd.f32 %v4399_v56, %v2071_v7  ;;  %v2577_v61 = vmul.f32 %v2506_v48, %v2506_v48  ;;  %v2540_v13 = vsel %vm778_vm2, %v2506_v48, 0.0 }
 0x16c   :  { %v2245_v31 = vpop.f32.mrf.mxu0  ;;  %v2444_v32 = vpop.f32.mrf.mxu1  ;;  %v2103_v10 = vadd.f32 %v5635_v24, %v5633_v63 }
 0x16d   :  { %3906 = vst.msk [vmem:[%s5967_s2 + $0x100] sm:$0xff] %vm778_vm2, %v2504_v37  ;;  %v2507_v3 = vadd.f32 %v4417_v5, %v2308_v22  ;;  %v2306_v12 = vadd.f32 %v2245_v31, %v2063_v26  ;;  %v2575_v46 = vmul.f32 %v2504_v37, %v2504_v37  ;;  %v2537_v8 = vsel %vm778_vm2, %v2504_v37, 0.0 }
 0x16e   :  { %v4402_v14 = vpop.f32.mrf.mxu0  ;;  %v4420_v34 = vpop.f32.mrf.mxu1  ;;  %v2594_v20 = vsel %vm778_vm2, %v2577_v61, 0.0  ;;  %v2095_v22 = vadd.f32 %v5641_v30, %v5637_v42 }
 0x16f   :  { %3909 = vst.msk [vmem:[%s5967_s2 + $0x118] sm:$0xff] %vm778_vm2, %v2507_v3  ;;  %v2311_v57 = vadd.f32 %v4402_v14, %v2084_v6  ;;  %v2505_v9 = vadd.f32 %v2444_v32, %v2306_v12  ;;  %v2591_v0 = vsel %vm778_vm2, %v2575_v46, 0.0  ;;  %v2578_v1 = vmul.f32 %v2507_v3, %v2507_v3 }
 0x170   :  { %v2258_v41 = vpop.f32.mrf.mxu0  ;;  %v2457_v17 = vpop.f32.mrf.mxu1  ;;  %v2542_v60 = vsel %vm778_vm2, %v2507_v3, 0.0 }
 0x171   :  { %v2510_v23 = vadd.f32 %v4420_v34, %v2311_v57  ;;  %v2309_v16 = vadd.f32 %v2258_v41, %v2076_v15  ;;  %3907 = vst.msk [vmem:[%s5967_s2 + $0x108] sm:$0xff] %vm778_vm2, %v2505_v9  ;;  %v2538_v25 = vsel %vm778_vm2, %v2505_v9, 0.0  ;;  %v2576_v62 = vmul.f32 %v2505_v9, %v2505_v9 }
 0x172   :  { %v4403_v28 = vpop.f32.mrf.mxu0  ;;  %v2539_v38 = vadd.f32 %v2538_v25, %v2537_v8  ;;  %v4421_v18 = vpop.f32.mrf.mxu1  ;;  %v2596_v5 = vsel %vm778_vm2, %v2578_v1, 0.0  ;;  %v2116_v34 = vadd.f32 %v5647_v50, %v5643_v47  ;;  %v2108_v25 = vadd.f32 %v5651_v29, %v5649_v2 }
 0x173   :  { %3912 = vst.msk [vmem:[%s5967_s2 + $0x130] sm:$0xff] %vm778_vm2, %v2510_v23  ;;  %v2508_v39 = vadd.f32 %v2457_v17, %v2309_v16  ;;  %v2592_v43 = vsel %vm778_vm2, %v2576_v62, 0.0  ;;  %v2312_v27 = vadd.f32 %v4403_v28, %v2087_v54  ;;  %v2581_v14 = vmul.f32 %v2510_v23, %v2510_v23 }
 0x174   :  { %v2261_v53 = vpop.f32.mrf.mxu0  ;;  %v2541_v58 = vadd.f32 %v2540_v13, %v2539_v38  ;;  %v2593_v59 = vadd.f32 %v2592_v43, %v2591_v0  ;;  %v2460_v4 = vpop.f32.mrf.mxu1  ;;  %v2548_v46 = vsel %vm778_vm2, %v2510_v23, 0.0  ;;  %v2119_v43 = vadd.f32 %v5655_v44, %v5653_v52 }
 0x175   :  { %3910 = vst.msk [vmem:[%s5967_s2 + $0x120] sm:$0xff] %vm778_vm2, %v2508_v39  ;;  %v2579_v45 = vmul.f32 %v2508_v39, %v2508_v39  ;;  %v2511_v7 = vadd.f32 %v4421_v18, %v2312_v27  ;;  %v2310_v48 = vadd.f32 %v2261_v53, %v2079_v36  ;;  %v2544_v26 = vsel %vm778_vm2, %v2508_v39, 0.0 }
 0x176   :  { %v4406_v51 = vpop.f32.mrf.mxu0  ;;  %v2595_v21 = vadd.f32 %v2594_v20, %v2593_v59  ;;  %v2543_v35 = vadd.f32 %v2542_v60, %v2541_v58  ;;  %v4424_v37 = vpop.f32.mrf.mxu1  ;;  %v2602_v28 = vsel %vm778_vm2, %v2581_v14, 0.0  ;;  %v2111_v27 = vadd.f32 %v5661_v55, %v5657_v33 }
 0x177   :  { %v2315_v56 = vadd.f32 %v4406_v51, %v2100_v11  ;;  %3913 = vst.msk [vmem:[%s5967_s2 + $0x138] sm:$0xff] %vm778_vm2, %v2511_v7  ;;  %v2509_v31 = vadd.f32 %v2460_v4, %v2310_v48  ;;  %v2598_v15 = vsel %vm778_vm2, %v2579_v45, 0.0  ;;  %v2582_v61 = vmul.f32 %v2511_v7, %v2511_v7 }
 0x178   :  { %v2274_v6 = vpop.f32.mrf.mxu0  ;;  %v2545_v3 = vadd.f32 %v2544_v26, %v2543_v35  ;;  %v2597_v63 = vadd.f32 %v2596_v5, %v2595_v21  ;;  %v2473_v12 = vpop.f32.mrf.mxu1  ;;  %v2550_v11 = vsel %vm778_vm2, %v2511_v7, 0.0 }
 0x179   :  { %v2514_v24 = vadd.f32 %v4424_v37, %v2315_v56  ;;  %v2313_v32 = vadd.f32 %v2274_v6, %v2092_v19  ;;  %3911 = vst.msk [vmem:[%s5967_s2 + $0x128] sm:$0xff] %vm778_vm2, %v2509_v31  ;;  %v2546_v42 = vsel %vm778_vm2, %v2509_v31, 0.0  ;;  %v2580_v30 = vmul.f32 %v2509_v31, %v2509_v31 }
 0x17a   :  { %v4407_v57 = vpop.f32.mrf.mxu0  ;;  %v2599_v9 = vadd.f32 %v2598_v15, %v2597_v63  ;;  %v2547_v41 = vadd.f32 %v2546_v42, %v2545_v3  ;;  %v4425_v54 = vpop.f32.mrf.mxu1  ;;  %v2604_v53 = vsel %vm778_vm2, %v2582_v61, 0.0 }
 0x17b   :  { %3916 = vst.msk [vmem:[%s5967_s2 + $0x150] sm:$0xff] %vm778_vm2, %v2514_v24  ;;  %v2600_v16 = vsel %vm778_vm2, %v2580_v30, 0.0  ;;  %v2512_v17 = vadd.f32 %v2473_v12, %v2313_v32  ;;  %v2316_v36 = vadd.f32 %v4407_v57, %v2103_v10  ;;  %v2585_v55 = vmul.f32 %v2514_v24, %v2514_v24 }
 0x17c   :  { %v2277_v8 = vpop.f32.mrf.mxu0  ;;  %v2549_v47 = vadd.f32 %v2548_v46, %v2547_v41  ;;  %v2601_v50 = vadd.f32 %v2600_v16, %v2599_v9  ;;  %v2476_v62 = vpop.f32.mrf.mxu1  ;;  %v2556_v56 = vsel %vm778_vm2, %v2514_v24, 0.0 }
 0x17d   :  { %v2314_v23 = vadd.f32 %v2277_v8, %v2095_v22  ;;  %3914 = vst.msk [vmem:[%s5967_s2 + $0x140] sm:$0xff] %vm778_vm2, %v2512_v17  ;;  %v2583_v13 = vmul.f32 %v2512_v17, %v2512_v17  ;;  %v2515_v38 = vadd.f32 %v4425_v54, %v2316_v36  ;;  %v2552_v19 = vsel %vm778_vm2, %v2512_v17, 0.0 }
 0x17e   :  { %v4410_v39 = vpop.f32.mrf.mxu0  ;;  %v2603_v18 = vadd.f32 %v2602_v28, %v2601_v50  ;;  %v2551_v0 = vadd.f32 %v2550_v11, %v2549_v47  ;;  %v4428_v29 = vpop.f32.mrf.mxu1  ;;  %v2610_v32 = vsel %vm778_vm2, %v2585_v55, 0.0 }
 0x17f   :  { %v2513_v1 = vadd.f32 %v2476_v62, %v2314_v23  ;;  %v2319_v2 = vadd.f32 %v4410_v39, %v2116_v34  ;;  %3917 = vst.msk [vmem:[%s5967_s2 + $0x158] sm:$0xff] %vm778_vm2, %v2515_v38  ;;  %v2606_v4 = vsel %vm778_vm2, %v2583_v13, 0.0  ;;  %v2586_v37 = vmul.f32 %v2515_v38, %v2515_v38 }
 0x180   :  { %v2290_v20 = vpop.f32.mrf.mxu0  ;;  %v2553_v58 = vadd.f32 %v2552_v19, %v2551_v0  ;;  %v2605_v59 = vadd.f32 %v2604_v53, %v2603_v18  ;;  %v2489_v33 = vpop.f32.mrf.mxu1  ;;  %v2558_v12 = vsel %vm778_vm2, %v2515_v38, 0.0 }
 0x181   :  { %3915 = vst.msk [vmem:[%s5967_s2 + $0x148] sm:$0xff] %vm778_vm2, %v2513_v1  ;;  %v2554_v52 = vsel %vm778_vm2, %v2513_v1, 0.0  ;;  %v2584_v44 = vmul.f32 %v2513_v1, %v2513_v1  ;;  %v2518_v60 = vadd.f32 %v4428_v29, %v2319_v2  ;;  %v2317_v45 = vadd.f32 %v2290_v20, %v2108_v25 }
 0x182   :  { %v4411_v7 = vpop.f32.mrf.mxu0  ;;  %v2607_v48 = vadd.f32 %v2606_v4, %v2605_v59  ;;  %v2555_v51 = vadd.f32 %v2554_v52, %v2553_v58  ;;  %v4429_v35 = vpop.f32.mrf.mxu1  ;;  %v2612_v57 = vsel %vm778_vm2, %v2586_v37, 0.0 }
 0x183   :  { %v2608_v10 = vsel %vm778_vm2, %v2584_v44, 0.0  ;;  %v2320_v21 = vadd.f32 %v4411_v7, %v2119_v43  ;;  %3920 = vst.msk [vmem:[%s5967_s2 + $0x170] sm:$0xff] %vm778_vm2, %v2518_v60  ;;  %v2516_v22 = vadd.f32 %v2489_v33, %v2317_v45  ;;  %v2589_v16 = vmul.f32 %v2518_v60, %v2518_v60 }
 0x184   :  { %v2293_v5 = vpop.f32.mrf.mxu0  ;;  %v2557_v26 = vadd.f32 %v2556_v56, %v2555_v51  ;;  %v2609_v31 = vadd.f32 %v2608_v10, %v2607_v48  ;;  %v2492_v63 = vpop.f32.mrf.mxu1  ;;  %v2564_v62 = vsel %vm778_vm2, %v2518_v60, 0.0 }
 0x185   :  { %v2519_v6 = vadd.f32 %v4429_v35, %v2320_v21  ;;  %v2318_v3 = vadd.f32 %v2293_v5, %v2111_v27  ;;  %3918 = vst.msk [vmem:[%s5967_s2 + $0x160] sm:$0xff] %vm778_vm2, %v2516_v22  ;;  %v2587_v24 = vmul.f32 %v2516_v22, %v2516_v22  ;;  %v2560_v34 = vsel %vm778_vm2, %v2516_v22, 0.0 }
 0x186   :  { %v5772_v14 = vpop.f32.mrf.mxu0  ;;  %v2611_v15 = vadd.f32 %v2610_v32, %v2609_v31  ;;  %v2559_v42 = vadd.f32 %v2558_v12, %v2557_v26  ;;  %v5778_v30 = vpop.f32.mrf.mxu1  ;;  %v2618_v0 = vsel %vm778_vm2, %v2589_v16, 0.0 }
 0x187   :  { %3921 = vst.msk [vmem:[%s5967_s2 + $0x178] sm:$0xff] %vm778_vm2, %v2519_v6  ;;  %v2517_v46 = vadd.f32 %v2492_v63, %v2318_v3  ;;  %v2614_v17 = vsel %vm778_vm2, %v2587_v24, 0.0  ;;  %v2590_v28 = vmul.f32 %v2519_v6, %v2519_v6  ;;  %v2566_v1 = vsel %vm778_vm2, %v2519_v6, 0.0 }
 0x188   :  { %v5782_v9 = vpop.f32.mrf.mxu0  ;;  %v2561_v41 = vadd.f32 %v2560_v34, %v2559_v42  ;;  %v2613_v54 = vadd.f32 %v2612_v57, %v2611_v15  ;;  %v5784_v61 = vpop.f32.mrf.mxu1 }
 0x189   :  { %3919 = vst.msk [vmem:[%s5967_s2 + $0x168] sm:$0xff] %vm778_vm2, %v2517_v46  ;;  %v2562_v36 = vsel %vm778_vm2, %v2517_v46, 0.0  ;;  %v2588_v8 = vmul.f32 %v2517_v46, %v2517_v46  ;;  %v2620_v53 = vsel %vm778_vm2, %v2590_v28, 0.0 }
 0x18a   :  { %v4435_v25 = vpop.f32.mrf.mxu0  ;;  %v2615_v47 = vadd.f32 %v2614_v17, %v2613_v54  ;;  %v2563_v50 = vadd.f32 %v2562_v36, %v2561_v41  ;;  %v4453_v23 = vpop.f32.mrf.mxu1  ;;  %v2939_v54 = vadd.f32 %v5778_v30, %v5772_v14 }
 0x18b   :  { %v2616_v11 = vsel %vm778_vm2, %v2588_v8, 0.0 }
 0x18c   :  { %v5794_v13 = vpop.f32.mrf.mxu0  ;;  %v2565_v38 = vadd.f32 %v2564_v62, %v2563_v50  ;;  %v2617_v39 = vadd.f32 %v2616_v11, %v2615_v47  ;;  %v2933_v18 = vpop.f32.mrf.mxu1  ;;  %v2942_v50 = vadd.f32 %v4453_v23, %v4435_v25 }
 0x18e   :  { %v4438_v2 = vpop.f32.mrf.mxu0  ;;  %v2567_v29 = vadd.f32 %v2566_v1, %v2565_v38  ;;  %v2619_v43 = vadd.f32 %v2618_v0, %v2617_v39  ;;  %v4456_v27 = vpop.f32.mrf.mxu1  ;;  %v2934_v0 = vadd.f32 %v2933_v18, %v5794_v13 }
 0x190   :  { %v2782_v19 = vpop.f32.mrf.mxu0  ;;  %v2568_v20 = vrot.slane %v2567_v29, 4  ;;  %v2621_v58 = vadd.f32 %v2620_v53, %v2619_v43  ;;  %v2946_v59 = vpop.f32.mrf.mxu1 }
 0x191   :  { %v2947_v43 = vadd.f32 %v2946_v59, %v2782_v19 }
 0x192   :  { %v5799_v52 = vpop.f32.mrf.mxu0  ;;  %v2569_v44 = vadd.f32 %v2568_v20, %v2567_v29  ;;  %v2622_v33 = vrot.slane %v2621_v58, 4  ;;  %v4457_v55 = vpop.f32.mrf.mxu1 }
 0x194   :  { %v5801_v4 = vpop.f32.mrf.mxu0  ;;  %v2570_v60 = vrot.slane %v2569_v44, 2  ;;  %v2623_v45 = vadd.f32 %v2622_v33, %v2621_v58  ;;  %v2949_v7 = vpop.f32.mrf.mxu1 }
 0x196   :  { %v5803_v48 = vpop.f32.mrf.mxu0  ;;  %v2571_v51 = vadd.f32 %v2570_v60, %v2569_v44  ;;  %v2624_v10 = vrot.slane %v2623_v45, 2  ;;  %v5805_v21 = vpop.f32.mrf.mxu1 }
 0x198   :  { %v5807_v35 = vpop.f32.mrf.mxu0  ;;  %v2572_v56 = vrot.slane %v2571_v51, 1  ;;  %v2625_v37 = vadd.f32 %v2624_v10, %v2623_v45  ;;  %v5809_v22 = vpop.f32.mrf.mxu1  ;;  %v2950_v45 = vadd.f32 %v2949_v7, %v5801_v4 }
 0x19a   :  { %v5811_v5 = vpop.f32.mrf.mxu0  ;;  %v2573_v26 = vadd.f32 %v2572_v56, %v2571_v51  ;;  %v2626_v31 = vrot.slane %v2625_v37, 1  ;;  %v5813_v6 = vpop.f32.mrf.mxu1 }
 0x19c   :  { %v5815_v3 = vpop.f32.mrf.mxu0  ;;  %v5818_v63 = vadd.f32 %v2573_v26, %v5639_v40  ;;  %v2627_v32 = vadd.f32 %v2626_v31, %v2625_v37  ;;  %v5820_v12 = vpop.f32.mrf.mxu1 }
 0x19e   :  { %v5822_v24 = vpop.f32.mrf.mxu0  ;;  %v5825_v15 = vadd.f32 %v2627_v32, %v5645_v49  ;;  %v5827_v42 = vpop.f32.mrf.mxu1  ;;  %v2931_v49 = vadd.f32 %v5784_v61, %v5782_v9  ;;  %v2955_v9 = vadd.f32 %v4456_v27, %v4438_v2  ;;  %v2958_v27 = vadd.f32 %v4457_v55, %v5799_v52 }
 0x19f   :  { %v2971_v52 = vadd.f32 %v5805_v21, %v5803_v48  ;;  %v2963_v48 = vadd.f32 %v5809_v22, %v5807_v35 }
 0x1a0   :  { %v5829_v57 = vpop.f32.mrf.mxu0  ;;  %v5831_v34 = vpop.f32.mrf.mxu1 }
 0x1a2   :  { %v5833_v46 = vpop.f32.mrf.mxu0  ;;  %v5835_v41 = vpop.f32.mrf.mxu1 }
 0x1a4   :  { %v5837_v40 = vpop.f32.mrf.mxu0  ;;  %v5841_v16 = vpop.f32.mrf.mxu1 }
 0x1a6   :  { %v4470_v17 = vpop.f32.mrf.mxu0  ;;  %v4488_v8 = vpop.f32.mrf.mxu1 }
 0x1a7   :  { %v3177_v36 = vadd.f32 %v4470_v17, %v2939_v54 }
 0x1a8   :  { %v3112_v47 = vpop.f32.mrf.mxu0  ;;  %v3311_v11 = vpop.f32.mrf.mxu1 }
 0x1a9   :  { %v3376_v62 = vadd.f32 %v4488_v8, %v3177_v36  ;;  %v3175_v28 = vadd.f32 %v3112_v47, %v2931_v49 }
 0x1aa   :  { %v4471_v38 = vpop.f32.mrf.mxu0  ;;  %v4489_v39 = vpop.f32.mrf.mxu1 }
 0x1ab   :  { %4056 = vst.msk [vmem:[%s5967_s2 + $0x190] sm:$0xff] %vm778_vm2, %v3376_v62  ;;  %v3374_v14 = vadd.f32 %v3311_v11, %v3175_v28  ;;  %v3178_v30 = vadd.f32 %v4471_v38, %v2942_v50  ;;  %v3447_v58 = vmul.f32 %v3376_v62, %v3376_v62  ;;  %v3410_v55 = vsel %vm778_vm2, %v3376_v62, 0.0 }
 0x1ac   :  { %v3115_v1 = vpop.f32.mrf.mxu0  ;;  %v3314_v25 = vpop.f32.mrf.mxu1  ;;  %v2974_v11 = vadd.f32 %v5813_v6, %v5811_v5 }
 0x1ad   :  { %4054 = vst.msk [vmem:[%s5967_s2 + $0x180] sm:$0xff] %vm778_vm2, %v3374_v14  ;;  %v3377_v61 = vadd.f32 %v4489_v39, %v3178_v30  ;;  %v3176_v23 = vadd.f32 %v3115_v1, %v2934_v0  ;;  %v3445_v13 = vmul.f32 %v3374_v14, %v3374_v14  ;;  %v3407_v19 = vsel %vm778_vm2, %v3374_v14, 0.0 }
 0x1ae   :  { %v4474_v29 = vpop.f32.mrf.mxu0  ;;  %v4492_v20 = vpop.f32.mrf.mxu1  ;;  %v3464_v21 = vsel %vm778_vm2, %v3447_v58, 0.0  ;;  %v2966_v30 = vadd.f32 %v5820_v12, %v5815_v3 }
 0x1af   :  { %4057 = vst.msk [vmem:[%s5967_s2 + $0x198] sm:$0xff] %vm778_vm2, %v3377_v61  ;;  %v3181_v53 = vadd.f32 %v4474_v29, %v2955_v9  ;;  %v3375_v18 = vadd.f32 %v3314_v25, %v3176_v23  ;;  %v3461_v37 = vsel %vm778_vm2, %v3445_v13, 0.0  ;;  %v3448_v26 = vmul.f32 %v3377_v61, %v3377_v61 }
 0x1b0   :  { %v3128_v2 = vpop.f32.mrf.mxu0  ;;  %v3327_v60 = vpop.f32.mrf.mxu1  ;;  %v3412_v8 = vsel %vm778_vm2, %v3377_v61, 0.0 }
 0x1b1   :  { %v3380_v44 = vadd.f32 %v4492_v20, %v3181_v53  ;;  %v3179_v33 = vadd.f32 %v3128_v2, %v2947_v43  ;;  %4055 = vst.msk [vmem:[%s5967_s2 + $0x188] sm:$0xff] %vm778_vm2, %v3375_v18  ;;  %v3408_v59 = vsel %vm778_vm2, %v3375_v18, 0.0  ;;  %v3446_v51 = vmul.f32 %v3375_v18, %v3375_v18 }
 0x1b2   :  { %v4475_v10 = vpop.f32.mrf.mxu0  ;;  %v3409_v56 = vadd.f32 %v3408_v59, %v3407_v19  ;;  %v4493_v7 = vpop.f32.mrf.mxu1  ;;  %v3466_v39 = vsel %vm778_vm2, %v3448_v26, 0.0  ;;  %v2987_v20 = vadd.f32 %v5827_v42, %v5822_v24  ;;  %v2979_v59 = vadd.f32 %v5831_v34, %v5829_v57 }
 0x1b3   :  { %4060 = vst.msk [vmem:[%s5967_s2 + $0x1b0] sm:$0xff] %vm778_vm2, %v3380_v44  ;;  %v3378_v4 = vadd.f32 %v3327_v60, %v3179_v33  ;;  %v3462_v31 = vsel %vm778_vm2, %v3446_v51, 0.0  ;;  %v3182_v32 = vadd.f32 %v4475_v10, %v2958_v27  ;;  %v3451_v29 = vmul.f32 %v3380_v44, %v3380_v44 }
 0x1b4   :  { %v3131_v54 = vpop.f32.mrf.mxu0  ;;  %v3411_v17 = vadd.f32 %v3410_v55, %v3409_v56  ;;  %v3463_v49 = vadd.f32 %v3462_v31, %v3461_v37  ;;  %v3330_v36 = vpop.f32.mrf.mxu1  ;;  %v3418_v13 = vsel %vm778_vm2, %v3380_v44, 0.0  ;;  %v2990_v31 = vadd.f32 %v5835_v41, %v5833_v46 }
 0x1b5   :  { %4058 = vst.msk [vmem:[%s5967_s2 + $0x1a0] sm:$0xff] %vm778_vm2, %v3378_v4  ;;  %v3449_v47 = vmul.f32 %v3378_v4, %v3378_v4  ;;  %v3381_v50 = vadd.f32 %v4493_v7, %v3182_v32  ;;  %v3180_v62 = vadd.f32 %v3131_v54, %v2950_v45  ;;  %v3414_v0 = vsel %vm778_vm2, %v3378_v4, 0.0 }
 0x1b6   :  { %v4478_v28 = vpop.f32.mrf.mxu0  ;;  %v3465_v35 = vadd.f32 %v3464_v21, %v3463_v49  ;;  %v3413_v22 = vadd.f32 %v3412_v8, %v3411_v17  ;;  %v4496_v14 = vpop.f32.mrf.mxu1  ;;  %v3472_v10 = vsel %vm778_vm2, %v3451_v29, 0.0  ;;  %v2982_v32 = vadd.f32 %v5841_v16, %v5837_v40 }
 0x1b7   :  { %v3185_v38 = vadd.f32 %v4478_v28, %v2971_v52  ;;  %4061 = vst.msk [vmem:[%s5967_s2 + $0x1b8] sm:$0xff] %vm778_vm2, %v3381_v50  ;;  %v3379_v1 = vadd.f32 %v3330_v36, %v3180_v62  ;;  %v3468_v43 = vsel %vm778_vm2, %v3449_v47, 0.0  ;;  %v3452_v58 = vmul.f32 %v3381_v50, %v3381_v50 }
 0x1b8   :  { %v3144_v9 = vpop.f32.mrf.mxu0  ;;  %v3415_v61 = vadd.f32 %v3414_v0, %v3413_v22  ;;  %v3467_v5 = vadd.f32 %v3466_v39, %v3465_v35  ;;  %v3343_v23 = vpop.f32.mrf.mxu1  ;;  %v3420_v52 = vsel %vm778_vm2, %v3381_v50, 0.0 }
 0x1b9   :  { %v3384_v6 = vadd.f32 %v4496_v14, %v3185_v38  ;;  %v3183_v25 = vadd.f32 %v3144_v9, %v2963_v48  ;;  %4059 = vst.msk [vmem:[%s5967_s2 + $0x1a8] sm:$0xff] %vm778_vm2, %v3379_v1  ;;  %v3416_v3 = vsel %vm778_vm2, %v3379_v1, 0.0  ;;  %v3450_v12 = vmul.f32 %v3379_v1, %v3379_v1 }
 0x1ba   :  { %v4479_v53 = vpop.f32.mrf.mxu0  ;;  %v3469_v18 = vadd.f32 %v3468_v43, %v3467_v5  ;;  %v3417_v2 = vadd.f32 %v3416_v3, %v3415_v61  ;;  %v4497_v27 = vpop.f32.mrf.mxu1  ;;  %v3474_v54 = vsel %vm778_vm2, %v3452_v58, 0.0 }
 0x1bb   :  { %4064 = vst.msk [vmem:[%s5967_s2 + $0x1d0] sm:$0xff] %vm778_vm2, %v3384_v6  ;;  %v3470_v33 = vsel %vm778_vm2, %v3450_v12, 0.0  ;;  %v3382_v60 = vadd.f32 %v3343_v23, %v3183_v25  ;;  %v3186_v45 = vadd.f32 %v4479_v53, %v2974_v11  ;;  %v3455_v16 = vmul.f32 %v3384_v6, %v3384_v6 }
 0x1bc   :  { %v3147_v19 = vpop.f32.mrf.mxu0  ;;  %v3419_v24 = vadd.f32 %v3418_v13, %v3417_v2  ;;  %v3471_v42 = vadd.f32 %v3470_v33, %v3469_v18  ;;  %v3346_v51 = vpop.f32.mrf.mxu1  ;;  %v3426_v38 = vsel %vm778_vm2, %v3384_v6, 0.0 }
 0x1bd   :  { %v3184_v44 = vadd.f32 %v3147_v19, %v2966_v30  ;;  %4062 = vst.msk [vmem:[%s5967_s2 + $0x1c0] sm:$0xff] %vm778_vm2, %v3382_v60  ;;  %v3453_v55 = vmul.f32 %v3382_v60, %v3382_v60  ;;  %v3385_v56 = vadd.f32 %v4497_v27, %v3186_v45  ;;  %v3422_v48 = vsel %vm778_vm2, %v3382_v60, 0.0 }
 0x1be   :  { %v4482_v4 = vpop.f32.mrf.mxu0  ;;  %v3473_v7 = vadd.f32 %v3472_v10, %v3471_v42  ;;  %v3421_v37 = vadd.f32 %v3420_v52, %v3419_v24  ;;  %v4500_v34 = vpop.f32.mrf.mxu1  ;;  %v3480_v5 = vsel %vm778_vm2, %v3455_v16, 0.0 }
 0x1bf   :  { %v3383_v26 = vadd.f32 %v3346_v51, %v3184_v44  ;;  %v3189_v57 = vadd.f32 %v4482_v4, %v2987_v20  ;;  %4065 = vst.msk [vmem:[%s5967_s2 + $0x1d8] sm:$0xff] %vm778_vm2, %v3385_v56  ;;  %v3476_v36 = vsel %vm778_vm2, %v3453_v55, 0.0  ;;  %v3456_v14 = vmul.f32 %v3385_v56, %v3385_v56 }
 0x1c0   :  { %v3160_v21 = vpop.f32.mrf.mxu0  ;;  %v3423_v17 = vadd.f32 %v3422_v48, %v3421_v37  ;;  %v3475_v49 = vadd.f32 %v3474_v54, %v3473_v7  ;;  %v3359_v40 = vpop.f32.mrf.mxu1  ;;  %v3428_v25 = vsel %vm778_vm2, %v3385_v56, 0.0 }
 0x1c1   :  { %4063 = vst.msk [vmem:[%s5967_s2 + $0x1c8] sm:$0xff] %vm778_vm2, %v3383_v26  ;;  %v3424_v46 = vsel %vm778_vm2, %v3383_v26, 0.0  ;;  %v3454_v41 = vmul.f32 %v3383_v26, %v3383_v26  ;;  %v3388_v8 = vadd.f32 %v4500_v34, %v3189_v57  ;;  %v3187_v47 = vadd.f32 %v3160_v21, %v2979_v59 }
 0x1c2   :  { %v4483_v50 = vpop.f32.mrf.mxu0  ;;  %v3477_v62 = vadd.f32 %v3476_v36, %v3475_v49  ;;  %v3425_v28 = vadd.f32 %v3424_v46, %v3423_v17  ;;  %v4501_v22 = vpop.f32.mrf.mxu1  ;;  %v3482_v3 = vsel %vm778_vm2, %v3456_v14, 0.0 }
 0x1c3   :  { %v3478_v11 = vsel %vm778_vm2, %v3454_v41, 0.0  ;;  %v3190_v35 = vadd.f32 %v4483_v50, %v2990_v31  ;;  %4068 = vst.msk [vmem:[%s5967_s2 + $0x1f0] sm:$0xff] %vm778_vm2, %v3388_v8  ;;  %v3386_v30 = vadd.f32 %v3359_v40, %v3187_v47  ;;  %v3459_v18 = vmul.f32 %v3388_v8, %v3388_v8 }
 0x1c4   :  { %v3163_v39 = vpop.f32.mrf.mxu0  ;;  %v3427_v0 = vadd.f32 %v3426_v38, %v3425_v28  ;;  %v3479_v1 = vadd.f32 %v3478_v11, %v3477_v62  ;;  %v3362_v43 = vpop.f32.mrf.mxu1  ;;  %v3434_v45 = vsel %vm778_vm2, %v3388_v8, 0.0 }
 0x1c5   :  { %v3389_v9 = vadd.f32 %v4501_v22, %v3190_v35  ;;  %v3188_v61 = vadd.f32 %v3163_v39, %v2982_v32  ;;  %4066 = vst.msk [vmem:[%s5967_s2 + $0x1e0] sm:$0xff] %vm778_vm2, %v3386_v30  ;;  %v3457_v6 = vmul.f32 %v3386_v30, %v3386_v30  ;;  %v3430_v12 = vsel %vm778_vm2, %v3386_v30, 0.0 }
 0x1c6   :  { %v3481_v23 = vadd.f32 %v3480_v5, %v3479_v1  ;;  %v3429_v29 = vadd.f32 %v3428_v25, %v3427_v0  ;;  %v3488_v44 = vsel %vm778_vm2, %v3459_v18, 0.0 }
 0x1c7   :  { %4069 = vst.msk [vmem:[%s5967_s2 + $0x1f8] sm:$0xff] %vm778_vm2, %v3389_v9  ;;  %v3387_v53 = vadd.f32 %v3362_v43, %v3188_v61  ;;  %v3484_v2 = vsel %vm778_vm2, %v3457_v6, 0.0  ;;  %v3460_v19 = vmul.f32 %v3389_v9, %v3389_v9  ;;  %v3436_v51 = vsel %vm778_vm2, %v3389_v9, 0.0 }
 0x1c8   :  { %v3431_v20 = vadd.f32 %v3430_v12, %v3429_v29  ;;  %v3483_v13 = vadd.f32 %v3482_v3, %v3481_v23 }
 0x1c9   :  { %4067 = vst.msk [vmem:[%s5967_s2 + $0x1e8] sm:$0xff] %vm778_vm2, %v3387_v53  ;;  %v3432_v27 = vsel %vm778_vm2, %v3387_v53, 0.0  ;;  %v3458_v58 = vmul.f32 %v3387_v53, %v3387_v53  ;;  %v3490_v55 = vsel %vm778_vm2, %v3460_v19, 0.0 }
 0x1ca   :  { %v3485_v33 = vadd.f32 %v3484_v2, %v3483_v13  ;;  %v3433_v60 = vadd.f32 %v3432_v27, %v3431_v20 }
 0x1cb   :  { %v3486_v59 = vsel %vm778_vm2, %v3458_v58, 0.0 }
 0x1cc   :  { %v3435_v24 = vadd.f32 %v3434_v45, %v3433_v60  ;;  %v3487_v42 = vadd.f32 %v3486_v59, %v3485_v33 }
 0x1ce   :  { %v3437_v10 = vadd.f32 %v3436_v51, %v3435_v24  ;;  %v3489_v52 = vadd.f32 %v3488_v44, %v3487_v42 }
 0x1d0   :  { %v3438_v56 = vrot.slane %v3437_v10, 4  ;;  %v3491_v4 = vadd.f32 %v3490_v55, %v3489_v52 }
 0x1d2   :  { %v3439_v7 = vadd.f32 %v3438_v56, %v3437_v10  ;;  %v3492_v37 = vrot.slane %v3491_v4, 4 }
 0x1d4   :  { %v3440_v26 = vrot.slane %v3439_v7, 2  ;;  %v3493_v57 = vadd.f32 %v3492_v37, %v3491_v4 }
 0x1d6   :  { %v3441_v34 = vadd.f32 %v3440_v26, %v3439_v7  ;;  %v3494_v31 = vrot.slane %v3493_v57, 2 }
 0x1d8   :  { %v3442_v32 = vrot.slane %v3441_v34, 1  ;;  %v3495_v54 = vadd.f32 %v3494_v31, %v3493_v57 }
 0x1da   :  { %v3443_v48 = vadd.f32 %v3442_v32, %v3441_v34  ;;  %v3496_v21 = vrot.slane %v3495_v54, 1 }
 0x1dc   :  { %v3497_v17 = vadd.f32 %v3496_v21, %v3495_v54  ;;  %v3444_v49 = vadd.f32 %v3443_v48, %v5818_v63 }
 0x1de   :  { %v3498_v46 = vadd.f32 %v3497_v17, %v5825_v15 }
 0x1e0   :  { %v3500_v41 = vsel %vm3499_vm3, %v3444_v49, %v3498_v46 }
 0x1e1   :  { %3502 = vst.msk [vmem:[%s5968_s3] sm:$0x3] %vm3501_vm4, %v3500_v41 }

</bundles_post_ra>
